<compile_context>
chip_gen: v7x
topology: tpu7x:2x2x1
jax: 0.10.0
libtpu: 0.0.40
codegen_flags: <defaults>
</compile_context>

<pallas_src>
import math
from functools import partial

import jax
import jax.numpy as jnp
import numpy as np
from jax.experimental import pallas as pl
from jax.experimental.pallas import tpu as pltpu

# ----------------------------- configuration --------------------------------
D_MODEL = 32          # d_model        (small-shape stand-in for 512)
N_HEADS = 4           # n_heads        (stand-in for 8)
HEAD_DIM = D_MODEL // N_HEADS
HEB_HIDDEN = 16       # hebbian_hidden (stand-in for 256)
BATCH = 16
SEQ = 8


# ------------------------------- kernel -------------------------------------
def temporal_system_kernel(
    x_ref,                 # (BT, S, D)   raw input (W_in folded into Q/K/V weights)
    wq_ref, bq_ref,        # (NH, D, HD), (NH, S, HD)   fused: W_in^T @ Wq_h^T, (b_in+tenc) @ Wq_h^T + bq_h
    wk_ref, bk_ref,        # (NH, D, HD), (NH, S, HD)
    wv_ref, bv_ref,        # (NH, D, HD), (NH, S, HD)
    wo_ref, bo_ref,        # (NH, HD, D), (1, D)        attention out-projection, row-split by head
    wheb_ref, bheb_ref,    # (D, HH), (1, HH)
    wouta_ref,             # (D, D)   output-projection rows hitting attended_mean
    woutb_ref,             # (HH, D)  output-projection rows hitting hebbian_output
    bout_ref,              # (1, D)
    out_ref,               # (BT, D)            final_output
    attw_ref,              # (NH, BT, S, S)     attention_weights (head-major; host transposes)
    heb_ref,               # (BT, HH)           hebbian_output
    amean_ref,             # (BT, D)            attended_mean
):
    BT, S, D = x_ref.shape
    NH, _, HD = wq_ref.shape
    BTS = BT * S
    scale = 1.0 / math.sqrt(HD)

    # All BT*S rows handled at once; no per-batch-row unroll anywhere below.
    x2 = x_ref[...].reshape(BTS, D)                         # leading-dim reshape: free
    xb = jnp.broadcast_to(x2[None], (NH, BTS, D))           # shared operand for Q/K/V

    def qkv(w_r, b_r):
        # (NH, BTS, HD) batched matmul; bias (per head & seq position) broadcast over batch.
        y = jnp.einsum("hnd,hdf->hnf", xb, w_r[...],
                       preferred_element_type=jnp.float32)
        y = y.reshape(NH, BT, S, HD) + b_r[...][:, None, :, :]
        return y.reshape(NH * BT, S, HD)                    # merge batch dims: free

    q = qkv(wq_ref, bq_ref)
    k = qkv(wk_ref, bk_ref)
    v = qkv(wv_ref, bv_ref)

    # ---- attention, batched over the merged (NH*BT) axis -----------------------
    s = jnp.einsum("bqd,bkd->bqk", q, k,
                   preferred_element_type=jnp.float32) * scale          # (NH*BT, S, S)
    s = s - jnp.max(s, axis=-1, keepdims=True)
    e = jnp.exp(s)
    den = jnp.sum(e, axis=-1, keepdims=True)
    # EUP reciprocal seed + one Newton step: full f32 accuracy, divide off the VALU slot.
    r = pl.reciprocal(den, approx=True)
    r = r * (2.0 - den * r)
    w = e * r                                                            # (NH*BT, S, S)

    # Single coalesced block store of all attention weights for this grid step.
    attw_ref[...] = w.reshape(NH, BT, S, S)

    ctx = jnp.einsum("bqk,bkd->bqd", w, v,
                     preferred_element_type=jnp.float32)                 # (NH*BT, S, HD)

    # ---- mean over seq BEFORE the out-projection (exact by linearity) ----------
    ctx_mean = jnp.mean(ctx, axis=1).reshape(NH, BT, HD)                 # (NH, BT, HD)
    am = jnp.einsum("hbd,hdf->hbf", ctx_mean, wo_ref[...],
                    preferred_element_type=jnp.float32)                  # (NH, BT, D)
    # Head merge = sum over the leading axis: 3 VALU adds of (BT, D) tiles, no concat.
    amean = jnp.sum(am, axis=0) + bo_ref[...]                            # (BT, D)
    amean_ref[...] = amean

    # ---- Hebbian learner proxy --------------------------------------------------
    # TODO(synk): HebbianLearner is not defined in the source module; its forward is
    #             approximated as tanh(Linear(x)); the Hebbian connection-matrix
    #             (outer-product trace) update is omitted.
    heb = jnp.tanh(jnp.dot(amean, wheb_ref[...],
                           preferred_element_type=jnp.float32) + bheb_ref[...])   # (BT, HH)
    heb_ref[...] = heb

    # ---- output projection; concat([amean, heb]) folded into row-split weights --
    out_ref[...] = (
        jnp.dot(amean, wouta_ref[...], preferred_element_type=jnp.float32)
        + jnp.dot(heb, woutb_ref[...], preferred_element_type=jnp.float32)
        + bout_ref[...]
    )


# --------------------------- host-side preparation ---------------------------
def make_params(key, d_model=D_MODEL, heb_hidden=HEB_HIDDEN, max_len=1000):
    """Deterministic parameter init mirroring the module's __init__ shapes."""
    ks = jax.random.split(key, 8)

    def lin(k, out_dim, in_dim):
        bound = 1.0 / math.sqrt(in_dim)
        kw, kb = jax.random.split(k)
        w = jax.random.uniform(kw, (out_dim, in_dim), jnp.float32, -bound, bound)
        b = jax.random.uniform(kb, (1, out_dim), jnp.float32, -bound, bound)
        return w, b

    p = {}
    p["w_in"], p["b_in"] = lin(ks[0], d_model, d_model)               # input_projection
    p["wq"], p["bq"] = lin(ks[1], d_model, d_model)                   # attention Q
    p["wk"], p["bk"] = lin(ks[2], d_model, d_model)                   # attention K
    p["wv"], p["bv"] = lin(ks[3], d_model, d_model)                   # attention V
    p["wo"], p["bo"] = lin(ks[4], d_model, d_model)                   # attention out
    p["wheb"], p["bheb"] = lin(ks[5], heb_hidden, d_model)            # hebbian feed-forward
    p["wout"], p["bout"] = lin(ks[6], d_model, d_model + heb_hidden)  # output_projection
    p["temporal_encoding"] = (
        jax.random.normal(ks[7], (max_len, d_model), jnp.float32) * 0.1
    )
    # Hebbian connection matrix (returned as `hebbian_weights`, not updated here).
    p["hebbian_weights"] = jnp.zeros((heb_hidden, d_model), jnp.float32)
    return p


def prepare_kernel_params(params, seq_len):
    """One-time host-side weight prep (hoisted out of the per-call path).

    Folds the input projection + temporal encoding into the per-head Q/K/V
    weights/biases and pre-splits / pre-transposes everything the kernel needs,
    so the kernel never transposes, lane-slices or concatenates a VMEM tile.
    """
    D, NH, HD, S = D_MODEL, N_HEADS, HEAD_DIM, seq_len
    w_in_t = params["w_in"].T                                        # (D, D) (in, out)
    tenc_b = params["b_in"] + params["temporal_encoding"][:S]        # (S, D)

    def fold_qkv(w, b):
        wt = w.T                                                     # (D, D) (in, out)
        w_f = (w_in_t @ wt).reshape(D, NH, HD).transpose(1, 0, 2)    # (NH, D, HD)
        b_f = (tenc_b @ wt + b).reshape(S, NH, HD).transpose(1, 0, 2)  # (NH, S, HD)
        return w_f, b_f

    wq_f, bq_f = fold_qkv(params["wq"], params["bq"])
    wk_f, bk_f = fold_qkv(params["wk"], params["bk"])
    wv_f, bv_f = fold_qkv(params["wv"], params["bv"])

    wo_h = params["wo"].T.reshape(NH, HD, D)                         # (NH, HD, D)
    wout_t = params["wout"].T                                        # (D + HH, D)

    return {
        "wq": wq_f, "bq": bq_f,
        "wk": wk_f, "bk": bk_f,
        "wv": wv_f, "bv": bv_f,
        "wo": wo_h, "bo": params["bo"],
        "wheb": params["wheb"].T, "bheb": params["bheb"],
        "wout_a": wout_t[:D], "wout_b": wout_t[D:], "bout": params["bout"],
        "hebbian_weights": params["hebbian_weights"],
    }


# ------------------------------- wrapper -------------------------------------
def _resident_spec(arr):
    """Full block, constant index_map -> stays VMEM-resident across grid steps."""
    nd = arr.ndim
    return pl.BlockSpec(arr.shape, lambda i, _nd=nd: (0,) * _nd)


def _default_batch_tile(batch):
    """Generation-aware default: v7x (2 TCs) -> 2-way parallel grid; v5e/v6e -> 1 step."""
    try:
        kind = jax.devices()[0].device_kind.lower()
    except Exception:
        kind = ""
    if ("v7" in kind or "7x" in kind) and batch % 2 == 0:
        bt = batch // 2
        if bt % 8 == 0 or bt == batch:
            return bt
    return batch


@partial(jax.jit, static_argnames=("batch_tile",))
def _forward_impl(x, w, batch_tile):
    B, S, D = x.shape
    NH, _, HD = w["wq"].shape
    HH = w["wheb"].shape[1]
    BT = batch_tile

    inputs = (
        x,
        w["wq"], w["bq"], w["wk"], w["bk"], w["wv"], w["bv"],
        w["wo"], w["bo"],
        w["wheb"], w["bheb"],
        w["wout_a"], w["wout_b"], w["bout"],
    )
    in_specs = [pl.BlockSpec((BT, S, D), lambda i: (i, 0, 0))] + [
        _resident_spec(a) for a in inputs[1:]
    ]
    out_specs = (
        pl.BlockSpec((BT, D), lambda i: (i, 0)),               # final_output
        pl.BlockSpec((NH, BT, S, S), lambda i: (0, i, 0, 0)),  # attention_weights (head-major)
        pl.BlockSpec((BT, HH), lambda i: (i, 0)),              # hebbian_output
        pl.BlockSpec((BT, D), lambda i: (i, 0)),               # attended_mean
    )
    out_shape = (
        jax.ShapeDtypeStruct((B, D), jnp.float32),
        jax.ShapeDtypeStruct((NH, B, S, S), jnp.float32),
        jax.ShapeDtypeStruct((B, HH), jnp.float32),
        jax.ShapeDtypeStruct((B, D), jnp.float32),
    )

    final_out, attw_hm, heb_out, amean = pl.pallas_call(
        temporal_system_kernel,
        out_shape=out_shape,
        grid=(B // BT,),
        in_specs=in_specs,
        out_specs=out_specs,
        compiler_params=pltpu.CompilerParams(
            dimension_semantics=("parallel",),       # megacore/2-TC sharding of the batch axis
            vmem_limit_bytes=32 * 1024 * 1024,       # comfortable on every chip generation
        ),
    )(*inputs)

    # Kernel-natural head-major layout -> module layout (cheap XLA transpose, outside kernel).
    attn_w = jnp.transpose(attw_hm, (1, 0, 2, 3))
    return final_out, attn_w, heb_out, amean


def temporal_intelligence_forward(x, prepped, *, batch_tile=None):
    """x: (B, S, D) float32, prepped: output of prepare_kernel_params.

    Returns a dict mimicking the module's tensor outputs.
    """
    B, S, D = x.shape
    assert D == D_MODEL
    if batch_tile is None:
        batch_tile = _default_batch_tile(B)
    BT = batch_tile
    assert B % BT == 0
    # 2-D output blocks are (BT, *): keep BT a multiple of 8 (or == B) for native tiling.
    assert BT % 8 == 0 or BT == B

    weights = {k: v for k, v in prepped.items() if k != "hebbian_weights"}
    final_out, attn_w, heb_out, amean = _forward_impl(x, weights, BT)

    # TODO(synk): memory-hierarchy retrieve/store, ModelValidator, EmergentBehaviorManager
    #             and the step/history bookkeeping are stateful Python-side components with
    #             no tensor-kernel equivalent; they are not implemented here.
    return {
        "output": final_out,
        "attention_weights": attn_w,
        "hebbian_output": heb_out,
        "attended_mean": amean,
        "hebbian_weights": prepped["hebbian_weights"],
    }


# --------------------------- pure-JAX reference ------------------------------
def reference_forward(x, params):
    B, S, D = x.shape
    tenc = params["temporal_encoding"][:S]
    xp = x @ params["w_in"].T + params["b_in"] + tenc[None]
    q = xp @ params["wq"].T + params["bq"]
    k = xp @ params["wk"].T + params["bk"]
    v = xp @ params["wv"].T + params["bv"]
    qh = q.reshape(B, S, N_HEADS, HEAD_DIM).transpose(0, 2, 1, 3)
    kh = k.reshape(B, S, N_HEADS, HEAD_DIM).transpose(0, 2, 1, 3)
    vh = v.reshape(B, S, N_HEADS, HEAD_DIM).transpose(0, 2, 1, 3)
    scores = jnp.einsum("bhqd,bhkd->bhqk", qh, kh) / math.sqrt(HEAD_DIM)
    w = jax.nn.softmax(scores, axis=-1)
    oh = jnp.einsum("bhqk,bhkd->bhqd", w, vh)
    o = oh.transpose(0, 2, 1, 3).reshape(B, S, D)
    attended = o @ params["wo"].T + params["bo"]
    amean = attended.mean(axis=1)
    heb = jnp.tanh(amean @ params["wheb"].T + params["bheb"])
    comb = jnp.concatenate([amean, heb], axis=-1)
    final = comb @ params["wout"].T + params["bout"]
    return final, w, heb, amean


# --------------------------------- main --------------------------------------
if __name__ == "__main__":
    key = jax.random.PRNGKey(0)
    kx, kp = jax.random.split(key)
    x = jax.random.normal(kx, (BATCH, SEQ, D_MODEL), jnp.float32)
    params = make_params(kp)

    # Host-side weight prep happens exactly once (review: hoist out of per-call path).
    prepped = prepare_kernel_params(params, SEQ)

    results = temporal_intelligence_forward(x, prepped)
    jax.block_until_ready(results["output"])

    ref_out, ref_w, ref_heb, ref_amean = reference_forward(x, params)
    np.testing.assert_allclose(np.asarray(results["output"]), np.asarray(ref_out),
                               rtol=1e-4, atol=1e-4)
    np.testing.assert_allclose(np.asarray(results["attention_weights"]),
                               np.asarray(ref_w), rtol=1e-4, atol=1e-4)
    np.testing.assert_allclose(np.asarray(results["hebbian_output"]),
                               np.asarray(ref_heb), rtol=1e-4, atol=1e-4)
    np.testing.assert_allclose(np.asarray(results["attended_mean"]),
                               np.asarray(ref_amean), rtol=1e-4, atol=1e-4)

    print("KERNEL_OK")
</pallas_src>

<mosaic_0001>
module attributes {stable_mosaic.version = 11 : i64} {
  func.func @temporal_system_kernel(%arg0: i32, %arg1: memref<16x8x32xf32, #tpu.memory_space<vmem>>, %arg2: memref<4x32x8xf32, #tpu.memory_space<vmem>>, %arg3: memref<4x8x8xf32, #tpu.memory_space<vmem>>, %arg4: memref<4x32x8xf32, #tpu.memory_space<vmem>>, %arg5: memref<4x8x8xf32, #tpu.memory_space<vmem>>, %arg6: memref<4x32x8xf32, #tpu.memory_space<vmem>>, %arg7: memref<4x8x8xf32, #tpu.memory_space<vmem>>, %arg8: memref<4x8x32xf32, #tpu.memory_space<vmem>>, %arg9: memref<1x32xf32, #tpu.memory_space<vmem>>, %arg10: memref<32x16xf32, #tpu.memory_space<vmem>>, %arg11: memref<1x16xf32, #tpu.memory_space<vmem>>, %arg12: memref<32x32xf32, #tpu.memory_space<vmem>>, %arg13: memref<16x32xf32, #tpu.memory_space<vmem>>, %arg14: memref<1x32xf32, #tpu.memory_space<vmem>>, %arg15: memref<16x32xf32, #tpu.memory_space<vmem>>, %arg16: memref<4x16x8x8xf32, #tpu.memory_space<vmem>>, %arg17: memref<16x16xf32, #tpu.memory_space<vmem>>, %arg18: memref<16x32xf32, #tpu.memory_space<vmem>>) attributes {dimension_semantics = [#tpu.dimension_semantics<parallel>], iteration_bounds = array<i64: 1>, scalar_prefetch = 0 : i64, scratch_operands = 0 : i64, tpu.core_type = #tpu.core_type<tc>, window_params = [{transform_indices = @transform_0, window_bounds = array<i64: 16, 8, 32>}, {pipeline_mode = #tpu.pipeline_mode<synchronous>, transform_indices = @transform_1, window_bounds = array<i64: 4, 32, 8>}, {pipeline_mode = #tpu.pipeline_mode<synchronous>, transform_indices = @transform_2, window_bounds = array<i64: 4, 8, 8>}, {pipeline_mode = #tpu.pipeline_mode<synchronous>, transform_indices = @transform_3, window_bounds = array<i64: 4, 32, 8>}, {pipeline_mode = #tpu.pipeline_mode<synchronous>, transform_indices = @transform_4, window_bounds = array<i64: 4, 8, 8>}, {pipeline_mode = #tpu.pipeline_mode<synchronous>, transform_indices = @transform_5, window_bounds = array<i64: 4, 32, 8>}, {pipeline_mode = #tpu.pipeline_mode<synchronous>, transform_indices = @transform_6, window_bounds = array<i64: 4, 8, 8>}, {pipeline_mode = #tpu.pipeline_mode<synchronous>, transform_indices = @transform_7, window_bounds = array<i64: 4, 8, 32>}, {pipeline_mode = #tpu.pipeline_mode<synchronous>, transform_indices = @transform_8, window_bounds = array<i64: 1, 32>}, {pipeline_mode = #tpu.pipeline_mode<synchronous>, transform_indices = @transform_9, window_bounds = array<i64: 32, 16>}, {pipeline_mode = #tpu.pipeline_mode<synchronous>, transform_indices = @transform_10, window_bounds = array<i64: 1, 16>}, {pipeline_mode = #tpu.pipeline_mode<synchronous>, transform_indices = @transform_11, window_bounds = array<i64: 32, 32>}, {pipeline_mode = #tpu.pipeline_mode<synchronous>, transform_indices = @transform_12, window_bounds = array<i64: 16, 32>}, {pipeline_mode = #tpu.pipeline_mode<synchronous>, transform_indices = @transform_13, window_bounds = array<i64: 1, 32>}, {transform_indices = @transform_14, window_bounds = array<i64: 16, 32>}, {transform_indices = @transform_15, window_bounds = array<i64: 4, 16, 8, 8>}, {transform_indices = @transform_16, window_bounds = array<i64: 16, 16>}, {transform_indices = @transform_17, window_bounds = array<i64: 16, 32>}]} {
    %c0 = arith.constant 0 : index
    %c0_0 = arith.constant 0 : index
    %c0_1 = arith.constant 0 : index
    %0 = vector.load %arg1[%c0, %c0_0, %c0_1] : memref<16x8x32xf32, #tpu.memory_space<vmem>>, vector<16x8x32xf32>
    %1 = vector.shape_cast %0 : vector<16x8x32xf32> to vector<128x32xf32>
    %2 = vector.shape_cast %1 : vector<128x32xf32> to vector<1x128x32xf32>
    %3 = vector.shape_cast %2 : vector<1x128x32xf32> to vector<1x128x32xf32>
    %4 = vector.broadcast %3 : vector<1x128x32xf32> to vector<4x128x32xf32>
    %c0_2 = arith.constant 0 : index
    %c0_3 = arith.constant 0 : index
    %c0_4 = arith.constant 0 : index
    %5 = vector.load %arg2[%c0_2, %c0_3, %c0_4] : memref<4x32x8xf32, #tpu.memory_space<vmem>>, vector<4x32x8xf32>
    "tpu.trace_start"() <{level = 10 : i32, message = "hnd,hdf->hnf"}> : () -> ()
    %cst = arith.constant dense<0.000000e+00> : vector<4x128x8xf32>
    %6 = tpu.matmul %4, %5, %cst {dimension_numbers = #tpu.dot_dimension_numbers<[2], [1], [1], [2], [0, 0, 0, 1, 1, 2], [0], [0]>} : vector<4x128x32xf32>, vector<4x32x8xf32>, vector<4x128x8xf32> -> vector<4x128x8xf32>
    "tpu.trace_stop"() : () -> ()
    %7 = vector.shape_cast %6 : vector<4x128x8xf32> to vector<4x16x8x8xf32>
    %c0_5 = arith.constant 0 : index
    %c0_6 = arith.constant 0 : index
    %c0_7 = arith.constant 0 : index
    %8 = vector.load %arg3[%c0_5, %c0_6, %c0_7] : memref<4x8x8xf32, #tpu.memory_space<vmem>>, vector<4x8x8xf32>
    %9 = vector.shape_cast %8 : vector<4x8x8xf32> to vector<4x1x8x8xf32>
    %10 = vector.broadcast %9 : vector<4x1x8x8xf32> to vector<4x16x8x8xf32>
    %11 = arith.addf %7, %10 : vector<4x16x8x8xf32>
    %12 = vector.shape_cast %11 : vector<4x16x8x8xf32> to vector<64x8x8xf32>
    %c0_8 = arith.constant 0 : index
    %c0_9 = arith.constant 0 : index
    %c0_10 = arith.constant 0 : index
    %13 = vector.load %arg4[%c0_8, %c0_9, %c0_10] : memref<4x32x8xf32, #tpu.memory_space<vmem>>, vector<4x32x8xf32>
    "tpu.trace_start"() <{level = 10 : i32, message = "hnd,hdf->hnf"}> : () -> ()
    %cst_11 = arith.constant dense<0.000000e+00> : vector<4x128x8xf32>
    %14 = tpu.matmul %4, %13, %cst_11 {dimension_numbers = #tpu.dot_dimension_numbers<[2], [1], [1], [2], [0, 0, 0, 1, 1, 2], [0], [0]>} : vector<4x128x32xf32>, vector<4x32x8xf32>, vector<4x128x8xf32> -> vector<4x128x8xf32>
    "tpu.trace_stop"() : () -> ()
    %15 = vector.shape_cast %14 : vector<4x128x8xf32> to vector<4x16x8x8xf32>
    %c0_12 = arith.constant 0 : index
    %c0_13 = arith.constant 0 : index
    %c0_14 = arith.constant 0 : index
    %16 = vector.load %arg5[%c0_12, %c0_13, %c0_14] : memref<4x8x8xf32, #tpu.memory_space<vmem>>, vector<4x8x8xf32>
    %17 = vector.shape_cast %16 : vector<4x8x8xf32> to vector<4x1x8x8xf32>
    %18 = vector.broadcast %17 : vector<4x1x8x8xf32> to vector<4x16x8x8xf32>
    %19 = arith.addf %15, %18 : vector<4x16x8x8xf32>
    %20 = vector.shape_cast %19 : vector<4x16x8x8xf32> to vector<64x8x8xf32>
    %c0_15 = arith.constant 0 : index
    %c0_16 = arith.constant 0 : index
    %c0_17 = arith.constant 0 : index
    %21 = vector.load %arg6[%c0_15, %c0_16, %c0_17] : memref<4x32x8xf32, #tpu.memory_space<vmem>>, vector<4x32x8xf32>
    "tpu.trace_start"() <{level = 10 : i32, message = "hnd,hdf->hnf"}> : () -> ()
    %cst_18 = arith.constant dense<0.000000e+00> : vector<4x128x8xf32>
    %22 = tpu.matmul %4, %21, %cst_18 {dimension_numbers = #tpu.dot_dimension_numbers<[2], [1], [1], [2], [0, 0, 0, 1, 1, 2], [0], [0]>} : vector<4x128x32xf32>, vector<4x32x8xf32>, vector<4x128x8xf32> -> vector<4x128x8xf32>
    "tpu.trace_stop"() : () -> ()
    %23 = vector.shape_cast %22 : vector<4x128x8xf32> to vector<4x16x8x8xf32>
    %c0_19 = arith.constant 0 : index
    %c0_20 = arith.constant 0 : index
    %c0_21 = arith.constant 0 : index
    %24 = vector.load %arg7[%c0_19, %c0_20, %c0_21] : memref<4x8x8xf32, #tpu.memory_space<vmem>>, vector<4x8x8xf32>
    %25 = vector.shape_cast %24 : vector<4x8x8xf32> to vector<4x1x8x8xf32>
    %26 = vector.broadcast %25 : vector<4x1x8x8xf32> to vector<4x16x8x8xf32>
    %27 = arith.addf %23, %26 : vector<4x16x8x8xf32>
    %28 = vector.shape_cast %27 : vector<4x16x8x8xf32> to vector<64x8x8xf32>
    "tpu.trace_start"() <{level = 10 : i32, message = "bqd,bkd->bqk"}> : () -> ()
    %cst_22 = arith.constant dense<0.000000e+00> : vector<64x8x8xf32>
    %29 = tpu.matmul %12, %20, %cst_22 {dimension_numbers = #tpu.dot_dimension_numbers<[2], [2], [1], [1], [0, 0, 0, 1, 1, 1], [0], [0]>} : vector<64x8x8xf32>, vector<64x8x8xf32>, vector<64x8x8xf32> -> vector<64x8x8xf32>
    "tpu.trace_stop"() : () -> ()
    %cst_23 = arith.constant 0.353553385 : f32
    %30 = vector.broadcast %cst_23 : f32 to vector<64x8x8xf32>
    %31 = arith.mulf %29, %30 : vector<64x8x8xf32>
    %cst_24 = arith.constant dense<0xFF800000> : vector<64x8xf32>
    %32 = vector.multi_reduction <maximumf>, %31, %cst_24 [2] : vector<64x8x8xf32> to vector<64x8xf32>
    %33 = vector.shape_cast %32 : vector<64x8xf32> to vector<64x8x1xf32>
    %34 = vector.broadcast %33 : vector<64x8x1xf32> to vector<64x8x8xf32>
    %35 = arith.subf %31, %34 : vector<64x8x8xf32>
    %36 = math.exp %35 : vector<64x8x8xf32>
    %cst_25 = arith.constant dense<0.000000e+00> : vector<64x8xf32>
    %37 = vector.multi_reduction <add>, %36, %cst_25 [2] : vector<64x8x8xf32> to vector<64x8xf32>
    %38 = vector.shape_cast %37 : vector<64x8xf32> to vector<64x8x1xf32>
    %39 = tpu.reciprocal %38 {approx = true} : vector<64x8x1xf32> -> vector<64x8x1xf32>
    %40 = arith.mulf %38, %39 : vector<64x8x1xf32>
    %cst_26 = arith.constant 2.000000e+00 : f32
    %41 = vector.broadcast %cst_26 : f32 to vector<64x8x1xf32>
    %42 = arith.subf %41, %40 : vector<64x8x1xf32>
    %43 = arith.mulf %39, %42 : vector<64x8x1xf32>
    %44 = vector.broadcast %43 : vector<64x8x1xf32> to vector<64x8x8xf32>
    %45 = arith.mulf %36, %44 : vector<64x8x8xf32>
    %46 = vector.shape_cast %45 : vector<64x8x8xf32> to vector<4x16x8x8xf32>
    %c0_27 = arith.constant 0 : index
    %c0_28 = arith.constant 0 : index
    %c0_29 = arith.constant 0 : index
    %c0_30 = arith.constant 0 : index
    %47 = vector.load %arg16[%c0_27, %c0_28, %c0_29, %c0_30] : memref<4x16x8x8xf32, #tpu.memory_space<vmem>>, vector<4x16x8x8xf32>
    tpu.vector_store %arg16[%c0_27, %c0_28, %c0_29, %c0_30], %46 {strides = array<i32>} : memref<4x16x8x8xf32, #tpu.memory_space<vmem>>, vector<4x16x8x8xf32>,
    "tpu.trace_start"() <{level = 10 : i32, message = "bqk,bkd->bqd"}> : () -> ()
    %cst_31 = arith.constant dense<0.000000e+00> : vector<64x8x8xf32>
    %48 = tpu.matmul %45, %28, %cst_31 {dimension_numbers = #tpu.dot_dimension_numbers<[2], [1], [1], [2], [0, 0, 0, 1, 1, 2], [0], [0]>} : vector<64x8x8xf32>, vector<64x8x8xf32>, vector<64x8x8xf32> -> vector<64x8x8xf32>
    "tpu.trace_stop"() : () -> ()
    %cst_32 = arith.constant dense<0.000000e+00> : vector<64x8xf32>
    %49 = vector.multi_reduction <add>, %48, %cst_32 [1] : vector<64x8x8xf32> to vector<64x8xf32>
    %cst_33 = arith.constant 8.000000e+00 : f32
    %50 = vector.broadcast %cst_33 : f32 to vector<64x8xf32>
    %51 = arith.divf %49, %50 : vector<64x8xf32>
    %52 = vector.shape_cast %51 : vector<64x8xf32> to vector<4x16x8xf32>
    %c0_34 = arith.constant 0 : index
    %c0_35 = arith.constant 0 : index
    %c0_36 = arith.constant 0 : index
    %53 = vector.load %arg8[%c0_34, %c0_35, %c0_36] : memref<4x8x32xf32, #tpu.memory_space<vmem>>, vector<4x8x32xf32>
    "tpu.trace_start"() <{level = 10 : i32, message = "hbd,hdf->hbf"}> : () -> ()
    %cst_37 = arith.constant dense<0.000000e+00> : vector<4x16x32xf32>
    %54 = tpu.matmul %52, %53, %cst_37 {dimension_numbers = #tpu.dot_dimension_numbers<[2], [1], [1], [2], [0, 0, 0, 1, 1, 2], [0], [0]>} : vector<4x16x8xf32>, vector<4x8x32xf32>, vector<4x16x32xf32> -> vector<4x16x32xf32>
    "tpu.trace_stop"() : () -> ()
    %cst_38 = arith.constant dense<0.000000e+00> : vector<16x32xf32>
    %55 = vector.multi_reduction <add>, %54, %cst_38 [0] : vector<4x16x32xf32> to vector<16x32xf32>
    %c0_39 = arith.constant 0 : index
    %c0_40 = arith.constant 0 : index
    %56 = vector.load %arg9[%c0_39, %c0_40] : memref<1x32xf32, #tpu.memory_space<vmem>>, vector<1x32xf32>
    %57 = vector.broadcast %56 : vector<1x32xf32> to vector<16x32xf32>
    %58 = arith.addf %55, %57 : vector<16x32xf32>
    %c0_41 = arith.constant 0 : index
    %c0_42 = arith.constant 0 : index
    %59 = vector.load %arg18[%c0_41, %c0_42] : memref<16x32xf32, #tpu.memory_space<vmem>>, vector<16x32xf32>
    tpu.vector_store %arg18[%c0_41, %c0_42], %58 {strides = array<i32>} : memref<16x32xf32, #tpu.memory_space<vmem>>, vector<16x32xf32>,
    %c0_43 = arith.constant 0 : index
    %c0_44 = arith.constant 0 : index
    %60 = vector.load %arg10[%c0_43, %c0_44] : memref<32x16xf32, #tpu.memory_space<vmem>>, vector<32x16xf32>
    %cst_45 = arith.constant dense<0.000000e+00> : vector<16x16xf32>
    %61 = tpu.matmul %58, %60, %cst_45 {dimension_numbers = #tpu.dot_dimension_numbers<[1], [0], [0], [1], [0, 0, 1, 1], [], []>} : vector<16x32xf32>, vector<32x16xf32>, vector<16x16xf32> -> vector<16x16xf32>
    %c0_46 = arith.constant 0 : index
    %c0_47 = arith.constant 0 : index
    %62 = vector.load %arg11[%c0_46, %c0_47] : memref<1x16xf32, #tpu.memory_space<vmem>>, vector<1x16xf32>
    %63 = vector.broadcast %62 : vector<1x16xf32> to vector<16x16xf32>
    %64 = arith.addf %61, %63 : vector<16x16xf32>
    %65 = math.tanh %64 : vector<16x16xf32>
    %c0_48 = arith.constant 0 : index
    %c0_49 = arith.constant 0 : index
    %66 = vector.load %arg17[%c0_48, %c0_49] : memref<16x16xf32, #tpu.memory_space<vmem>>, vector<16x16xf32>
    tpu.vector_store %arg17[%c0_48, %c0_49], %65 {strides = array<i32>} : memref<16x16xf32, #tpu.memory_space<vmem>>, vector<16x16xf32>,
    %c0_50 = arith.constant 0 : index
    %c0_51 = arith.constant 0 : index
    %67 = vector.load %arg12[%c0_50, %c0_51] : memref<32x32xf32, #tpu.memory_space<vmem>>, vector<32x32xf32>
    %cst_52 = arith.constant dense<0.000000e+00> : vector<16x32xf32>
    %68 = tpu.matmul %58, %67, %cst_52 {dimension_numbers = #tpu.dot_dimension_numbers<[1], [0], [0], [1], [0, 0, 1, 1], [], []>} : vector<16x32xf32>, vector<32x32xf32>, vector<16x32xf32> -> vector<16x32xf32>
    %c0_53 = arith.constant 0 : index
    %c0_54 = arith.constant 0 : index
    %69 = vector.load %arg13[%c0_53, %c0_54] : memref<16x32xf32, #tpu.memory_space<vmem>>, vector<16x32xf32>
    %cst_55 = arith.constant dense<0.000000e+00> : vector<16x32xf32>
    %70 = tpu.matmul %65, %69, %cst_55 {dimension_numbers = #tpu.dot_dimension_numbers<[1], [0], [0], [1], [0, 0, 1, 1], [], []>} : vector<16x16xf32>, vector<16x32xf32>, vector<16x32xf32> -> vector<16x32xf32>
    %71 = arith.addf %68, %70 : vector<16x32xf32>
    %c0_56 = arith.constant 0 : index
    %c0_57 = arith.constant 0 : index
    %72 = vector.load %arg14[%c0_56, %c0_57] : memref<1x32xf32, #tpu.memory_space<vmem>>, vector<1x32xf32>
    %73 = vector.broadcast %72 : vector<1x32xf32> to vector<16x32xf32>
    %74 = arith.addf %71, %73 : vector<16x32xf32>
    %c0_58 = arith.constant 0 : index
    %c0_59 = arith.constant 0 : index
    %75 = vector.load %arg15[%c0_58, %c0_59] : memref<16x32xf32, #tpu.memory_space<vmem>>, vector<16x32xf32>
    tpu.vector_store %arg15[%c0_58, %c0_59], %74 {strides = array<i32>} : memref<16x32xf32, #tpu.memory_space<vmem>>, vector<16x32xf32>,
    return
  }
  func.func @transform_0(%arg0: i32) -> (i32, i32, i32) {
    %c0_i32 = arith.constant 0 : i32
    %c0_i32_0 = arith.constant 0 : i32
    %c0_i32_1 = arith.constant 0 : i32
    return %arg0, %c0_i32, %c0_i32_0 : i32, i32, i32
  }
  func.func @transform_1(%arg0: i32) -> (i32, i32, i32) {
    %c0_i32 = arith.constant 0 : i32
    %c0_i32_0 = arith.constant 0 : i32
    %c0_i32_1 = arith.constant 0 : i32
    %c0_i32_2 = arith.constant 0 : i32
    return %c0_i32, %c0_i32_0, %c0_i32_1 : i32, i32, i32
  }
  func.func @transform_2(%arg0: i32) -> (i32, i32, i32) {
    %c0_i32 = arith.constant 0 : i32
    %c0_i32_0 = arith.constant 0 : i32
    %c0_i32_1 = arith.constant 0 : i32
    %c0_i32_2 = arith.constant 0 : i32
    return %c0_i32, %c0_i32_0, %c0_i32_1 : i32, i32, i32
  }
  func.func @transform_3(%arg0: i32) -> (i32, i32, i32) {
    %c0_i32 = arith.constant 0 : i32
    %c0_i32_0 = arith.constant 0 : i32
    %c0_i32_1 = arith.constant 0 : i32
    %c0_i32_2 = arith.constant 0 : i32
    return %c0_i32, %c0_i32_0, %c0_i32_1 : i32, i32, i32
  }
  func.func @transform_4(%arg0: i32) -> (i32, i32, i32) {
    %c0_i32 = arith.constant 0 : i32
    %c0_i32_0 = arith.constant 0 : i32
    %c0_i32_1 = arith.constant 0 : i32
    %c0_i32_2 = arith.constant 0 : i32
    return %c0_i32, %c0_i32_0, %c0_i32_1 : i32, i32, i32
  }
  func.func @transform_5(%arg0: i32) -> (i32, i32, i32) {
    %c0_i32 = arith.constant 0 : i32
    %c0_i32_0 = arith.constant 0 : i32
    %c0_i32_1 = arith.constant 0 : i32
    %c0_i32_2 = arith.constant 0 : i32
    return %c0_i32, %c0_i32_0, %c0_i32_1 : i32, i32, i32
  }
  func.func @transform_6(%arg0: i32) -> (i32, i32, i32) {
    %c0_i32 = arith.constant 0 : i32
    %c0_i32_0 = arith.constant 0 : i32
    %c0_i32_1 = arith.constant 0 : i32
    %c0_i32_2 = arith.constant 0 : i32
    return %c0_i32, %c0_i32_0, %c0_i32_1 : i32, i32, i32
  }
  func.func @transform_7(%arg0: i32) -> (i32, i32, i32) {
    %c0_i32 = arith.constant 0 : i32
    %c0_i32_0 = arith.constant 0 : i32
    %c0_i32_1 = arith.constant 0 : i32
    %c0_i32_2 = arith.constant 0 : i32
    return %c0_i32, %c0_i32_0, %c0_i32_1 : i32, i32, i32
  }
  func.func @transform_8(%arg0: i32) -> (i32, i32) {
    %c0_i32 = arith.constant 0 : i32
    %c0_i32_0 = arith.constant 0 : i32
    %c0_i32_1 = arith.constant 0 : i32
    return %c0_i32, %c0_i32_0 : i32, i32
  }
  func.func @transform_9(%arg0: i32) -> (i32, i32) {
    %c0_i32 = arith.constant 0 : i32
    %c0_i32_0 = arith.constant 0 : i32
    %c0_i32_1 = arith.constant 0 : i32
    return %c0_i32, %c0_i32_0 : i32, i32
  }
  func.func @transform_10(%arg0: i32) -> (i32, i32) {
    %c0_i32 = arith.constant 0 : i32
    %c0_i32_0 = arith.constant 0 : i32
    %c0_i32_1 = arith.constant 0 : i32
    return %c0_i32, %c0_i32_0 : i32, i32
  }
  func.func @transform_11(%arg0: i32) -> (i32, i32) {
    %c0_i32 = arith.constant 0 : i32
    %c0_i32_0 = arith.constant 0 : i32
    %c0_i32_1 = arith.constant 0 : i32
    return %c0_i32, %c0_i32_0 : i32, i32
  }
  func.func @transform_12(%arg0: i32) -> (i32, i32) {
    %c0_i32 = arith.constant 0 : i32
    %c0_i32_0 = arith.constant 0 : i32
    %c0_i32_1 = arith.constant 0 : i32
    return %c0_i32, %c0_i32_0 : i32, i32
  }
  func.func @transform_13(%arg0: i32) -> (i32, i32) {
    %c0_i32 = arith.constant 0 : i32
    %c0_i32_0 = arith.constant 0 : i32
    %c0_i32_1 = arith.constant 0 : i32
    return %c0_i32, %c0_i32_0 : i32, i32
  }
  func.func @transform_14(%arg0: i32) -> (i32, i32) {
    %c0_i32 = arith.constant 0 : i32
    %c0_i32_0 = arith.constant 0 : i32
    return %arg0, %c0_i32 : i32, i32
  }
  func.func @transform_15(%arg0: i32) -> (i32, i32, i32, i32) {
    %c0_i32 = arith.constant 0 : i32
    %c0_i32_0 = arith.constant 0 : i32
    %c0_i32_1 = arith.constant 0 : i32
    %c0_i32_2 = arith.constant 0 : i32
    return %c0_i32, %arg0, %c0_i32_0, %c0_i32_1 : i32, i32, i32, i32
  }
  func.func @transform_16(%arg0: i32) -> (i32, i32) {
    %c0_i32 = arith.constant 0 : i32
    %c0_i32_0 = arith.constant 0 : i32
    return %arg0, %c0_i32 : i32, i32
  }
  func.func @transform_17(%arg0: i32) -> (i32, i32) {
    %c0_i32 = arith.constant 0 : i32
    %c0_i32_0 = arith.constant 0 : i32
    return %arg0, %c0_i32 : i32, i32
  }
}

</mosaic_0001>

<bundles_post_ra>
// kernel: _forward_impl.1
= control target key start
LH: loop header
LB: loop body
LE: loop exit
PB: predicated region body
PF: predicated region fallthrough
CT: control target
= control target key end

     0   :  { %s19924_s0 = inlined_call_operand.vmem [shape: f32[16,8,32], index: 0, kind: input, shape index: {}]   ;;  %s19925_s1 = inlined_call_operand.vmem [shape: f32[4,32,8], index: 1, kind: input, shape index: {}]   ;;  %s19926_s2 = inlined_call_operand.vmem [shape: f32[4,8,8], index: 2, kind: input, shape index: {}]   ;;  %s19927_s3 = inlined_call_operand.vmem [shape: f32[4,32,8], index: 3, kind: input, shape index: {}]   ;;  %s19928_s4 = inlined_call_operand.vmem [shape: f32[4,8,8], index: 4, kind: input, shape index: {}]   ;;  %s19929_s5 = inlined_call_operand.vmem [shape: f32[4,32,8], index: 5, kind: input, shape index: {}]   ;;  %s19930_s6 = inlined_call_operand.vmem [shape: f32[4,8,8], index: 6, kind: input, shape index: {}]   ;;  %s19931_s7 = inlined_call_operand.vmem [shape: f32[4,8,32], index: 7, kind: input, shape index: {}]   ;;  %s19932_s8 = inlined_call_operand.vmem [shape: f32[1,32], index: 8, kind: input, shape index: {}]   ;;  %s19933_s9 = inlined_call_operand.vmem [shape: f32[32,16], index: 9, kind: input, shape index: {}]   ;;  %s19934_s10 = inlined_call_operand.vmem [shape: f32[1,16], index: 10, kind: input, shape index: {}]   ;;  %s19935_s11 = inlined_call_operand.vmem [shape: f32[32,32], index: 11, kind: input, shape index: {}]   ;;  %s19936_s12 = inlined_call_operand.vmem [shape: f32[16,32], index: 12, kind: input, shape index: {}]   ;;  %s19937_s13 = inlined_call_operand.vmem [shape: f32[1,32], index: 13, kind: input, shape index: {}]   ;;  %s19938_s14 = inlined_call_operand.hbm [shape: f32[16,32], index: 14, kind: output, shape index: {0}]   ;;  %s19939_s15 = inlined_call_operand.vmem [shape: f32[4,16,8,8], index: 15, kind: output, shape index: {1}]   ;;  %s19940_s16 = inlined_call_operand.hbm [shape: f32[16,16], index: 16, kind: output, shape index: {2}]   ;;  %s19941_s17 = inlined_call_operand.hbm [shape: f32[16,32], index: 17, kind: output, shape index: {3}]  }
   0x1   :  { %19976 = sst [smem:[#allocation87_spill]] %s19924_s0 }
   0x2   :  { %19977 = sst [smem:[#allocation88_spill]] %s19925_s1 }
   0x3   :  { %23 = vsyncpa [#allocation3], 0  ;;  %s19978_s26 = sld [smem:[#allocation88_spill]]  ;;  %vm85_vm0 = vcmask 261120   ;;  %s19979_s20 = sld [smem:[#allocation87_spill]]  ;;  %v782_v23 = vld [vmem:[%s19927_s3] sm:$0xff] }
   0x4   :  { %v783_v24 = vld [vmem:[%s19927_s3 + $0x8] sm:$0xff]  ;;  %v786_v33 = vld [vmem:[%s19927_s3 + $0x20] sm:$0xff] }
   0x5   :  { %v16007_v30 = vpack.c.bf16 %v783_v24, %v782_v23  ;;  %v787_v34 = vld [vmem:[%s19927_s3 + $0x28] sm:$0xff] }
   0x9   :  { %v69_v0 = vld [vmem:[%s19978_s26] sm:$0xff]  ;;  %v70_v1 = vld [vmem:[%s19978_s26 + $0x8] sm:$0xff]  ;;  %v71_v2 = vld [vmem:[%s19978_s26 + $0x10] sm:$0xff] }
   0xa   :  { %v15975_v3 = vpack.c.bf16 %v70_v1, %v69_v0  ;;  %v72_v4 = vld [vmem:[%s19978_s26 + $0x18] sm:$0xff]  ;;  %v16542_v5 = vld [vmem:[%s19979_s20] sm:$0xff]  ;;  %v74_v8 = vld [vmem:[%s19978_s26 + $0x28] sm:$0xff] }
   0xb   :  { %v15979_v6 = vpack.c.bf16 %v72_v4, %v71_v2  ;;  %14910 = vmatprep.mubr.msk.f32.mxu0 %vm85_vm0, %v16542_v5  ;;  %14942 = vmatprep.mubr.msk.f32.mxu1 %vm85_vm0, %v16542_v5  ;;  %v73_v7 = vld [vmem:[%s19978_s26 + $0x20] sm:$0xff]  ;;  %v16560_v10 = vld [vmem:[%s19979_s20 + $0x8] sm:$0xff]  ;;  %v16565_v11 = vld [vmem:[%s19979_s20 + $0x10] sm:$0xff] }
   0xc   :  { %15976 = vmatprep.subr.bf16.mxu0 %v15975_v3  ;;  %v77_v9 = vld [vmem:[%s19978_s26 + $0x40] sm:$0xff]  ;;  %v15983_v12 = vpack.c.bf16 %v74_v8, %v73_v7  ;;  %v78_v13 = vld [vmem:[%s19978_s26 + $0x48] sm:$0xff]  ;;  %v75_v15 = vld [vmem:[%s19978_s26 + $0x30] sm:$0xff] }
   0xd   :  { %15978 = vmatpush3.bf16.msra.mxu0 %v15975_v3  ;;  %v15991_v14 = vpack.c.bf16 %v78_v13, %v77_v9  ;;  %v76_v16 = vld [vmem:[%s19978_s26 + $0x38] sm:$0xff]  ;;  %v79_v17 = vld [vmem:[%s19978_s26 + $0x50] sm:$0xff]  ;;  %v81_v20 = vld [vmem:[%s19978_s26 + $0x60] sm:$0xff] }
   0xe   :  { %15980 = vmatprep.subr.bf16.mxu0 %v15979_v6  ;;  %15984 = vmatprep.subr.bf16.mxu1 %v15983_v12  ;;  %v15987_v18 = vpack.c.bf16 %v76_v16, %v75_v15  ;;  %v80_v19 = vld [vmem:[%s19978_s26 + $0x58] sm:$0xff]  ;;  %v82_v21 = vld [vmem:[%s19978_s26 + $0x68] sm:$0xff]  ;;  %v83_v27 = vld [vmem:[%s19978_s26 + $0x70] sm:$0xff] }
   0xf   :  { %15986 = vmatpush3.bf16.msra.mxu1 %v15983_v12  ;;  %v15995_v22 = vpack.c.bf16 %v80_v19, %v79_v17  ;;  %v15999_v25 = vpack.c.bf16 %v82_v21, %v81_v20  ;;  %v16601_v26 = vld [vmem:[%s19979_s20 + $0x18] sm:$0xff]  ;;  %v16612_v29 = vld [vmem:[%s19979_s20 + $0x20] sm:$0xff]  ;;  %v16621_v32 = vld [vmem:[%s19979_s20 + $0x28] sm:$0xff] }
  0x10   :  { %15988 = vmatprep.subr.bf16.mxu1 %v15987_v18  ;;  %v84_v28 = vld [vmem:[%s19978_s26 + $0x78] sm:$0xff]  ;;  %v16632_v35 = vld [vmem:[%s19979_s20 + $0x30] sm:$0xff] }
  0x11   :  { %15982 = vmatpush3.bf16.msra.mxu0 %v15979_v6  ;;  %v16003_v31 = vpack.c.bf16 %v84_v28, %v83_v27 }
  0x12   :  { %15992 = vmatprep.subr.bf16.mxu0 %v15991_v14 }
  0x13   :  { %15990 = vmatpush3.bf16.msra.mxu1 %v15987_v18 }
  0x14   :  { %14911 = vmatmul.mubr.msk.f32.vlgmr.msra.gmra.mrb[0].mxu0 %vm85_vm0, %v16560_v10  ;;  %16000 = vmatprep.subr.bf16.mxu1 %v15999_v25 }
  0x15   :  { %14913 = vmatprep.mubr.msk.f32.mxu0 %vm85_vm0, %v16565_v11  ;;  %15994 = vmatpush3.bf16.msra.mxu0 %v15991_v14 }
  0x16   :  { %15996 = vmatprep.subr.bf16.mxu0 %v15995_v22  ;;  %14943 = vmatmul.mubr.msk.f32.vlgmr.msra.gmra.mrb[0].mxu1 %vm85_vm0, %v16560_v10 }
  0x18   :  { %14914 = vmatmul.mubr.msk.f32.gmra.mrb[2].mxu0 %vm85_vm0, %v16601_v26 }
  0x19   :  { %14916 = vmatprep.mubr.msk.f32.mxu0 %vm85_vm0, %v16612_v29  ;;  %15998 = vmatpush3.bf16.msra.mxu0 %v15995_v22 }
  0x1a   :  { %16008 = vmatprep.subr.bf16.mxu0 %v16007_v30 }
  0x1b   :  { %24 = vsyncpa [#allocation5], 0  ;;  %14945 = vmatprep.mubr.msk.f32.mxu1 %vm85_vm0, %v16565_v11  ;;  %16002 = vmatpush3.bf16.msra.mxu1 %v15999_v25  ;;  %v16015_v36 = vpack.c.bf16 %v787_v34, %v786_v33  ;;  %v16645_v37 = vld [vmem:[%s19979_s20 + $0x38] sm:$0xff]  ;;  %v16650_v38 = vld [vmem:[%s19979_s20 + $0x40] sm:$0xff]  ;;  %v19944_v28 = vmov 0.0   ;;  %vm16431_vm1 = vmmov 0  }
  0x1c   :  { %14917 = vmatmul.mubr.msk.f32.gmra.mrb[4].mxu0 %vm85_vm0, %v16621_v32  ;;  %16004 = vmatprep.subr.bf16.mxu1 %v16003_v31  ;;  %v16663_v39 = vld [vmem:[%s19979_s20 + $0x48] sm:$0xff]  ;;  %v16668_v40 = vld [vmem:[%s19979_s20 + $0x50] sm:$0xff]  ;;  %v16681_v41 = vld [vmem:[%s19979_s20 + $0x58] sm:$0xff]  ;;  %vm2110_vm2 = vcmask 64512   ;;  %vm13204_vm3 = vcmask 1041409   ;;  %vm13206_vm4 = vcmask 1042434  }
  0x1d   :  { %14919 = vmatprep.mubr.msk.f32.mxu0 %vm85_vm0, %v16632_v35  ;;  %14946 = vmatmul.mubr.msk.f32.gmra.mrb[2].mxu1 %vm85_vm0, %v16601_v26  ;;  %v16686_v42 = vld [vmem:[%s19979_s20 + $0x60] sm:$0xff]  ;;  %v16699_v43 = vld [vmem:[%s19979_s20 + $0x68] sm:$0xff]  ;;  %v16704_v44 = vld [vmem:[%s19979_s20 + $0x70] sm:$0xff]  ;;  %vm13208_vm5 = vcmask 1043459   ;;  %vm13210_vm6 = vcmask 1044484   ;;  %vm13212_vm7 = vcmask 1045509  }
  0x1e   :  { %14948 = vmatprep.mubr.msk.f32.mxu1 %vm85_vm0, %v16612_v29  ;;  %v16717_v45 = vld [vmem:[%s19979_s20 + $0x78] sm:$0xff]  ;;  %v784_v46 = vld [vmem:[%s19927_s3 + $0x10] sm:$0xff]  ;;  %v790_v49 = vld [vmem:[%s19927_s3 + $0x40] sm:$0xff]  ;;  %vm13214_vm8 = vcmask 1046534   ;;  %vm13216_vm9 = vcmask 1047559   ;;  %vm13750_vm10 = vcmask 130048  }
  0x1f   :  { %16006 = vmatpush3.bf16.msra.mxu1 %v16003_v31  ;;  %v785_v47 = vld [vmem:[%s19927_s3 + $0x18] sm:$0xff]  ;;  %v791_v50 = vld [vmem:[%s19927_s3 + $0x48] sm:$0xff]  ;;  %v788_v51 = vld [vmem:[%s19927_s3 + $0x30] sm:$0xff] }
  0x20   :  { %14920 = vmatmul.mubr.msk.f32.gmra.mrb[6].mxu0 %vm85_vm0, %v16645_v37  ;;  %16016 = vmatprep.subr.bf16.mxu1 %v16015_v36  ;;  %v16011_v48 = vpack.c.bf16 %v785_v47, %v784_v46  ;;  %v789_v52 = vld [vmem:[%s19927_s3 + $0x38] sm:$0xff]  ;;  %v16023_v53 = vpack.c.bf16 %v791_v50, %v790_v49  ;;  %v794_v55 = vld [vmem:[%s19927_s3 + $0x60] sm:$0xff]  ;;  %v795_v56 = vld [vmem:[%s19927_s3 + $0x68] sm:$0xff] }
  0x21   :  { %14922 = vmatprep.mubr.msk.f32.mxu0 %vm85_vm0, %v16650_v38  ;;  %14949 = vmatmul.mubr.msk.f32.gmra.mrb[4].mxu1 %vm85_vm0, %v16621_v32  ;;  %v16019_v54 = vpack.c.bf16 %v789_v52, %v788_v51  ;;  %v16031_v57 = vpack.c.bf16 %v795_v56, %v794_v55  ;;  %v792_v58 = vld [vmem:[%s19927_s3 + $0x50] sm:$0xff]  ;;  %v793_v59 = vld [vmem:[%s19927_s3 + $0x58] sm:$0xff]  ;;  %v1446_v61 = vld [vmem:[%s19929_s5] sm:$0xff] }
  0x22   :  { %14951 = vmatprep.mubr.msk.f32.mxu1 %vm85_vm0, %v16632_v35  ;;  %v16027_v60 = vpack.c.bf16 %v793_v59, %v792_v58  ;;  %v1447_v62 = vld [vmem:[%s19929_s5 + $0x8] sm:$0xff]  ;;  %v796_v63 = vld [vmem:[%s19927_s3 + $0x70] sm:$0xff]  ;;  %v797_v0 = vld [vmem:[%s19927_s3 + $0x78] sm:$0xff] }
  0x23   :  { %v16039_v1 = vpack.c.bf16 %v1447_v62, %v1446_v61  ;;  %v16035_v2 = vpack.c.bf16 %v797_v0, %v796_v63  ;;  %v1450_v3 = vld [vmem:[%s19929_s5 + $0x20] sm:$0xff]  ;;  %v1451_v4 = vld [vmem:[%s19929_s5 + $0x28] sm:$0xff]  ;;  %v1448_v7 = vld [vmem:[%s19929_s5 + $0x10] sm:$0xff] }
  0x24   :  { %14923 = vmatmul.mubr.msk.f32.gmra.mrb[8].mxu0 %vm85_vm0, %v16663_v39  ;;  %v16047_v6 = vpack.c.bf16 %v1451_v4, %v1450_v3  ;;  %v1449_v8 = vld [vmem:[%s19929_s5 + $0x18] sm:$0xff]  ;;  %v1452_v12 = vld [vmem:[%s19929_s5 + $0x30] sm:$0xff]  ;;  %v1458_v15 = vld [vmem:[%s19929_s5 + $0x60] sm:$0xff] }
  0x25   :  { %14925 = vmatprep.mubr.msk.f32.mxu0 %vm85_vm0, %v16668_v40  ;;  %14952 = vmatmul.mubr.msk.f32.gmra.mrb[6].mxu1 %vm85_vm0, %v16645_v37  ;;  %v16043_v9 = vpack.c.bf16 %v1449_v8, %v1448_v7  ;;  %v1453_v13 = vld [vmem:[%s19929_s5 + $0x38] sm:$0xff]  ;;  %v1459_v16 = vld [vmem:[%s19929_s5 + $0x68] sm:$0xff]  ;;  %v1454_v17 = vld [vmem:[%s19929_s5 + $0x40] sm:$0xff] }
  0x26   :  { %14954 = vmatprep.mubr.msk.f32.mxu1 %vm85_vm0, %v16650_v38  ;;  %v16051_v14 = vpack.c.bf16 %v1453_v13, %v1452_v12  ;;  %v16063_v18 = vpack.c.bf16 %v1459_v16, %v1458_v15  ;;  %v1455_v19 = vld [vmem:[%s19929_s5 + $0x48] sm:$0xff]  ;;  %v1456_v21 = vld [vmem:[%s19929_s5 + $0x50] sm:$0xff]  ;;  %v1457_v22 = vld [vmem:[%s19929_s5 + $0x58] sm:$0xff] }
  0x27   :  { %v16055_v20 = vpack.c.bf16 %v1455_v19, %v1454_v17  ;;  %v16059_v23 = vpack.c.bf16 %v1457_v22, %v1456_v21  ;;  %v1460_v24 = vld [vmem:[%s19929_s5 + $0x70] sm:$0xff]  ;;  %v1461_v25 = vld [vmem:[%s19929_s5 + $0x78] sm:$0xff] }
  0x28   :  { %14926 = vmatmul.mubr.msk.f32.gmra.mrb[10].mxu0 %vm85_vm0, %v16681_v41  ;;  %v16067_v27 = vpack.c.bf16 %v1461_v25, %v1460_v24  ;;  %v17264_v24 = vld [vmem:[%s19928_s4] sm:$0xff] }
  0x29   :  { %14928 = vmatprep.mubr.msk.f32.mxu0 %vm85_vm0, %v16686_v42  ;;  %14955 = vmatmul.mubr.msk.f32.gmra.mrb[8].mxu1 %vm85_vm0, %v16663_v39 }
  0x2a   :  { %14957 = vmatprep.mubr.msk.f32.mxu1 %vm85_vm0, %v16668_v40 }
  0x2c   :  { %14929 = vmatmul.mubr.msk.f32.gmra.mrb[12].mxu0 %vm85_vm0, %v16699_v43 }
  0x2d   :  { %14931 = vmatprep.mubr.msk.f32.mxu0 %vm85_vm0, %v16704_v44  ;;  %14958 = vmatmul.mubr.msk.f32.gmra.mrb[10].mxu1 %vm85_vm0, %v16681_v41 }
  0x2e   :  { %14960 = vmatprep.mubr.msk.f32.mxu1 %vm85_vm0, %v16686_v42 }
  0x30   :  { %14932 = vmatmul.mubr.msk.f32.gmra.mrb[14].mxu0 %vm85_vm0, %v16717_v45 }
  0x31   :  { %14974 = vmatprep.mubr.msk.f32.mxu0 %vm85_vm0, %v16542_v5  ;;  %14961 = vmatmul.mubr.msk.f32.gmra.mrb[12].mxu1 %vm85_vm0, %v16699_v43 }
  0x32   :  { %14963 = vmatprep.mubr.msk.f32.mxu1 %vm85_vm0, %v16704_v44 }
  0x34   :  { %14975 = vmatmul.mubr.msk.f32.vlgmr.msra.gmra.mrb[16].mxu0 %vm85_vm0, %v16560_v10 }
  0x35   :  { %14977 = vmatprep.mubr.msk.f32.mxu0 %vm85_vm0, %v16565_v11  ;;  %16010 = vmatpush3.bf16.msra.mxu0 %v16007_v30 }
  0x36   :  { %14964 = vmatmul.mubr.msk.f32.gmra.mrb[14].mxu1 %vm85_vm0, %v16717_v45  ;;  %16012 = vmatprep.subr.bf16.mxu0 %v16011_v48 }
  0x37   :  { %15006 = vmatprep.mubr.msk.f32.mxu1 %vm85_vm0, %v16542_v5 }
  0x38   :  { %14978 = vmatmul.mubr.msk.f32.gmra.mrb[18].mxu0 %vm85_vm0, %v16601_v26 }
  0x39   :  { %14980 = vmatprep.mubr.msk.f32.mxu0 %vm85_vm0, %v16612_v29  ;;  %16014 = vmatpush3.bf16.msra.mxu0 %v16011_v48 }
  0x3a   :  { %15007 = vmatmul.mubr.msk.f32.vlgmr.msra.gmra.mrb[16].mxu1 %vm85_vm0, %v16560_v10  ;;  %16024 = vmatprep.subr.bf16.mxu0 %v16023_v53 }
  0x3b   :  { %15009 = vmatprep.mubr.msk.f32.mxu1 %vm85_vm0, %v16565_v11  ;;  %16018 = vmatpush3.bf16.msra.mxu1 %v16015_v36 }
  0x3c   :  { %14981 = vmatmul.mubr.msk.f32.gmra.mrb[20].mxu0 %vm85_vm0, %v16621_v32  ;;  %16020 = vmatprep.subr.bf16.mxu1 %v16019_v54 }
  0x3d   :  { %14983 = vmatprep.mubr.msk.f32.mxu0 %vm85_vm0, %v16632_v35 }
  0x3e   :  { %15010 = vmatmul.mubr.msk.f32.gmra.mrb[18].mxu1 %vm85_vm0, %v16601_v26 }
  0x3f   :  { %15012 = vmatprep.mubr.msk.f32.mxu1 %vm85_vm0, %v16612_v29  ;;  %16022 = vmatpush3.bf16.msra.mxu1 %v16019_v54 }
  0x40   :  { %14984 = vmatmul.mubr.msk.f32.gmra.mrb[22].mxu0 %vm85_vm0, %v16645_v37  ;;  %16032 = vmatprep.subr.bf16.mxu1 %v16031_v57 }
  0x41   :  { %14986 = vmatprep.mubr.msk.f32.mxu0 %vm85_vm0, %v16650_v38 }
  0x42   :  { %15013 = vmatmul.mubr.msk.f32.gmra.mrb[20].mxu1 %vm85_vm0, %v16621_v32 }
  0x43   :  { %15015 = vmatprep.mubr.msk.f32.mxu1 %vm85_vm0, %v16632_v35 }
  0x44   :  { %14987 = vmatmul.mubr.msk.f32.gmra.mrb[24].mxu0 %vm85_vm0, %v16663_v39 }
  0x45   :  { %14989 = vmatprep.mubr.msk.f32.mxu0 %vm85_vm0, %v16668_v40 }
  0x46   :  { %15016 = vmatmul.mubr.msk.f32.gmra.mrb[22].mxu1 %vm85_vm0, %v16645_v37 }
  0x47   :  { %15018 = vmatprep.mubr.msk.f32.mxu1 %vm85_vm0, %v16650_v38 }
  0x48   :  { %14990 = vmatmul.mubr.msk.f32.gmra.mrb[26].mxu0 %vm85_vm0, %v16681_v41 }
  0x49   :  { %14992 = vmatprep.mubr.msk.f32.mxu0 %vm85_vm0, %v16686_v42 }
  0x4a   :  { %15019 = vmatmul.mubr.msk.f32.gmra.mrb[24].mxu1 %vm85_vm0, %v16663_v39 }
  0x4b   :  { %15021 = vmatprep.mubr.msk.f32.mxu1 %vm85_vm0, %v16668_v40 }
  0x4c   :  { %14993 = vmatmul.mubr.msk.f32.gmra.mrb[28].mxu0 %vm85_vm0, %v16699_v43 }
  0x4d   :  { %14995 = vmatprep.mubr.msk.f32.mxu0 %vm85_vm0, %v16704_v44 }
  0x4e   :  { %15022 = vmatmul.mubr.msk.f32.gmra.mrb[26].mxu1 %vm85_vm0, %v16681_v41 }
  0x4f   :  { %15024 = vmatprep.mubr.msk.f32.mxu1 %vm85_vm0, %v16686_v42 }
  0x50   :  { %14996 = vmatmul.mubr.msk.f32.gmra.mrb[30].mxu0 %vm85_vm0, %v16717_v45 }
  0x51   :  { %15038 = vmatprep.mubr.msk.f32.mxu0 %vm85_vm0, %v16542_v5 }
  0x52   :  { %15025 = vmatmul.mubr.msk.f32.gmra.mrb[28].mxu1 %vm85_vm0, %v16699_v43 }
  0x53   :  { %15027 = vmatprep.mubr.msk.f32.mxu1 %vm85_vm0, %v16704_v44 }
  0x54   :  { %15039 = vmatmul.mubr.msk.f32.vlgmr.msra.gmra.mrb[32].mxu0 %vm85_vm0, %v16560_v10 }
  0x55   :  { %15041 = vmatprep.mubr.msk.f32.mxu0 %vm85_vm0, %v16565_v11  ;;  %16026 = vmatpush3.bf16.msra.mxu0 %v16023_v53 }
  0x56   :  { %15028 = vmatmul.mubr.msk.f32.gmra.mrb[30].mxu1 %vm85_vm0, %v16717_v45  ;;  %16028 = vmatprep.subr.bf16.mxu0 %v16027_v60 }
  0x57   :  { %15070 = vmatprep.mubr.msk.f32.mxu1 %vm85_vm0, %v16542_v5 }
  0x58   :  { %15042 = vmatmul.mubr.msk.f32.gmra.mrb[34].mxu0 %vm85_vm0, %v16601_v26 }
  0x59   :  { %15044 = vmatprep.mubr.msk.f32.mxu0 %vm85_vm0, %v16612_v29  ;;  %16030 = vmatpush3.bf16.msra.mxu0 %v16027_v60 }
  0x5a   :  { %15071 = vmatmul.mubr.msk.f32.vlgmr.msra.gmra.mrb[32].mxu1 %vm85_vm0, %v16560_v10  ;;  %16040 = vmatprep.subr.bf16.mxu0 %v16039_v1 }
  0x5b   :  { %15073 = vmatprep.mubr.msk.f32.mxu1 %vm85_vm0, %v16565_v11  ;;  %16034 = vmatpush3.bf16.msra.mxu1 %v16031_v57 }
  0x5c   :  { %15045 = vmatmul.mubr.msk.f32.gmra.mrb[36].mxu0 %vm85_vm0, %v16621_v32  ;;  %16036 = vmatprep.subr.bf16.mxu1 %v16035_v2 }
  0x5d   :  { %15047 = vmatprep.mubr.msk.f32.mxu0 %vm85_vm0, %v16632_v35 }
  0x5e   :  { %15074 = vmatmul.mubr.msk.f32.gmra.mrb[34].mxu1 %vm85_vm0, %v16601_v26 }
  0x5f   :  { %15076 = vmatprep.mubr.msk.f32.mxu1 %vm85_vm0, %v16612_v29  ;;  %16038 = vmatpush3.bf16.msra.mxu1 %v16035_v2 }
  0x60   :  { %15048 = vmatmul.mubr.msk.f32.gmra.mrb[38].mxu0 %vm85_vm0, %v16645_v37  ;;  %16048 = vmatprep.subr.bf16.mxu1 %v16047_v6 }
  0x61   :  { %15050 = vmatprep.mubr.msk.f32.mxu0 %vm85_vm0, %v16650_v38 }
  0x62   :  { %15077 = vmatmul.mubr.msk.f32.gmra.mrb[36].mxu1 %vm85_vm0, %v16621_v32 }
  0x63   :  { %15079 = vmatprep.mubr.msk.f32.mxu1 %vm85_vm0, %v16632_v35 }
  0x64   :  { %15051 = vmatmul.mubr.msk.f32.gmra.mrb[40].mxu0 %vm85_vm0, %v16663_v39 }
  0x65   :  { %15053 = vmatprep.mubr.msk.f32.mxu0 %vm85_vm0, %v16668_v40 }
  0x66   :  { %15080 = vmatmul.mubr.msk.f32.gmra.mrb[38].mxu1 %vm85_vm0, %v16645_v37 }
  0x67   :  { %15082 = vmatprep.mubr.msk.f32.mxu1 %vm85_vm0, %v16650_v38 }
  0x68   :  { %15054 = vmatmul.mubr.msk.f32.gmra.mrb[42].mxu0 %vm85_vm0, %v16681_v41 }
  0x69   :  { %15056 = vmatprep.mubr.msk.f32.mxu0 %vm85_vm0, %v16686_v42 }
  0x6a   :  { %15083 = vmatmul.mubr.msk.f32.gmra.mrb[40].mxu1 %vm85_vm0, %v16663_v39 }
  0x6b   :  { %15085 = vmatprep.mubr.msk.f32.mxu1 %vm85_vm0, %v16668_v40 }
  0x6c   :  { %15057 = vmatmul.mubr.msk.f32.gmra.mrb[44].mxu0 %vm85_vm0, %v16699_v43 }
  0x6d   :  { %15059 = vmatprep.mubr.msk.f32.mxu0 %vm85_vm0, %v16704_v44 }
  0x6e   :  { %15086 = vmatmul.mubr.msk.f32.gmra.mrb[42].mxu1 %vm85_vm0, %v16681_v41 }
  0x6f   :  { %15088 = vmatprep.mubr.msk.f32.mxu1 %vm85_vm0, %v16686_v42 }
  0x70   :  { %15060 = vmatmul.mubr.msk.f32.gmra.mrb[46].mxu0 %vm85_vm0, %v16717_v45 }
  0x71   :  { %15102 = vmatprep.mubr.msk.f32.mxu0 %vm85_vm0, %v16542_v5 }
  0x72   :  { %15089 = vmatmul.mubr.msk.f32.gmra.mrb[44].mxu1 %vm85_vm0, %v16699_v43 }
  0x73   :  { %15091 = vmatprep.mubr.msk.f32.mxu1 %vm85_vm0, %v16704_v44 }
  0x74   :  { %15103 = vmatmul.mubr.msk.f32.vlgmr.msra.gmra.mrb[48].mxu0 %vm85_vm0, %v16560_v10 }
  0x75   :  { %15105 = vmatprep.mubr.msk.f32.mxu0 %vm85_vm0, %v16565_v11  ;;  %16042 = vmatpush3.bf16.msra.mxu0 %v16039_v1 }
  0x76   :  { %15092 = vmatmul.mubr.msk.f32.gmra.mrb[46].mxu1 %vm85_vm0, %v16717_v45  ;;  %16044 = vmatprep.subr.bf16.mxu0 %v16043_v9 }
  0x77   :  { %15134 = vmatprep.mubr.msk.f32.mxu1 %vm85_vm0, %v16542_v5 }
  0x78   :  { %15106 = vmatmul.mubr.msk.f32.gmra.mrb[50].mxu0 %vm85_vm0, %v16601_v26 }
  0x79   :  { %15108 = vmatprep.mubr.msk.f32.mxu0 %vm85_vm0, %v16612_v29  ;;  %16046 = vmatpush3.bf16.msra.mxu0 %v16043_v9 }
  0x7a   :  { %15135 = vmatmul.mubr.msk.f32.vlgmr.msra.gmra.mrb[48].mxu1 %vm85_vm0, %v16560_v10  ;;  %16056 = vmatprep.subr.bf16.mxu0 %v16055_v20 }
  0x7b   :  { %15137 = vmatprep.mubr.msk.f32.mxu1 %vm85_vm0, %v16565_v11  ;;  %16050 = vmatpush3.bf16.msra.mxu1 %v16047_v6 }
  0x7c   :  { %15109 = vmatmul.mubr.msk.f32.gmra.mrb[52].mxu0 %vm85_vm0, %v16621_v32  ;;  %16052 = vmatprep.subr.bf16.mxu1 %v16051_v14 }
  0x7d   :  { %15111 = vmatprep.mubr.msk.f32.mxu0 %vm85_vm0, %v16632_v35 }
  0x7e   :  { %15138 = vmatmul.mubr.msk.f32.gmra.mrb[50].mxu1 %vm85_vm0, %v16601_v26 }
  0x7f   :  { %15140 = vmatprep.mubr.msk.f32.mxu1 %vm85_vm0, %v16612_v29  ;;  %16054 = vmatpush3.bf16.msra.mxu1 %v16051_v14 }
  0x80   :  { %15112 = vmatmul.mubr.msk.f32.gmra.mrb[54].mxu0 %vm85_vm0, %v16645_v37  ;;  %16064 = vmatprep.subr.bf16.mxu1 %v16063_v18 }
  0x81   :  { %15114 = vmatprep.mubr.msk.f32.mxu0 %vm85_vm0, %v16650_v38 }
  0x82   :  { %15141 = vmatmul.mubr.msk.f32.gmra.mrb[52].mxu1 %vm85_vm0, %v16621_v32 }
  0x83   :  { %15143 = vmatprep.mubr.msk.f32.mxu1 %vm85_vm0, %v16632_v35 }
  0x84   :  { %15115 = vmatmul.mubr.msk.f32.gmra.mrb[56].mxu0 %vm85_vm0, %v16663_v39 }
  0x85   :  { %15117 = vmatprep.mubr.msk.f32.mxu0 %vm85_vm0, %v16668_v40 }
  0x86   :  { %15144 = vmatmul.mubr.msk.f32.gmra.mrb[54].mxu1 %vm85_vm0, %v16645_v37 }
  0x87   :  { %15146 = vmatprep.mubr.msk.f32.mxu1 %vm85_vm0, %v16650_v38 }
  0x88   :  { %15118 = vmatmul.mubr.msk.f32.gmra.mrb[58].mxu0 %vm85_vm0, %v16681_v41 }
  0x89   :  { %15120 = vmatprep.mubr.msk.f32.mxu0 %vm85_vm0, %v16686_v42 }
  0x8a   :  { %15147 = vmatmul.mubr.msk.f32.gmra.mrb[56].mxu1 %vm85_vm0, %v16663_v39 }
  0x8b   :  { %15149 = vmatprep.mubr.msk.f32.mxu1 %vm85_vm0, %v16668_v40 }
  0x8c   :  { %15121 = vmatmul.mubr.msk.f32.gmra.mrb[60].mxu0 %vm85_vm0, %v16699_v43 }
  0x8d   :  { %15123 = vmatprep.mubr.msk.f32.mxu0 %vm85_vm0, %v16704_v44 }
  0x8e   :  { %15150 = vmatmul.mubr.msk.f32.gmra.mrb[58].mxu1 %vm85_vm0, %v16681_v41 }
  0x8f   :  { %15152 = vmatprep.mubr.msk.f32.mxu1 %vm85_vm0, %v16686_v42 }
  0x90   :  { %15124 = vmatmul.mubr.msk.f32.gmra.mrb[62].mxu0 %vm85_vm0, %v16717_v45 }
  0x91   :  { %15166 = vmatprep.mubr.msk.f32.mxu0 %vm85_vm0, %v16542_v5 }
  0x92   :  { %15153 = vmatmul.mubr.msk.f32.gmra.mrb[60].mxu1 %vm85_vm0, %v16699_v43 }
  0x93   :  { %15155 = vmatprep.mubr.msk.f32.mxu1 %vm85_vm0, %v16704_v44 }
  0x94   :  { %15167 = vmatmul.mubr.msk.f32.vlgmr.msra.gmra.mrb[64].mxu0 %vm85_vm0, %v16560_v10 }
  0x95   :  { %15169 = vmatprep.mubr.msk.f32.mxu0 %vm85_vm0, %v16565_v11  ;;  %16058 = vmatpush3.bf16.msra.mxu0 %v16055_v20 }
  0x96   :  { %15156 = vmatmul.mubr.msk.f32.gmra.mrb[62].mxu1 %vm85_vm0, %v16717_v45  ;;  %16060 = vmatprep.subr.bf16.mxu0 %v16059_v23 }
  0x97   :  { %15198 = vmatprep.mubr.msk.f32.mxu1 %vm85_vm0, %v16542_v5 }
  0x98   :  { %15170 = vmatmul.mubr.msk.f32.gmra.mrb[66].mxu0 %vm85_vm0, %v16601_v26 }
  0x99   :  { %15172 = vmatprep.mubr.msk.f32.mxu0 %vm85_vm0, %v16612_v29  ;;  %16062 = vmatpush3.bf16.msra.mxu0 %v16059_v23 }
  0x9a   :  { %15199 = vmatmul.mubr.msk.f32.vlgmr.msra.gmra.mrb[64].mxu1 %vm85_vm0, %v16560_v10  ;;  %15286 = vmatprep.subr.mxu0 %v19944_v28 }
  0x9b   :  { %15201 = vmatprep.mubr.msk.f32.mxu1 %vm85_vm0, %v16565_v11  ;;  %16066 = vmatpush3.bf16.msra.mxu1 %v16063_v18 }
  0x9c   :  { %15173 = vmatmul.mubr.msk.f32.gmra.mrb[68].mxu0 %vm85_vm0, %v16621_v32  ;;  %16068 = vmatprep.subr.bf16.mxu1 %v16067_v27 }
  0x9d   :  { %15175 = vmatprep.mubr.msk.f32.mxu0 %vm85_vm0, %v16632_v35 }
  0x9e   :  { %15202 = vmatmul.mubr.msk.f32.gmra.mrb[66].mxu1 %vm85_vm0, %v16601_v26 }
  0x9f   :  { %15204 = vmatprep.mubr.msk.f32.mxu1 %vm85_vm0, %v16612_v29  ;;  %16070 = vmatpush3.bf16.msra.mxu1 %v16067_v27 }
  0xa0   :  { %15176 = vmatmul.mubr.msk.f32.gmra.mrb[70].mxu0 %vm85_vm0, %v16645_v37  ;;  %15291 = vmatprep.subr.mxu1 %v19944_v28 }
  0xa1   :  { %15178 = vmatprep.mubr.msk.f32.mxu0 %vm85_vm0, %v16650_v38 }
  0xa2   :  { %15205 = vmatmul.mubr.msk.f32.gmra.mrb[68].mxu1 %vm85_vm0, %v16621_v32 }
  0xa3   :  { %15207 = vmatprep.mubr.msk.f32.mxu1 %vm85_vm0, %v16632_v35 }
  0xa4   :  { %15179 = vmatmul.mubr.msk.f32.gmra.mrb[72].mxu0 %vm85_vm0, %v16663_v39 }
  0xa5   :  { %15181 = vmatprep.mubr.msk.f32.mxu0 %vm85_vm0, %v16668_v40 }
  0xa6   :  { %15208 = vmatmul.mubr.msk.f32.gmra.mrb[70].mxu1 %vm85_vm0, %v16645_v37 }
  0xa7   :  { %15210 = vmatprep.mubr.msk.f32.mxu1 %vm85_vm0, %v16650_v38 }
  0xa8   :  { %15182 = vmatmul.mubr.msk.f32.gmra.mrb[74].mxu0 %vm85_vm0, %v16681_v41 }
  0xa9   :  { %15184 = vmatprep.mubr.msk.f32.mxu0 %vm85_vm0, %v16686_v42 }
  0xaa   :  { %15211 = vmatmul.mubr.msk.f32.gmra.mrb[72].mxu1 %vm85_vm0, %v16663_v39 }
  0xab   :  { %15213 = vmatprep.mubr.msk.f32.mxu1 %vm85_vm0, %v16668_v40 }
  0xac   :  { %15185 = vmatmul.mubr.msk.f32.gmra.mrb[76].mxu0 %vm85_vm0, %v16699_v43 }
  0xad   :  { %15187 = vmatprep.mubr.msk.f32.mxu0 %vm85_vm0, %v16704_v44 }
  0xae   :  { %15214 = vmatmul.mubr.msk.f32.gmra.mrb[74].mxu1 %vm85_vm0, %v16681_v41 }
  0xaf   :  { %15216 = vmatprep.mubr.msk.f32.mxu1 %vm85_vm0, %v16686_v42 }
  0xb0   :  { %15188 = vmatmul.mubr.msk.f32.gmra.mrb[78].mxu0 %vm85_vm0, %v16717_v45 }
  0xb1   :  { %15230 = vmatprep.mubr.msk.f32.mxu0 %vm85_vm0, %v16542_v5 }
  0xb2   :  { %15217 = vmatmul.mubr.msk.f32.gmra.mrb[76].mxu1 %vm85_vm0, %v16699_v43 }
  0xb3   :  { %15219 = vmatprep.mubr.msk.f32.mxu1 %vm85_vm0, %v16704_v44 }
  0xb4   :  { %15231 = vmatmul.mubr.msk.f32.vlgmr.msra.gmra.mrb[80].mxu0 %vm85_vm0, %v16560_v10 }
  0xb5   :  { %15233 = vmatprep.mubr.msk.f32.mxu0 %vm85_vm0, %v16565_v11 }
  0xb6   :  { %15220 = vmatmul.mubr.msk.f32.gmra.mrb[78].mxu1 %vm85_vm0, %v16717_v45 }
  0xb7   :  { %15262 = vmatprep.mubr.msk.f32.mxu1 %vm85_vm0, %v16542_v5 }
  0xb8   :  { %15234 = vmatmul.mubr.msk.f32.gmra.mrb[82].mxu0 %vm85_vm0, %v16601_v26 }
  0xb9   :  { %15236 = vmatprep.mubr.msk.f32.mxu0 %vm85_vm0, %v16612_v29 }
  0xba   :  { %15263 = vmatmul.mubr.msk.f32.vlgmr.msra.gmra.mrb[80].mxu1 %vm85_vm0, %v16560_v10 }
  0xbb   :  { %15265 = vmatprep.mubr.msk.f32.mxu1 %vm85_vm0, %v16565_v11 }
  0xbc   :  { %15237 = vmatmul.mubr.msk.f32.gmra.mrb[84].mxu0 %vm85_vm0, %v16621_v32 }
  0xbd   :  { %15239 = vmatprep.mubr.msk.f32.mxu0 %vm85_vm0, %v16632_v35 }
  0xbe   :  { %15266 = vmatmul.mubr.msk.f32.gmra.mrb[82].mxu1 %vm85_vm0, %v16601_v26 }
  0xbf   :  { %15268 = vmatprep.mubr.msk.f32.mxu1 %vm85_vm0, %v16612_v29 }
  0xc0   :  { %15240 = vmatmul.mubr.msk.f32.gmra.mrb[86].mxu0 %vm85_vm0, %v16645_v37 }
  0xc1   :  { %15242 = vmatprep.mubr.msk.f32.mxu0 %vm85_vm0, %v16650_v38 }
  0xc2   :  { %15269 = vmatmul.mubr.msk.f32.gmra.mrb[84].mxu1 %vm85_vm0, %v16621_v32 }
  0xc3   :  { %15271 = vmatprep.mubr.msk.f32.mxu1 %vm85_vm0, %v16632_v35 }
  0xc4   :  { %15243 = vmatmul.mubr.msk.f32.gmra.mrb[88].mxu0 %vm85_vm0, %v16663_v39 }
  0xc5   :  { %15245 = vmatprep.mubr.msk.f32.mxu0 %vm85_vm0, %v16668_v40 }
  0xc6   :  { %15272 = vmatmul.mubr.msk.f32.gmra.mrb[86].mxu1 %vm85_vm0, %v16645_v37 }
  0xc7   :  { %15274 = vmatprep.mubr.msk.f32.mxu1 %vm85_vm0, %v16650_v38 }
  0xc8   :  { %15246 = vmatmul.mubr.msk.f32.gmra.mrb[90].mxu0 %vm85_vm0, %v16681_v41 }
  0xc9   :  { %15248 = vmatprep.mubr.msk.f32.mxu0 %vm85_vm0, %v16686_v42 }
  0xca   :  { %15275 = vmatmul.mubr.msk.f32.gmra.mrb[88].mxu1 %vm85_vm0, %v16663_v39 }
  0xcb   :  { %15277 = vmatprep.mubr.msk.f32.mxu1 %vm85_vm0, %v16668_v40 }
  0xcc   :  { %15249 = vmatmul.mubr.msk.f32.gmra.mrb[92].mxu0 %vm85_vm0, %v16699_v43 }
  0xcd   :  { %15251 = vmatprep.mubr.msk.f32.mxu0 %vm85_vm0, %v16704_v44 }
  0xce   :  { %15278 = vmatmul.mubr.msk.f32.gmra.mrb[90].mxu1 %vm85_vm0, %v16681_v41 }
  0xcf   :  { %15280 = vmatprep.mubr.msk.f32.mxu1 %vm85_vm0, %v16686_v42 }
  0xd0   :  { %15252 = vmatmul.mubr.msk.f32.gmra.mrb[94].mxu0 %vm85_vm0, %v16717_v45 }
  0xd1   :  { %15288 = vmatprep.mubr.msk.f32.mxu0 %vm16431_vm1, %v19944_v28 }
  0xd2   :  { %15281 = vmatmul.mubr.msk.f32.gmra.mrb[92].mxu1 %vm85_vm0, %v16699_v43 }
  0xd3   :  { %15283 = vmatprep.mubr.msk.f32.mxu1 %vm85_vm0, %v16704_v44 }
  0xd6   :  { %15284 = vmatmul.mubr.msk.f32.gmra.mrb[94].mxu1 %vm85_vm0, %v16717_v45 }
  0xd7   :  { %15293 = vmatprep.mubr.msk.f32.mxu1 %vm16431_vm1, %v19944_v28 }
  0xe7   :  { %v17141_v5 = vpop.f32.mrb[0].mxu0 }
  0xe8   :  { %v17143_v10 = vpop.f32.mrb[1].mxu0 }
  0xe9   :  { %v17149_v29 = vpop.f32.mrb[0].mxu1 }
  0xea   :  { %v17151_v30 = vpop.f32.mrb[1].mxu1 }
  0xeb   :  { %v17145_v11 = vpop.f32.mrb[2].mxu0 }
  0xec   :  { %v17147_v26 = vpop.f32.mrb[3].mxu0 }
  0xef   :  { %v17153_v31 = vpop.f32.mrb[4].mxu0 }
  0xf0   :  { %v17155_v32 = vpop.f32.mrb[5].mxu0  ;;  %v17157_v33 = vpop.f32.mrb[2].mxu1 }
  0xf1   :  { %v17159_v34 = vpop.f32.mrb[3].mxu1 }
  0xf3   :  { %v17161_v35 = vpop.f32.mrb[6].mxu0 }
  0xf4   :  { %v17163_v36 = vpop.f32.mrb[7].mxu0  ;;  %v17165_v37 = vpop.f32.mrb[4].mxu1 }
  0xf5   :  { %v17167_v38 = vpop.f32.mrb[5].mxu1 }
  0xf7   :  { %v17169_v39 = vpop.f32.mrb[8].mxu0 }
  0xf8   :  { %v17171_v40 = vpop.f32.mrb[9].mxu0  ;;  %v17173_v41 = vpop.f32.mrb[6].mxu1 }
  0xf9   :  { %v17175_v42 = vpop.f32.mrb[7].mxu1 }
  0xfb   :  { %v17177_v43 = vpop.f32.mrb[10].mxu0 }
  0xfc   :  { %v17179_v44 = vpop.f32.mrb[11].mxu0  ;;  %v17181_v45 = vpop.f32.mrb[8].mxu1 }
  0xfd   :  { %v17183_v46 = vpop.f32.mrb[9].mxu1 }
  0xff   :  { %v17185_v47 = vpop.f32.mrb[12].mxu0 }
 0x100   :  { %v17187_v48 = vpop.f32.mrb[13].mxu0  ;;  %v17189_v49 = vpop.f32.mrb[10].mxu1 }
 0x101   :  { %v17191_v50 = vpop.f32.mrb[11].mxu1 }
 0x103   :  { %v17193_v51 = vpop.f32.mrb[14].mxu0 }
 0x104   :  { %v17195_v52 = vpop.f32.mrb[15].mxu0  ;;  %v17197_v53 = vpop.f32.mrb[12].mxu1 }
 0x105   :  { %v17199_v54 = vpop.f32.mrb[13].mxu1 }
 0x107   :  { %v17201_v55 = vpop.f32.mrb[16].mxu0 }
 0x108   :  { %v17203_v56 = vpop.f32.mrb[17].mxu0 }
 0x109   :  { %v17205_v57 = vpop.f32.mrb[14].mxu1 }
 0x10a   :  { %v17207_v58 = vpop.f32.mrb[15].mxu1 }
 0x10b   :  { %v17209_v59 = vpop.f32.mrb[18].mxu0 }
 0x10c   :  { %v17211_v60 = vpop.f32.mrb[19].mxu0 }
 0x10d   :  { %v17213_v61 = vpop.f32.mrb[16].mxu1 }
 0x10e   :  { %v17215_v62 = vpop.f32.mrb[17].mxu1 }
 0x10f   :  { %v17217_v63 = vpop.f32.mrb[20].mxu0 }
 0x110   :  { %v17219_v0 = vpop.f32.mrb[21].mxu0 }
 0x111   :  { %v17221_v1 = vpop.f32.mrb[18].mxu1 }
 0x112   :  { %v17223_v2 = vpop.f32.mrb[19].mxu1 }
 0x113   :  { %v17225_v3 = vpop.f32.mrb[22].mxu0 }
 0x114   :  { %v17227_v4 = vpop.f32.mrb[23].mxu0 }
 0x115   :  { %v17229_v6 = vpop.f32.mrb[20].mxu1 }
 0x116   :  { %19980 = vst [vmem:[#allocation9_spill] sm:$0xff] %v17229_v6  ;;  %v17231_v7 = vpop.f32.mrb[21].mxu1 }
 0x117   :  { %19981 = vst [vmem:[#allocation10_spill] sm:$0xff] %v17231_v7  ;;  %v17233_v8 = vpop.f32.mrb[24].mxu0  ;;  %v19991_v7 = vmov 0.0  }
 0x118   :  { %v17235_v9 = vpop.f32.mrb[25].mxu0 }
 0x119   :  { %v17237_v12 = vpop.f32.mrb[22].mxu1 }
 0x11a   :  { %19982 = vst [vmem:[#allocation11_spill] sm:$0xff] %v17237_v12  ;;  %v17239_v13 = vpop.f32.mrb[23].mxu1 }
 0x11b   :  { %19983 = vst [vmem:[#allocation12_spill] sm:$0xff] %v17239_v13  ;;  %v17241_v14 = vpop.f32.mrb[26].mxu0 }
 0x11c   :  { %v17243_v15 = vpop.f32.mrb[27].mxu0 }
 0x11d   :  { %v17245_v16 = vpop.f32.mrb[24].mxu1 }
 0x11e   :  { %19984 = vst [vmem:[#allocation13_spill] sm:$0xff] %v17245_v16  ;;  %v17247_v17 = vpop.f32.mrb[25].mxu1 }
 0x11f   :  { %19985 = vst [vmem:[#allocation14_spill] sm:$0xff] %v17247_v17  ;;  %v17249_v18 = vpop.f32.mrb[28].mxu0 }
 0x120   :  { %v17251_v19 = vpop.f32.mrb[29].mxu0 }
 0x121   :  { %v17253_v20 = vpop.f32.mrb[26].mxu1 }
 0x122   :  { %19986 = vst [vmem:[#allocation15_spill] sm:$0xff] %v17253_v20  ;;  %v17255_v21 = vpop.f32.mrb[27].mxu1  ;;  %v17273_v20 = vld [vmem:[%s19926_s2] sm:$0xff] }
 0x123   :  { %19987 = vst [vmem:[#allocation16_spill] sm:$0xff] %v17255_v21  ;;  %v17257_v22 = vpop.f32.mrb[30].mxu0 }
 0x124   :  { %v17259_v23 = vpop.f32.mrb[31].mxu0 }
 0x125   :  { %v17266_v25 = vpop.f32.mrb[28].mxu1 }
 0x126   :  { %19988 = vst [vmem:[#allocation17_spill] sm:$0xff] %v17266_v25  ;;  %v17268_v27 = vpop.f32.mrb[29].mxu1 }
 0x127   :  { %19989 = vst [vmem:[#allocation18_spill] sm:$0xff] %v17268_v27  ;;  %v15040_v28 = vpop.f32.mrb[32].mxu0  ;;  %v719_v27 = vadd.f32 %v17141_v5, %v17273_v20 }
 0x128   :  { %v1383_v21 = vadd.f32 %v15040_v28, %v17264_v24  ;;  %v864_v17 = vpop.f32.mrb[33].mxu0  ;;  %v718_v28 = vadd.f32 %v17273_v20, %v17143_v10  ;;  %v721_v10 = vadd.f32 %v17145_v11, %v17273_v20 }
 0x129   :  { %v1382_v16 = vadd.f32 %v17264_v24, %v864_v17  ;;  %v17277_v13 = vpop.f32.mrb[30].mxu1 }
 0x12a   :  { %15292 = vmatpush3.xpose.msk.msra.mxu1 %vm2110_vm2, %v1383_v21  ;;  %v17280_v12 = vpop.f32.mrb[31].mxu1 }
 0x12b   :  { %19990 = vst [vmem:[#allocation19_spill] sm:$0xff] %v17280_v12  ;;  %v15043_v25 = vpop.f32.mrb[34].mxu0  ;;  %15287 = vmatpush3.xpose.msk.msra.mxu0 %vm2110_vm2, %v1382_v16  ;;  %15301 = vmatprep.subr.mxu1 %v19991_v7 }
 0x12c   :  { %v1385_v6 = vadd.f32 %v15043_v25, %v17264_v24  ;;  %v874_v17 = vpop.f32.mrb[35].mxu0  ;;  %15296 = vmatprep.subr.mxu0 %v19991_v7  ;;  %v720_v25 = vadd.f32 %v17273_v20, %v17147_v26 }
 0x12d   :  { %v1384_v21 = vadd.f32 %v17264_v24, %v874_v17  ;;  %15294 = vmatmul.mubr.msk.f32.vlgmr.msra.gmra.mrb[96].mxu1 %vm2110_vm2, %v719_v27  ;;  %v17292_v12 = vpop.f32.mrb[32].mxu1 }
 0x12e   :  { %15289 = vmatmul.mubr.msk.f32.vlgmr.msra.gmra.mrb[96].mxu0 %vm2110_vm2, %v718_v28  ;;  %15302 = vmatpush3.xpose.msk.msra.mxu1 %vm2110_vm2, %v1385_v6  ;;  %v17296_v5 = vpop.f32.mrb[33].mxu1  ;;  %v723_v28 = vadd.f32 %v17153_v31, %v17273_v20 }
 0x12f   :  { %v15046_v16 = vpop.f32.mrb[36].mxu0  ;;  %15297 = vmatpush3.xpose.msk.msra.mxu0 %vm2110_vm2, %v1384_v21  ;;  %15303 = vmatprep.mubr.msk.f32.mxu1 %vm16431_vm1, %v19991_v7 }
 0x130   :  { %v1387_v27 = vadd.f32 %v15046_v16, %v17264_v24  ;;  %v884_v17 = vpop.f32.mrb[37].mxu0  ;;  %15298 = vmatprep.mubr.msk.f32.mxu0 %vm16431_vm1, %v19991_v7  ;;  %15311 = vmatprep.subr.mxu1 %v19991_v7 }
 0x131   :  { %v1386_v6 = vadd.f32 %v17264_v24, %v884_v17  ;;  %15304 = vmatmul.mubr.msk.f32.vlgmr.msra.gmra.mrb[98].mxu1 %vm2110_vm2, %v721_v10  ;;  %15306 = vmatprep.subr.mxu0 %v19991_v7  ;;  %v17312_v11 = vpop.f32.mrb[34].mxu1  ;;  %v722_v10 = vadd.f32 %v17273_v20, %v17155_v32 }
 0x132   :  { %15299 = vmatmul.mubr.msk.f32.vlgmr.msra.gmra.mrb[98].mxu0 %vm2110_vm2, %v720_v25  ;;  %15312 = vmatpush3.xpose.msk.msra.mxu1 %vm2110_vm2, %v1387_v27  ;;  %v17316_v26 = vpop.f32.mrb[35].mxu1  ;;  %v725_v27 = vadd.f32 %v17161_v35, %v17273_v20 }
 0x133   :  { %v15049_v21 = vpop.f32.mrb[38].mxu0  ;;  %15307 = vmatpush3.xpose.msk.msra.mxu0 %vm2110_vm2, %v1386_v6  ;;  %15313 = vmatprep.mubr.msk.f32.mxu1 %vm16431_vm1, %v19991_v7 }
 0x134   :  { %v1389_v16 = vadd.f32 %v15049_v21, %v17264_v24  ;;  %v894_v17 = vpop.f32.mrb[39].mxu0  ;;  %15308 = vmatprep.mubr.msk.f32.mxu0 %vm16431_vm1, %v19991_v7  ;;  %15321 = vmatprep.subr.mxu1 %v19991_v7 }
 0x135   :  { %v1388_v25 = vadd.f32 %v17264_v24, %v894_v17  ;;  %15314 = vmatmul.mubr.msk.f32.vlgmr.msra.gmra.mrb[100].mxu1 %vm2110_vm2, %v723_v28  ;;  %15316 = vmatprep.subr.mxu0 %v19991_v7  ;;  %v17332_v31 = vpop.f32.mrb[36].mxu1  ;;  %v724_v28 = vadd.f32 %v17273_v20, %v17163_v36 }
 0x136   :  { %15309 = vmatmul.mubr.msk.f32.vlgmr.msra.gmra.mrb[100].mxu0 %vm2110_vm2, %v722_v10  ;;  %15322 = vmatpush3.xpose.msk.msra.mxu1 %vm2110_vm2, %v1389_v16  ;;  %v17336_v32 = vpop.f32.mrb[37].mxu1  ;;  %v727_v16 = vadd.f32 %v17169_v39, %v17273_v20 }
 0x137   :  { %v15052_v6 = vpop.f32.mrb[40].mxu0  ;;  %15317 = vmatpush3.xpose.msk.msra.mxu0 %vm2110_vm2, %v1388_v25  ;;  %15323 = vmatprep.mubr.msk.f32.mxu1 %vm16431_vm1, %v19991_v7 }
 0x138   :  { %v1391_v21 = vadd.f32 %v15052_v6, %v17264_v24  ;;  %v904_v17 = vpop.f32.mrb[41].mxu0  ;;  %15318 = vmatprep.mubr.msk.f32.mxu0 %vm16431_vm1, %v19991_v7  ;;  %15331 = vmatprep.subr.mxu1 %v19991_v7 }
 0x139   :  { %v1390_v10 = vadd.f32 %v17264_v24, %v904_v17  ;;  %15324 = vmatmul.mubr.msk.f32.vlgmr.msra.gmra.mrb[102].mxu1 %vm2110_vm2, %v725_v27  ;;  %15326 = vmatprep.subr.mxu0 %v19991_v7  ;;  %v17352_v35 = vpop.f32.mrb[38].mxu1  ;;  %v726_v27 = vadd.f32 %v17273_v20, %v17171_v40 }
 0x13a   :  { %15319 = vmatmul.mubr.msk.f32.vlgmr.msra.gmra.mrb[102].mxu0 %vm2110_vm2, %v724_v28  ;;  %15332 = vmatpush3.xpose.msk.msra.mxu1 %vm2110_vm2, %v1391_v21  ;;  %v17356_v36 = vpop.f32.mrb[39].mxu1  ;;  %v729_v21 = vadd.f32 %v17177_v43, %v17273_v20 }
 0x13b   :  { %v15055_v25 = vpop.f32.mrb[42].mxu0  ;;  %15327 = vmatpush3.xpose.msk.msra.mxu0 %vm2110_vm2, %v1390_v10  ;;  %15333 = vmatprep.mubr.msk.f32.mxu1 %vm16431_vm1, %v19991_v7 }
 0x13c   :  { %v1393_v6 = vadd.f32 %v15055_v25, %v17264_v24  ;;  %v914_v17 = vpop.f32.mrb[43].mxu0  ;;  %15328 = vmatprep.mubr.msk.f32.mxu0 %vm16431_vm1, %v19991_v7  ;;  %15341 = vmatprep.subr.mxu1 %v19991_v7 }
 0x13d   :  { %v1392_v28 = vadd.f32 %v17264_v24, %v914_v17  ;;  %15334 = vmatmul.mubr.msk.f32.vlgmr.msra.gmra.mrb[104].mxu1 %vm2110_vm2, %v727_v16  ;;  %15336 = vmatprep.subr.mxu0 %v19991_v7  ;;  %v17372_v39 = vpop.f32.mrb[40].mxu1  ;;  %v728_v16 = vadd.f32 %v17273_v20, %v17179_v44 }
 0x13e   :  { %15329 = vmatmul.mubr.msk.f32.vlgmr.msra.gmra.mrb[104].mxu0 %vm2110_vm2, %v726_v27  ;;  %15342 = vmatpush3.xpose.msk.msra.mxu1 %vm2110_vm2, %v1393_v6  ;;  %v17376_v40 = vpop.f32.mrb[41].mxu1  ;;  %v731_v6 = vadd.f32 %v17185_v47, %v17273_v20 }
 0x13f   :  { %v15058_v10 = vpop.f32.mrb[44].mxu0  ;;  %15337 = vmatpush3.xpose.msk.msra.mxu0 %vm2110_vm2, %v1392_v28  ;;  %15343 = vmatprep.mubr.msk.f32.mxu1 %vm16431_vm1, %v19991_v7 }
 0x140   :  { %v1395_v25 = vadd.f32 %v15058_v10, %v17264_v24  ;;  %v924_v17 = vpop.f32.mrb[45].mxu0  ;;  %15338 = vmatprep.mubr.msk.f32.mxu0 %vm16431_vm1, %v19991_v7  ;;  %15351 = vmatprep.subr.mxu1 %v19991_v7  ;;  %v730_v10 = vadd.f32 %v17273_v20, %v17187_v48 }
 0x141   :  { %v1394_v27 = vadd.f32 %v17264_v24, %v924_v17  ;;  %15344 = vmatmul.mubr.msk.f32.vlgmr.msra.gmra.mrb[106].mxu1 %vm2110_vm2, %v729_v21  ;;  %15346 = vmatprep.subr.mxu0 %v19991_v7  ;;  %v17392_v43 = vpop.f32.mrb[42].mxu1  ;;  %v17406_v21 = vld [vmem:[%s19928_s4 + $0x8] sm:$0xff] }
 0x142   :  { %15339 = vmatmul.mubr.msk.f32.vlgmr.msra.gmra.mrb[106].mxu0 %vm2110_vm2, %v728_v16  ;;  %15352 = vmatpush3.xpose.msk.msra.mxu1 %vm2110_vm2, %v1395_v25  ;;  %v17396_v44 = vpop.f32.mrb[43].mxu1  ;;  %v1399_v48 = vadd.f32 %v17292_v12, %v17406_v21  ;;  %v17439_v12 = vld [vmem:[%s19926_s2 + $0x8] sm:$0xff] }
 0x143   :  { %v15061_v28 = vpop.f32.mrb[46].mxu0  ;;  %15347 = vmatpush3.xpose.msk.msra.mxu0 %vm2110_vm2, %v1394_v27  ;;  %15353 = vmatprep.mubr.msk.f32.mxu1 %vm16431_vm1, %v19991_v7 }
 0x144   :  { %v1397_v16 = vadd.f32 %v15061_v28, %v17264_v24  ;;  %v934_v25 = vpop.f32.mrb[47].mxu0  ;;  %15348 = vmatprep.mubr.msk.f32.mxu0 %vm16431_vm1, %v19991_v7  ;;  %15361 = vmatprep.subr.mxu1 %v19991_v7  ;;  %v733_v28 = vadd.f32 %v17193_v51, %v17273_v20 }
 0x145   :  { %v1396_v47 = vadd.f32 %v17264_v24, %v934_v25  ;;  %15354 = vmatmul.mubr.msk.f32.vlgmr.msra.gmra.mrb[108].mxu1 %vm2110_vm2, %v731_v6  ;;  %15356 = vmatprep.subr.mxu0 %v19991_v7  ;;  %v17417_v17 = vpop.f32.mrb[44].mxu1  ;;  %v1398_v24 = vadd.f32 %v17406_v21, %v17296_v5  ;;  %v1400_v25 = vadd.f32 %v17406_v21, %v17316_v26 }
 0x146   :  { %15349 = vmatmul.mubr.msk.f32.vlgmr.msra.gmra.mrb[108].mxu0 %vm2110_vm2, %v730_v10  ;;  %15362 = vmatpush3.xpose.msk.msra.mxu1 %vm2110_vm2, %v1397_v16  ;;  %v17423_v27 = vpop.f32.mrb[45].mxu1  ;;  %v732_v10 = vadd.f32 %v17273_v20, %v17195_v52  ;;  %v1401_v52 = vadd.f32 %v17312_v11, %v17406_v21  ;;  %v735_v16 = vadd.f32 %v17149_v29, %v17439_v12 }
 0x147   :  { %15357 = vmatpush3.xpose.msk.msra.mxu0 %vm2110_vm2, %v1396_v47  ;;  %15363 = vmatprep.mubr.msk.f32.mxu1 %vm16431_vm1, %v19991_v7  ;;  %v17432_v6 = vpop.f32.mrb[48].mxu0 }
 0x148   :  { %15358 = vmatprep.mubr.msk.f32.mxu0 %vm16431_vm1, %v19991_v7  ;;  %15371 = vmatprep.subr.mxu1 %v19991_v7  ;;  %v17444_v51 = vpop.f32.mrb[49].mxu0 }
 0x149   :  { %15364 = vmatmul.mubr.msk.f32.vlgmr.msra.gmra.mrb[110].mxu1 %vm2110_vm2, %v733_v28  ;;  %15366 = vmatprep.subr.mxu0 %v19991_v7  ;;  %v17448_v5 = vpop.f32.mrb[46].mxu1  ;;  %v737_v28 = vadd.f32 %v17157_v33, %v17439_v12 }
 0x14a   :  { %15359 = vmatmul.mubr.msk.f32.vlgmr.msra.gmra.mrb[110].mxu0 %vm2110_vm2, %v732_v10  ;;  %15372 = vmatpush3.xpose.msk.msra.mxu1 %vm2110_vm2, %v1399_v48  ;;  %v17454_v20 = vpop.f32.mrb[47].mxu1  ;;  %v734_v48 = vadd.f32 %v17439_v12, %v17151_v30  ;;  %v1403_v30 = vadd.f32 %v17332_v31, %v17406_v21 }
 0x14b   :  { %15367 = vmatpush3.xpose.msk.msra.mxu0 %vm2110_vm2, %v1398_v24  ;;  %15373 = vmatprep.mubr.msk.f32.mxu1 %vm16431_vm1, %v19991_v7  ;;  %v17463_v47 = vpop.f32.mrb[50].mxu0  ;;  %v1402_v24 = vadd.f32 %v17406_v21, %v17336_v32 }
 0x14c   :  { %15368 = vmatprep.mubr.msk.f32.mxu0 %vm16431_vm1, %v19991_v7  ;;  %15381 = vmatprep.subr.mxu1 %v19991_v7  ;;  %v17470_v11 = vpop.f32.mrb[51].mxu0 }
 0x14d   :  { %15374 = vmatmul.mubr.msk.f32.vlgmr.msra.gmra.mrb[112].mxu1 %vm2110_vm2, %v735_v16  ;;  %15376 = vmatprep.subr.mxu0 %v19991_v7  ;;  %v17474_v29 = vpop.f32.mrb[48].mxu1  ;;  %v739_v16 = vadd.f32 %v17165_v37, %v17439_v12 }
 0x14e   :  { %15369 = vmatmul.mubr.msk.f32.vlgmr.msra.gmra.mrb[112].mxu0 %vm2110_vm2, %v734_v48  ;;  %15382 = vmatpush3.xpose.msk.msra.mxu1 %vm2110_vm2, %v1401_v52  ;;  %v17480_v26 = vpop.f32.mrb[49].mxu1  ;;  %v736_v52 = vadd.f32 %v17439_v12, %v17159_v34  ;;  %v1405_v34 = vadd.f32 %v17352_v35, %v17406_v21 }
 0x14f   :  { %15377 = vmatpush3.xpose.msk.msra.mxu0 %vm2110_vm2, %v1400_v25  ;;  %15383 = vmatprep.mubr.msk.f32.mxu1 %vm16431_vm1, %v19991_v7  ;;  %v17489_v10 = vpop.f32.mrb[52].mxu0  ;;  %v1404_v25 = vadd.f32 %v17406_v21, %v17356_v36 }
 0x150   :  { %15378 = vmatprep.mubr.msk.f32.mxu0 %vm16431_vm1, %v19991_v7  ;;  %15391 = vmatprep.subr.mxu1 %v19991_v7  ;;  %v17496_v31 = vpop.f32.mrb[53].mxu0 }
 0x151   :  { %15384 = vmatmul.mubr.msk.f32.vlgmr.msra.gmra.mrb[114].mxu1 %vm2110_vm2, %v737_v28  ;;  %15386 = vmatprep.subr.mxu0 %v19991_v7  ;;  %v17500_v33 = vpop.f32.mrb[50].mxu1  ;;  %v741_v28 = vadd.f32 %v17173_v41, %v17439_v12 }
 0x152   :  { %15379 = vmatmul.mubr.msk.f32.vlgmr.msra.gmra.mrb[114].mxu0 %vm2110_vm2, %v736_v52  ;;  %15392 = vmatpush3.xpose.msk.msra.mxu1 %vm2110_vm2, %v1403_v30  ;;  %v17506_v32 = vpop.f32.mrb[51].mxu1  ;;  %v738_v30 = vadd.f32 %v17439_v12, %v17167_v38  ;;  %v1407_v38 = vadd.f32 %v17372_v39, %v17406_v21 }
 0x153   :  { %15387 = vmatpush3.xpose.msk.msra.mxu0 %vm2110_vm2, %v1402_v24  ;;  %15393 = vmatprep.mubr.msk.f32.mxu1 %vm16431_vm1, %v19991_v7  ;;  %v17515_v48 = vpop.f32.mrb[54].mxu0  ;;  %v1406_v24 = vadd.f32 %v17406_v21, %v17376_v40 }
 0x154   :  { %15388 = vmatprep.mubr.msk.f32.mxu0 %vm16431_vm1, %v19991_v7  ;;  %15401 = vmatprep.subr.mxu1 %v19991_v7  ;;  %v17522_v35 = vpop.f32.mrb[55].mxu0 }
 0x155   :  { %15394 = vmatmul.mubr.msk.f32.vlgmr.msra.gmra.mrb[116].mxu1 %vm2110_vm2, %v739_v16  ;;  %15396 = vmatprep.subr.mxu0 %v19991_v7  ;;  %v17526_v37 = vpop.f32.mrb[52].mxu1  ;;  %v743_v16 = vadd.f32 %v17181_v45, %v17439_v12 }
 0x156   :  { %15389 = vmatmul.mubr.msk.f32.vlgmr.msra.gmra.mrb[116].mxu0 %vm2110_vm2, %v738_v30  ;;  %15402 = vmatpush3.xpose.msk.msra.mxu1 %vm2110_vm2, %v1405_v34  ;;  %v17532_v36 = vpop.f32.mrb[53].mxu1  ;;  %v740_v34 = vadd.f32 %v17439_v12, %v17175_v42  ;;  %v1409_v42 = vadd.f32 %v17392_v43, %v17406_v21 }
 0x157   :  { %15397 = vmatpush3.xpose.msk.msra.mxu0 %vm2110_vm2, %v1404_v25  ;;  %15403 = vmatprep.mubr.msk.f32.mxu1 %vm16431_vm1, %v19991_v7  ;;  %v17541_v52 = vpop.f32.mrb[56].mxu0  ;;  %v1408_v25 = vadd.f32 %v17406_v21, %v17396_v44 }
 0x158   :  { %15398 = vmatprep.mubr.msk.f32.mxu0 %vm16431_vm1, %v19991_v7  ;;  %15411 = vmatprep.subr.mxu1 %v19991_v7  ;;  %v17548_v39 = vpop.f32.mrb[57].mxu0 }
 0x159   :  { %15404 = vmatmul.mubr.msk.f32.vlgmr.msra.gmra.mrb[118].mxu1 %vm2110_vm2, %v741_v28  ;;  %15406 = vmatprep.subr.mxu0 %v19991_v7  ;;  %v17552_v41 = vpop.f32.mrb[54].mxu1  ;;  %v745_v28 = vadd.f32 %v17189_v49, %v17439_v12 }
 0x15a   :  { %15399 = vmatmul.mubr.msk.f32.vlgmr.msra.gmra.mrb[118].mxu0 %vm2110_vm2, %v740_v34  ;;  %15412 = vmatpush3.xpose.msk.msra.mxu1 %vm2110_vm2, %v1407_v38  ;;  %v17558_v40 = vpop.f32.mrb[55].mxu1  ;;  %v742_v38 = vadd.f32 %v17439_v12, %v17183_v46  ;;  %v1411_v46 = vadd.f32 %v17417_v17, %v17406_v21 }
 0x15b   :  { %15407 = vmatpush3.xpose.msk.msra.mxu0 %vm2110_vm2, %v1406_v24  ;;  %15413 = vmatprep.mubr.msk.f32.mxu1 %vm16431_vm1, %v19991_v7  ;;  %v17567_v30 = vpop.f32.mrb[58].mxu0  ;;  %v1410_v24 = vadd.f32 %v17406_v21, %v17423_v27 }
 0x15c   :  { %15408 = vmatprep.mubr.msk.f32.mxu0 %vm16431_vm1, %v19991_v7  ;;  %15421 = vmatprep.subr.mxu1 %v19991_v7  ;;  %v17574_v43 = vpop.f32.mrb[59].mxu0 }
 0x15d   :  { %15414 = vmatmul.mubr.msk.f32.vlgmr.msra.gmra.mrb[120].mxu1 %vm2110_vm2, %v743_v16  ;;  %15416 = vmatprep.subr.mxu0 %v19991_v7  ;;  %v17578_v45 = vpop.f32.mrb[56].mxu1  ;;  %v747_v16 = vadd.f32 %v17197_v53, %v17439_v12 }
 0x15e   :  { %15409 = vmatmul.mubr.msk.f32.vlgmr.msra.gmra.mrb[120].mxu0 %vm2110_vm2, %v742_v38  ;;  %15422 = vmatpush3.xpose.msk.msra.mxu1 %vm2110_vm2, %v1409_v42  ;;  %v17584_v44 = vpop.f32.mrb[57].mxu1  ;;  %v744_v42 = vadd.f32 %v17439_v12, %v17191_v50  ;;  %v1413_v50 = vadd.f32 %v17448_v5, %v17406_v21  ;;  %v17622_v38 = vld [vmem:[%s19928_s4 + $0x10] sm:$0xff]  ;;  %v746_v5 = vadd.f32 %v17439_v12, %v17199_v54 }
 0x15f   :  { %15417 = vmatpush3.xpose.msk.msra.mxu0 %vm2110_vm2, %v1408_v25  ;;  %15423 = vmatprep.mubr.msk.f32.mxu1 %vm16431_vm1, %v19991_v7  ;;  %v17593_v34 = vpop.f32.mrb[60].mxu0  ;;  %v1412_v25 = vadd.f32 %v17406_v21, %v17454_v20  ;;  %v1415_v54 = vadd.f32 %v17432_v6, %v17622_v38  ;;  %v748_v6 = vadd.f32 %v17439_v12, %v17207_v58 }
 0x160   :  { %15418 = vmatprep.mubr.msk.f32.mxu0 %vm16431_vm1, %v19991_v7  ;;  %15431 = vmatprep.subr.mxu1 %v19991_v7  ;;  %v17600_v17 = vpop.f32.mrb[61].mxu0  ;;  %v1417_v58 = vadd.f32 %v17463_v47, %v17622_v38 }
 0x161   :  { %15424 = vmatmul.mubr.msk.f32.vlgmr.msra.gmra.mrb[122].mxu1 %vm2110_vm2, %v745_v28  ;;  %15426 = vmatprep.subr.mxu0 %v19991_v7  ;;  %v17604_v49 = vpop.f32.mrb[58].mxu1  ;;  %v749_v28 = vadd.f32 %v17205_v57, %v17439_v12 }
 0x162   :  { %15419 = vmatmul.mubr.msk.f32.vlgmr.msra.gmra.mrb[122].mxu0 %vm2110_vm2, %v744_v42  ;;  %15432 = vmatpush3.xpose.msk.msra.mxu1 %vm2110_vm2, %v1411_v46  ;;  %v17610_v27 = vpop.f32.mrb[59].mxu1 }
 0x163   :  { %15427 = vmatpush3.xpose.msk.msra.mxu0 %vm2110_vm2, %v1410_v24  ;;  %15433 = vmatprep.mubr.msk.f32.mxu1 %vm16431_vm1, %v19991_v7  ;;  %v17624_v46 = vpop.f32.mrb[62].mxu0  ;;  %v1414_v24 = vadd.f32 %v17622_v38, %v17444_v51 }
 0x164   :  { %15428 = vmatprep.mubr.msk.f32.mxu0 %vm16431_vm1, %v19991_v7  ;;  %15441 = vmatprep.subr.mxu1 %v19991_v7  ;;  %v17631_v53 = vpop.f32.mrb[63].mxu0 }
 0x165   :  { %15434 = vmatmul.mubr.msk.f32.vlgmr.msra.gmra.mrb[124].mxu1 %vm2110_vm2, %v747_v16  ;;  %15436 = vmatprep.subr.mxu0 %v19991_v7  ;;  %v17635_v21 = vpop.f32.mrb[60].mxu1 }
 0x166   :  { %15429 = vmatmul.mubr.msk.f32.vlgmr.msra.gmra.mrb[124].mxu0 %vm2110_vm2, %v746_v5  ;;  %15442 = vmatpush3.xpose.msk.msra.mxu1 %vm2110_vm2, %v1413_v50  ;;  %v17641_v20 = vpop.f32.mrb[61].mxu1  ;;  %v17655_v50 = vld [vmem:[%s19926_s2 + $0x10] sm:$0xff]  ;;  %v17684_v5 = vld [vmem:[%s19930_s6] sm:$0xff] }
 0x167   :  { %15437 = vmatpush3.xpose.msk.msra.mxu0 %vm2110_vm2, %v1412_v25  ;;  %15443 = vmatprep.mubr.msk.f32.mxu1 %vm16431_vm1, %v19991_v7  ;;  %v17650_v42 = vpop.f32.mrb[64].mxu0  ;;  %v751_v16 = vadd.f32 %v17201_v55, %v17655_v50  ;;  %v1416_v25 = vadd.f32 %v17622_v38, %v17470_v11  ;;  %v750_v47 = vadd.f32 %v17655_v50, %v17203_v56 }
 0x168   :  { %15438 = vmatprep.mubr.msk.f32.mxu0 %vm16431_vm1, %v19991_v7  ;;  %15451 = vmatprep.subr.mxu1 %v19991_v7  ;;  %v17662_v57 = vpop.f32.mrb[65].mxu0  ;;  %v1419_v56 = vadd.f32 %v17489_v10, %v17622_v38 }
 0x169   :  { %15444 = vmatmul.mubr.msk.f32.vlgmr.msra.gmra.mrb[126].mxu1 %vm2110_vm2, %v749_v28  ;;  %15446 = vmatprep.subr.mxu0 %v19991_v7  ;;  %v17666_v51 = vpop.f32.mrb[62].mxu1 }
 0x16a   :  { %15439 = vmatmul.mubr.msk.f32.vlgmr.msra.gmra.mrb[126].mxu0 %vm2110_vm2, %v748_v6  ;;  %15452 = vmatpush3.xpose.msk.msra.mxu1 %vm2110_vm2, %v1415_v54  ;;  %v17672_v12 = vpop.f32.mrb[63].mxu1 }
 0x16b   :  { %15447 = vmatpush3.xpose.msk.msra.mxu0 %vm2110_vm2, %v1414_v24  ;;  %15453 = vmatprep.mubr.msk.f32.mxu1 %vm16431_vm1, %v19991_v7  ;;  %v15171_v54 = vpop.f32.mrb[66].mxu0 }
 0x16c   :  { %15448 = vmatprep.mubr.msk.f32.mxu0 %vm16431_vm1, %v19991_v7  ;;  %15461 = vmatprep.subr.mxu1 %v19991_v7  ;;  %v17692_v55 = vadd.f32 %v15171_v54, %v17684_v5  ;;  %v1538_v11 = vpop.f32.mrb[67].mxu0  ;;  %v753_v54 = vadd.f32 %v17209_v59, %v17655_v50 }
 0x16d   :  { %15454 = vmatmul.mubr.msk.f32.vlgmr.msra.gmra.mrb[128].mxu1 %vm2110_vm2, %v751_v16  ;;  %15456 = vmatprep.subr.mxu0 %v19991_v7  ;;  %v17696_v28 = vpop.f32.mrb[64].mxu1  ;;  %v17699_v24 = vadd.f32 %v17684_v5, %v1538_v11  ;;  %v1418_v16 = vadd.f32 %v17622_v38, %v17496_v31 }
 0x16e   :  { %19992 = vst [vmem:[#allocation20_spill] sm:$0xff] %v17692_v55  ;;  %19993 = vst [vmem:[#allocation21_spill] sm:$0xff] %v17696_v28  ;;  %15449 = vmatmul.mubr.msk.f32.vlgmr.msra.gmra.mrb[128].mxu0 %vm2110_vm2, %v750_v47  ;;  %15462 = vmatpush3.xpose.msk.msra.mxu1 %vm2110_vm2, %v1417_v58  ;;  %v17705_v6 = vpop.f32.mrb[65].mxu1  ;;  %v752_v58 = vadd.f32 %v17655_v50, %v17211_v60  ;;  %v1421_v60 = vadd.f32 %v17515_v48, %v17622_v38 }
 0x16f   :  { %19994 = vst [vmem:[#allocation22_spill] sm:$0xff] %v17699_v24  ;;  %19995 = vst [vmem:[#allocation23_spill] sm:$0xff] %v17705_v6  ;;  %15457 = vmatpush3.xpose.msk.msra.mxu0 %vm2110_vm2, %v1416_v25  ;;  %15463 = vmatprep.mubr.msk.f32.mxu1 %vm16431_vm1, %v19991_v7  ;;  %v15174_v11 = vpop.f32.mrb[68].mxu0 }
 0x170   :  { %15458 = vmatprep.mubr.msk.f32.mxu0 %vm16431_vm1, %v19991_v7  ;;  %15471 = vmatprep.subr.mxu1 %v19991_v7  ;;  %v17720_v10 = vadd.f32 %v15174_v11, %v17684_v5  ;;  %v1548_v59 = vpop.f32.mrb[69].mxu0  ;;  %v755_v11 = vadd.f32 %v17217_v63, %v17655_v50 }
 0x171   :  { %15464 = vmatmul.mubr.msk.f32.vlgmr.msra.gmra.mrb[130].mxu1 %vm2110_vm2, %v753_v54  ;;  %15466 = vmatprep.subr.mxu0 %v19991_v7  ;;  %v17724_v31 = vpop.f32.mrb[66].mxu1  ;;  %v17727_v25 = vadd.f32 %v17684_v5, %v1548_v59  ;;  %v1420_v54 = vadd.f32 %v17622_v38, %v17522_v35 }
 0x172   :  { %19996 = vst [vmem:[#allocation24_spill] sm:$0xff] %v17720_v10  ;;  %19997 = vst [vmem:[#allocation25_spill] sm:$0xff] %v17724_v31  ;;  %15459 = vmatmul.mubr.msk.f32.vlgmr.msra.gmra.mrb[130].mxu0 %vm2110_vm2, %v752_v58  ;;  %15472 = vmatpush3.xpose.msk.msra.mxu1 %vm2110_vm2, %v1419_v56  ;;  %v17733_v47 = vpop.f32.mrb[67].mxu1  ;;  %v754_v56 = vadd.f32 %v17655_v50, %v17219_v0  ;;  %v1423_v0 = vadd.f32 %v17541_v52, %v17622_v38 }
 0x173   :  { %19998 = vst [vmem:[#allocation26_spill] sm:$0xff] %v17727_v25  ;;  %19999 = vst [vmem:[#allocation27_spill] sm:$0xff] %v17733_v47  ;;  %15467 = vmatpush3.xpose.msk.msra.mxu0 %vm2110_vm2, %v1418_v16  ;;  %15473 = vmatprep.mubr.msk.f32.mxu1 %vm16431_vm1, %v19991_v7  ;;  %v15177_v59 = vpop.f32.mrb[70].mxu0 }
 0x174   :  { %15468 = vmatprep.mubr.msk.f32.mxu0 %vm16431_vm1, %v19991_v7  ;;  %15481 = vmatprep.subr.mxu1 %v19991_v7  ;;  %v17748_v48 = vadd.f32 %v15177_v59, %v17684_v5  ;;  %v1558_v63 = vpop.f32.mrb[71].mxu0  ;;  %v757_v59 = vadd.f32 %v17225_v3, %v17655_v50 }
 0x175   :  { %15474 = vmatmul.mubr.msk.f32.vlgmr.msra.gmra.mrb[132].mxu1 %vm2110_vm2, %v755_v11  ;;  %15476 = vmatprep.subr.mxu0 %v19991_v7  ;;  %v17752_v35 = vpop.f32.mrb[68].mxu1  ;;  %v17755_v16 = vadd.f32 %v17684_v5, %v1558_v63  ;;  %v1422_v11 = vadd.f32 %v17622_v38, %v17548_v39 }
 0x176   :  { %20000 = vst [vmem:[#allocation28_spill] sm:$0xff] %v17748_v48  ;;  %20001 = vst [vmem:[#allocation29_spill] sm:$0xff] %v17752_v35  ;;  %15469 = vmatmul.mubr.msk.f32.vlgmr.msra.gmra.mrb[132].mxu0 %vm2110_vm2, %v754_v56  ;;  %15482 = vmatpush3.xpose.msk.msra.mxu1 %vm2110_vm2, %v1421_v60  ;;  %v17761_v58 = vpop.f32.mrb[69].mxu1  ;;  %v756_v60 = vadd.f32 %v17655_v50, %v17227_v4  ;;  %v1425_v4 = vadd.f32 %v17567_v30, %v17622_v38 }
 0x177   :  { %20002 = vst [vmem:[#allocation30_spill] sm:$0xff] %v17755_v16  ;;  %20003 = vst [vmem:[#allocation31_spill] sm:$0xff] %v17761_v58  ;;  %15477 = vmatpush3.xpose.msk.msra.mxu0 %vm2110_vm2, %v1420_v54  ;;  %15483 = vmatprep.mubr.msk.f32.mxu1 %vm16431_vm1, %v19991_v7  ;;  %v15180_v63 = vpop.f32.mrb[72].mxu0 }
 0x178   :  { %15478 = vmatprep.mubr.msk.f32.mxu0 %vm16431_vm1, %v19991_v7  ;;  %15491 = vmatprep.subr.mxu1 %v19991_v7  ;;  %v17776_v52 = vadd.f32 %v15180_v63, %v17684_v5  ;;  %v1568_v3 = vpop.f32.mrb[73].mxu0  ;;  %v759_v63 = vadd.f32 %v17233_v8, %v17655_v50 }
 0x179   :  { %15484 = vmatmul.mubr.msk.f32.vlgmr.msra.gmra.mrb[134].mxu1 %vm2110_vm2, %v757_v59  ;;  %15486 = vmatprep.subr.mxu0 %v19991_v7  ;;  %v17780_v39 = vpop.f32.mrb[70].mxu1  ;;  %v17783_v54 = vadd.f32 %v17684_v5, %v1568_v3  ;;  %v1424_v59 = vadd.f32 %v17622_v38, %v17574_v43 }
 0x17a   :  { %20004 = vst [vmem:[#allocation32_spill] sm:$0xff] %v17776_v52  ;;  %20005 = vst [vmem:[#allocation33_spill] sm:$0xff] %v17780_v39  ;;  %15479 = vmatmul.mubr.msk.f32.vlgmr.msra.gmra.mrb[134].mxu0 %vm2110_vm2, %v756_v60  ;;  %15492 = vmatpush3.xpose.msk.msra.mxu1 %vm2110_vm2, %v1423_v0  ;;  %v17789_v56 = vpop.f32.mrb[71].mxu1  ;;  %v758_v0 = vadd.f32 %v17655_v50, %v17235_v9  ;;  %v1427_v9 = vadd.f32 %v17593_v34, %v17622_v38 }
 0x17b   :  { %20006 = vst [vmem:[#allocation34_spill] sm:$0xff] %v17783_v54  ;;  %20007 = vst [vmem:[#allocation35_spill] sm:$0xff] %v17789_v56  ;;  %15487 = vmatpush3.xpose.msk.msra.mxu0 %vm2110_vm2, %v1422_v11  ;;  %15493 = vmatprep.mubr.msk.f32.mxu1 %vm16431_vm1, %v19991_v7  ;;  %v15183_v3 = vpop.f32.mrb[74].mxu0 }
 0x17c   :  { %15488 = vmatprep.mubr.msk.f32.mxu0 %vm16431_vm1, %v19991_v7  ;;  %15501 = vmatprep.subr.mxu1 %v19991_v7  ;;  %v17804_v30 = vadd.f32 %v15183_v3, %v17684_v5  ;;  %v1578_v8 = vpop.f32.mrb[75].mxu0  ;;  %v761_v3 = vadd.f32 %v17241_v14, %v17655_v50 }
 0x17d   :  { %15494 = vmatmul.mubr.msk.f32.vlgmr.msra.gmra.mrb[136].mxu1 %vm2110_vm2, %v759_v63  ;;  %15496 = vmatprep.subr.mxu0 %v19991_v7  ;;  %v17808_v43 = vpop.f32.mrb[72].mxu1  ;;  %v17811_v11 = vadd.f32 %v17684_v5, %v1578_v8  ;;  %v1426_v63 = vadd.f32 %v17622_v38, %v17600_v17 }
 0x17e   :  { %20008 = vst [vmem:[#allocation36_spill] sm:$0xff] %v17804_v30  ;;  %20009 = vst [vmem:[#allocation37_spill] sm:$0xff] %v17808_v43  ;;  %15489 = vmatmul.mubr.msk.f32.vlgmr.msra.gmra.mrb[136].mxu0 %vm2110_vm2, %v758_v0  ;;  %15502 = vmatpush3.xpose.msk.msra.mxu1 %vm2110_vm2, %v1425_v4  ;;  %v17817_v60 = vpop.f32.mrb[73].mxu1  ;;  %v760_v4 = vadd.f32 %v17655_v50, %v17243_v15  ;;  %v1429_v15 = vadd.f32 %v17624_v46, %v17622_v38 }
 0x17f   :  { %20010 = vst [vmem:[#allocation38_spill] sm:$0xff] %v17811_v11  ;;  %20011 = vst [vmem:[#allocation39_spill] sm:$0xff] %v17817_v60  ;;  %15497 = vmatpush3.xpose.msk.msra.mxu0 %vm2110_vm2, %v1424_v59  ;;  %15503 = vmatprep.mubr.msk.f32.mxu1 %vm16431_vm1, %v19991_v7  ;;  %v15186_v8 = vpop.f32.mrb[76].mxu0  ;;  %v762_v46 = vadd.f32 %v17655_v50, %v17251_v19 }
 0x180   :  { %15498 = vmatprep.mubr.msk.f32.mxu0 %vm16431_vm1, %v19991_v7  ;;  %15511 = vmatprep.subr.mxu1 %v19991_v7  ;;  %v17832_v34 = vadd.f32 %v15186_v8, %v17684_v5  ;;  %v1588_v14 = vpop.f32.mrb[77].mxu0  ;;  %v763_v8 = vadd.f32 %v17249_v18, %v17655_v50 }
 0x181   :  { %15504 = vmatmul.mubr.msk.f32.vlgmr.msra.gmra.mrb[138].mxu1 %vm2110_vm2, %v761_v3  ;;  %15506 = vmatprep.subr.mxu0 %v19991_v7  ;;  %v17836_v17 = vpop.f32.mrb[74].mxu1  ;;  %v17839_v59 = vadd.f32 %v17684_v5, %v1588_v14  ;;  %v1428_v3 = vadd.f32 %v17622_v38, %v17631_v53 }
 0x182   :  { %20012 = vst [vmem:[#allocation40_spill] sm:$0xff] %v17832_v34  ;;  %20013 = vst [vmem:[#allocation41_spill] sm:$0xff] %v17836_v17  ;;  %15499 = vmatmul.mubr.msk.f32.vlgmr.msra.gmra.mrb[138].mxu0 %vm2110_vm2, %v760_v4  ;;  %15512 = vmatpush3.xpose.msk.msra.mxu1 %vm2110_vm2, %v1427_v9  ;;  %v17845_v0 = vpop.f32.mrb[75].mxu1  ;;  %v17857_v9 = vld [vmem:[%s19928_s4 + $0x18] sm:$0xff] }
 0x183   :  { %20014 = vst [vmem:[#allocation42_spill] sm:$0xff] %v17839_v59  ;;  %20015 = vst [vmem:[#allocation43_spill] sm:$0xff] %v17845_v0  ;;  %15507 = vmatpush3.xpose.msk.msra.mxu0 %vm2110_vm2, %v1426_v63  ;;  %15513 = vmatprep.mubr.msk.f32.mxu1 %vm16431_vm1, %v19991_v7  ;;  %v15189_v4 = vpop.f32.mrb[78].mxu0  ;;  %v1431_v19 = vadd.f32 %v17474_v29, %v17857_v9  ;;  %v17894_v29 = vld [vmem:[%s19926_s2 + $0x18] sm:$0xff] }
 0x184   :  { %15508 = vmatprep.mubr.msk.f32.mxu0 %vm16431_vm1, %v19991_v7  ;;  %15521 = vmatprep.subr.mxu1 %v19991_v7  ;;  %v17865_v18 = vadd.f32 %v15189_v4, %v17684_v5  ;;  %v1598_v38 = vpop.f32.mrb[79].mxu0  ;;  %v765_v4 = vadd.f32 %v17257_v22, %v17655_v50 }
 0x185   :  { %15514 = vmatmul.mubr.msk.f32.vlgmr.msra.gmra.mrb[140].mxu1 %vm2110_vm2, %v763_v8  ;;  %15516 = vmatprep.subr.mxu0 %v19991_v7  ;;  %v17869_v53 = vpop.f32.mrb[76].mxu1  ;;  %v17872_v63 = vadd.f32 %v17684_v5, %v1598_v38  ;;  %v1430_v8 = vadd.f32 %v17857_v9, %v17480_v26 }
 0x186   :  { %20016 = vst [vmem:[#allocation44_spill] sm:$0xff] %v17865_v18  ;;  %20017 = vst [vmem:[#allocation45_spill] sm:$0xff] %v17869_v53  ;;  %15509 = vmatmul.mubr.msk.f32.vlgmr.msra.gmra.mrb[140].mxu0 %vm2110_vm2, %v762_v46  ;;  %15522 = vmatpush3.xpose.msk.msra.mxu1 %vm2110_vm2, %v1429_v15  ;;  %v17878_v14 = vpop.f32.mrb[77].mxu1  ;;  %v764_v15 = vadd.f32 %v17655_v50, %v17259_v23  ;;  %v1433_v23 = vadd.f32 %v17500_v33, %v17857_v9 }
 0x187   :  { %20018 = vst [vmem:[#allocation46_spill] sm:$0xff] %v17872_v63  ;;  %20019 = vst [vmem:[#allocation47_spill] sm:$0xff] %v17878_v14  ;;  %15517 = vmatpush3.xpose.msk.msra.mxu0 %vm2110_vm2, %v1428_v3  ;;  %15523 = vmatprep.mubr.msk.f32.mxu1 %vm16431_vm1, %v19991_v7  ;;  %v17887_v38 = vpop.f32.mrb[80].mxu0  ;;  %v767_v3 = vadd.f32 %v17213_v61, %v17894_v29  ;;  %v1432_v46 = vadd.f32 %v17857_v9, %v17506_v32 }
 0x188   :  { %20020 = vst [vmem:[#allocation48_spill] sm:$0xff] %v17887_v38  ;;  %15518 = vmatprep.mubr.msk.f32.mxu0 %vm16431_vm1, %v19991_v7  ;;  %15531 = vmatprep.subr.mxu1 %v19991_v7  ;;  %v17899_v22 = vpop.f32.mrb[81].mxu0 }
 0x189   :  { %20021 = vst [vmem:[#allocation49_spill] sm:$0xff] %v17899_v22  ;;  %15524 = vmatmul.mubr.msk.f32.vlgmr.msra.gmra.mrb[142].mxu1 %vm2110_vm2, %v765_v4  ;;  %15526 = vmatprep.subr.mxu0 %v19991_v7  ;;  %v17903_v26 = vpop.f32.mrb[78].mxu1 }
 0x18a   :  { %20022 = vst [vmem:[#allocation50_spill] sm:$0xff] %v17903_v26  ;;  %15519 = vmatmul.mubr.msk.f32.vlgmr.msra.gmra.mrb[142].mxu0 %vm2110_vm2, %v764_v15  ;;  %15532 = vmatpush3.xpose.msk.msra.mxu1 %vm2110_vm2, %v1431_v19  ;;  %v17909_v50 = vpop.f32.mrb[79].mxu1  ;;  %v766_v19 = vadd.f32 %v17894_v29, %v17215_v62  ;;  %v1435_v62 = vadd.f32 %v17526_v37, %v17857_v9 }
 0x18b   :  { %20023 = vst [vmem:[#allocation51_spill] sm:$0xff] %v17909_v50  ;;  %15527 = vmatpush3.xpose.msk.msra.mxu0 %vm2110_vm2, %v1430_v8  ;;  %15533 = vmatprep.mubr.msk.f32.mxu1 %vm16431_vm1, %v19991_v7  ;;  %v17918_v4 = vpop.f32.mrb[82].mxu0  ;;  %v769_v8 = vadd.f32 %v17221_v1, %v17894_v29  ;;  %v1434_v15 = vadd.f32 %v17857_v9, %v17532_v36 }
 0x18c   :  { %20024 = vst [vmem:[#allocation52_spill] sm:$0xff] %v17918_v4  ;;  %15528 = vmatprep.mubr.msk.f32.mxu0 %vm16431_vm1, %v19991_v7  ;;  %15541 = vmatprep.subr.mxu1 %v19991_v7  ;;  %v17925_v33 = vpop.f32.mrb[83].mxu0 }
 0x18d   :  { %20025 = vst [vmem:[#allocation53_spill] sm:$0xff] %v17925_v33  ;;  %15534 = vmatmul.mubr.msk.f32.vlgmr.msra.gmra.mrb[144].mxu1 %vm2110_vm2, %v767_v3  ;;  %15536 = vmatprep.subr.mxu0 %v19991_v7  ;;  %v17929_v61 = vpop.f32.mrb[80].mxu1 }
 0x18e   :  { %20026 = vst [vmem:[#allocation54_spill] sm:$0xff] %v17929_v61  ;;  %15529 = vmatmul.mubr.msk.f32.vlgmr.msra.gmra.mrb[144].mxu0 %vm2110_vm2, %v766_v19  ;;  %15542 = vmatpush3.xpose.msk.msra.mxu1 %vm2110_vm2, %v1433_v23  ;;  %v17935_v32 = vpop.f32.mrb[81].mxu1  ;;  %v768_v23 = vadd.f32 %v17894_v29, %v17223_v2  ;;  %v1437_v2 = vadd.f32 %v17552_v41, %v17857_v9 }
 0x18f   :  { %20027 = vst [vmem:[#allocation55_spill] sm:$0xff] %v17935_v32  ;;  %15537 = vmatpush3.xpose.msk.msra.mxu0 %vm2110_vm2, %v1432_v46  ;;  %15543 = vmatprep.mubr.msk.f32.mxu1 %vm16431_vm1, %v19991_v7  ;;  %v17944_v3 = vpop.f32.mrb[84].mxu0  ;;  %v20032_v46 = vld [vmem:[#allocation9_spill] sm:$0xff] }
 0x190   :  { %20028 = vst [vmem:[#allocation56_spill] sm:$0xff] %v17944_v3  ;;  %15538 = vmatprep.mubr.msk.f32.mxu0 %vm16431_vm1, %v19991_v7  ;;  %15551 = vmatprep.subr.mxu1 %v19991_v7  ;;  %v17951_v37 = vpop.f32.mrb[85].mxu0  ;;  %v771_v19 = vadd.f32 %v20032_v46, %v17894_v29 }
 0x191   :  { %20029 = vst [vmem:[#allocation57_spill] sm:$0xff] %v17951_v37  ;;  %15544 = vmatmul.mubr.msk.f32.vlgmr.msra.gmra.mrb[146].mxu1 %vm2110_vm2, %v769_v8  ;;  %15546 = vmatprep.subr.mxu0 %v19991_v7  ;;  %v17955_v1 = vpop.f32.mrb[82].mxu1  ;;  %v1436_v8 = vadd.f32 %v17857_v9, %v17558_v40 }
 0x192   :  { %20030 = vst [vmem:[#allocation58_spill] sm:$0xff] %v17955_v1  ;;  %15539 = vmatmul.mubr.msk.f32.vlgmr.msra.gmra.mrb[146].mxu0 %vm2110_vm2, %v768_v23  ;;  %15552 = vmatpush3.xpose.msk.msra.mxu1 %vm2110_vm2, %v1435_v62  ;;  %v17961_v36 = vpop.f32.mrb[83].mxu1  ;;  %v20034_v23 = vld [vmem:[#allocation10_spill] sm:$0xff] }
 0x193   :  { %20031 = vst [vmem:[#allocation59_spill] sm:$0xff] %v17961_v36  ;;  %15547 = vmatpush3.xpose.msk.msra.mxu0 %vm2110_vm2, %v1434_v15  ;;  %15553 = vmatprep.mubr.msk.f32.mxu1 %vm16431_vm1, %v19991_v7  ;;  %v17970_v1 = vpop.f32.mrb[86].mxu0  ;;  %v770_v62 = vadd.f32 %v17894_v29, %v20034_v23  ;;  %v1439_v15 = vadd.f32 %v17578_v45, %v17857_v9  ;;  %v20038_v23 = vld [vmem:[#allocation11_spill] sm:$0xff] }
 0x194   :  { %20033 = vst [vmem:[#allocation9_spill] sm:$0xff] %v17970_v1  ;;  %15548 = vmatprep.mubr.msk.f32.mxu0 %vm16431_vm1, %v19991_v7  ;;  %15561 = vmatprep.subr.mxu1 %v19991_v7  ;;  %v17977_v41 = vpop.f32.mrb[87].mxu0  ;;  %v773_v36 = vadd.f32 %v20038_v23, %v17894_v29 }
 0x195   :  { %20035 = vst [vmem:[#allocation10_spill] sm:$0xff] %v17977_v41  ;;  %15554 = vmatmul.mubr.msk.f32.vlgmr.msra.gmra.mrb[148].mxu1 %vm2110_vm2, %v771_v19  ;;  %15556 = vmatprep.subr.mxu0 %v19991_v7  ;;  %v17981_v40 = vpop.f32.mrb[84].mxu1  ;;  %v1438_v19 = vadd.f32 %v17857_v9, %v17584_v44 }
 0x196   :  { %20036 = vst [vmem:[#allocation60_spill] sm:$0xff] %v17981_v40  ;;  %15549 = vmatmul.mubr.msk.f32.vlgmr.msra.gmra.mrb[148].mxu0 %vm2110_vm2, %v770_v62  ;;  %15562 = vmatpush3.xpose.msk.msra.mxu1 %vm2110_vm2, %v1437_v2  ;;  %v17987_v46 = vpop.f32.mrb[85].mxu1  ;;  %v20040_v62 = vld [vmem:[#allocation12_spill] sm:$0xff] }
 0x197   :  { %20037 = vst [vmem:[#allocation61_spill] sm:$0xff] %v17987_v46  ;;  %15557 = vmatpush3.xpose.msk.msra.mxu0 %vm2110_vm2, %v1436_v8  ;;  %15563 = vmatprep.mubr.msk.f32.mxu1 %vm16431_vm1, %v19991_v7  ;;  %v17996_v40 = vpop.f32.mrb[88].mxu0  ;;  %v772_v2 = vadd.f32 %v17894_v29, %v20040_v62  ;;  %v1441_v8 = vadd.f32 %v17604_v49, %v17857_v9  ;;  %v20044_v62 = vld [vmem:[#allocation13_spill] sm:$0xff] }
 0x198   :  { %20039 = vst [vmem:[#allocation11_spill] sm:$0xff] %v17996_v40  ;;  %15558 = vmatprep.mubr.msk.f32.mxu0 %vm16431_vm1, %v19991_v7  ;;  %15571 = vmatprep.subr.mxu1 %v19991_v7  ;;  %v18003_v45 = vpop.f32.mrb[89].mxu0  ;;  %v775_v46 = vadd.f32 %v20044_v62, %v17894_v29 }
 0x199   :  { %20041 = vst [vmem:[#allocation12_spill] sm:$0xff] %v18003_v45  ;;  %15564 = vmatmul.mubr.msk.f32.vlgmr.msra.gmra.mrb[150].mxu1 %vm2110_vm2, %v773_v36  ;;  %15566 = vmatprep.subr.mxu0 %v19991_v7  ;;  %v18007_v44 = vpop.f32.mrb[86].mxu1  ;;  %v1440_v36 = vadd.f32 %v17857_v9, %v17610_v27 }
 0x19a   :  { %20042 = vst [vmem:[#allocation62_spill] sm:$0xff] %v18007_v44  ;;  %15559 = vmatmul.mubr.msk.f32.vlgmr.msra.gmra.mrb[150].mxu0 %vm2110_vm2, %v772_v2  ;;  %15572 = vmatpush3.xpose.msk.msra.mxu1 %vm2110_vm2, %v1439_v15  ;;  %v18013_v23 = vpop.f32.mrb[87].mxu1  ;;  %v20046_v2 = vld [vmem:[#allocation14_spill] sm:$0xff] }
 0x19b   :  { %20043 = vst [vmem:[#allocation63_spill] sm:$0xff] %v18013_v23  ;;  %15567 = vmatpush3.xpose.msk.msra.mxu0 %vm2110_vm2, %v1438_v19  ;;  %15573 = vmatprep.mubr.msk.f32.mxu1 %vm16431_vm1, %v19991_v7  ;;  %v18022_v44 = vpop.f32.mrb[90].mxu0  ;;  %v774_v15 = vadd.f32 %v17894_v29, %v20046_v2  ;;  %v1443_v19 = vadd.f32 %v17635_v21, %v17857_v9  ;;  %v20050_v2 = vld [vmem:[#allocation15_spill] sm:$0xff] }
 0x19c   :  { %20045 = vst [vmem:[#allocation13_spill] sm:$0xff] %v18022_v44  ;;  %15568 = vmatprep.mubr.msk.f32.mxu0 %vm16431_vm1, %v19991_v7  ;;  %15581 = vmatprep.subr.mxu1 %v19991_v7  ;;  %v18029_v49 = vpop.f32.mrb[91].mxu0  ;;  %v777_v23 = vadd.f32 %v20050_v2, %v17894_v29 }
 0x19d   :  { %20047 = vst [vmem:[#allocation14_spill] sm:$0xff] %v18029_v49  ;;  %15574 = vmatmul.mubr.msk.f32.vlgmr.msra.gmra.mrb[152].mxu1 %vm2110_vm2, %v775_v46  ;;  %15576 = vmatprep.subr.mxu0 %v19991_v7  ;;  %v18033_v27 = vpop.f32.mrb[88].mxu1  ;;  %v1442_v46 = vadd.f32 %v17857_v9, %v17641_v20 }
 0x19e   :  { %20048 = vst [vmem:[#allocation64_spill] sm:$0xff] %v18033_v27  ;;  %15569 = vmatmul.mubr.msk.f32.vlgmr.msra.gmra.mrb[152].mxu0 %vm2110_vm2, %v774_v15  ;;  %15582 = vmatpush3.xpose.msk.msra.mxu1 %vm2110_vm2, %v1441_v8  ;;  %v18039_v62 = vpop.f32.mrb[89].mxu1  ;;  %v20052_v15 = vld [vmem:[#allocation16_spill] sm:$0xff] }
 0x19f   :  { %20049 = vst [vmem:[#allocation65_spill] sm:$0xff] %v18039_v62  ;;  %15577 = vmatpush3.xpose.msk.msra.mxu0 %vm2110_vm2, %v1440_v36  ;;  %15583 = vmatprep.mubr.msk.f32.mxu1 %vm16431_vm1, %v19991_v7  ;;  %v18048_v27 = vpop.f32.mrb[92].mxu0  ;;  %v776_v8 = vadd.f32 %v17894_v29, %v20052_v15  ;;  %v1445_v36 = vadd.f32 %v17666_v51, %v17857_v9  ;;  %v20056_v15 = vld [vmem:[#allocation17_spill] sm:$0xff] }
 0x1a0   :  { %20051 = vst [vmem:[#allocation15_spill] sm:$0xff] %v18048_v27  ;;  %15578 = vmatprep.mubr.msk.f32.mxu0 %vm16431_vm1, %v19991_v7  ;;  %15591 = vmatprep.subr.mxu1 %v19991_v7  ;;  %v18055_v21 = vpop.f32.mrb[93].mxu0  ;;  %v779_v62 = vadd.f32 %v20056_v15, %v17894_v29  ;;  %v781_v15 = vadd.f32 %v17277_v13, %v17894_v29 }
 0x1a1   :  { %20053 = vst [vmem:[#allocation16_spill] sm:$0xff] %v18055_v21  ;;  %15584 = vmatmul.mubr.msk.f32.vlgmr.msra.gmra.mrb[154].mxu1 %vm2110_vm2, %v777_v23  ;;  %15586 = vmatprep.subr.mxu0 %v19991_v7  ;;  %v18059_v20 = vpop.f32.mrb[90].mxu1  ;;  %v1444_v23 = vadd.f32 %v17857_v9, %v17672_v12  ;;  %v2047_v9 = vadd.f32 %v17650_v42, %v17684_v5 }
 0x1a2   :  { %20054 = vst [vmem:[#allocation66_spill] sm:$0xff] %v18059_v20  ;;  %15579 = vmatmul.mubr.msk.f32.vlgmr.msra.gmra.mrb[154].mxu0 %vm2110_vm2, %v776_v8  ;;  %15592 = vmatpush3.xpose.msk.msra.mxu1 %vm2110_vm2, %v1443_v19  ;;  %v18065_v2 = vpop.f32.mrb[91].mxu1  ;;  %v20058_v8 = vld [vmem:[#allocation18_spill] sm:$0xff] }
 0x1a3   :  { %20055 = vst [vmem:[#allocation67_spill] sm:$0xff] %v18065_v2  ;;  %15587 = vmatpush3.xpose.msk.msra.mxu0 %vm2110_vm2, %v1442_v46  ;;  %15593 = vmatprep.mubr.msk.f32.mxu1 %vm16431_vm1, %v19991_v7  ;;  %v18074_v20 = vpop.f32.mrb[94].mxu0  ;;  %v778_v19 = vadd.f32 %v17894_v29, %v20058_v8  ;;  %v20062_v8 = vld [vmem:[#allocation19_spill] sm:$0xff] }
 0x1a4   :  { %20057 = vst [vmem:[#allocation17_spill] sm:$0xff] %v18074_v20  ;;  %15588 = vmatprep.mubr.msk.f32.mxu0 %vm16431_vm1, %v19991_v7  ;;  %15601 = vmatprep.subr.mxu1 %v19991_v7  ;;  %v18081_v51 = vpop.f32.mrb[95].mxu0 }
 0x1a5   :  { %20059 = vst [vmem:[#allocation18_spill] sm:$0xff] %v18081_v51  ;;  %15594 = vmatmul.mubr.msk.f32.vlgmr.msra.gmra.mrb[156].mxu1 %vm2110_vm2, %v779_v62  ;;  %15596 = vmatprep.subr.mxu0 %v19991_v7  ;;  %v18085_v12 = vpop.f32.mrb[92].mxu1  ;;  %v2046_v62 = vadd.f32 %v17684_v5, %v17662_v57 }
 0x1a6   :  { %20060 = vst [vmem:[#allocation68_spill] sm:$0xff] %v18085_v12  ;;  %15589 = vmatmul.mubr.msk.f32.vlgmr.msra.gmra.mrb[156].mxu0 %vm2110_vm2, %v778_v19  ;;  %15602 = vmatpush3.xpose.msk.msra.mxu1 %vm2110_vm2, %v1445_v36  ;;  %v18091_v46 = vpop.f32.mrb[93].mxu1  ;;  %v780_v19 = vadd.f32 %v17894_v29, %v20062_v8 }
 0x1a7   :  { %20061 = vst [vmem:[#allocation69_spill] sm:$0xff] %v18091_v46  ;;  %15597 = vmatpush3.xpose.msk.msra.mxu0 %vm2110_vm2, %v1444_v23  ;;  %15603 = vmatprep.mubr.msk.f32.mxu1 %vm16431_vm1, %v19991_v7 }
 0x1a8   :  { %15598 = vmatprep.mubr.msk.f32.mxu0 %vm16431_vm1, %v19991_v7  ;;  %15606 = vmatprep.subr.mxu0 %v19991_v7 }
 0x1a9   :  { %15604 = vmatmul.mubr.msk.f32.vlgmr.msra.gmra.mrb[158].mxu1 %vm2110_vm2, %v781_v15  ;;  %15611 = vmatprep.subr.mxu1 %v19991_v7  ;;  %v18107_v13 = vpop.f32.mrb[94].mxu1 }
 0x1aa   :  { %20063 = vst [vmem:[#allocation19_spill] sm:$0xff] %v18107_v13  ;;  %15599 = vmatmul.mubr.msk.f32.vlgmr.msra.gmra.mrb[158].mxu0 %vm2110_vm2, %v780_v19  ;;  %15612 = vmatpush3.msra.mxu1 %v2047_v9  ;;  %v18110_v42 = vpop.f32.mrb[95].mxu1 }
 0x1ab   :  { %20064 = vst [vmem:[#allocation70_spill] sm:$0xff] %v18110_v42  ;;  %15607 = vmatpush3.msra.mxu0 %v2046_v62  ;;  %15613 = vmatprep.mubr.msk.f32.mxu1 %vm16431_vm1, %v19991_v7 }
 0x1ac   :  { %15621 = vmatprep.subr.mxu1 %v19991_v7  ;;  %15608 = vmatprep.mubr.msk.f32.mxu0 %vm16431_vm1, %v19991_v7 }
 0x1ad   :  { %15616 = vmatprep.subr.mxu0 %v19991_v7 }
 0x200   :  { %v2259_v57 = vpop.f32.mrb[96].mxu1 }
 0x201   :  { %v18118_v5 = vmul.f32 0.35355338, %v2259_v57  ;;  %v2183_v29 = vpop.f32.mrb[96].mxu0  ;;  %v15295_v36 = vpop.f32.mrb[97].mxu1 }
 0x202   :  { %v15290_v23 = vpop.f32.mrb[97].mxu0  ;;  %v18120_v9 = vmul.f32 0.35355338, %v2183_v29 }
 0x203   :  { %v7042_v15 = vsel %vm2110_vm2, %v18118_v5, -inf }
 0x204   :  { %7043 = vmax.xlane.f32.xlu0 %v7042_v15  ;;  %v2411_v62 = vpop.f32.mrb[98].mxu1  ;;  %v7039_v36 = vsel %vm2110_vm2, %v18120_v9, -inf }
 0x205   :  { %v18124_v8 = vmul.f32 0.35355338, %v2411_v62  ;;  %v2335_v19 = vpop.f32.mrb[98].mxu0  ;;  %v15305_v13 = vpop.f32.mrb[99].mxu1 }
 0x206   :  { %v15300_v42 = vpop.f32.mrb[99].mxu0  ;;  %v18126_v12 = vmul.f32 0.35355338, %v2335_v19 }
 0x207   :  { %v7048_v57 = vsel %vm2110_vm2, %v18124_v8, -inf }
 0x208   :  { %7049 = vmax.xlane.f32.xlu1 %v7048_v57  ;;  %v2563_v29 = vpop.f32.mrb[100].mxu1  ;;  %7040 = vmax.xlane.f32.xlu0 %v7039_v36  ;;  %v7045_v13 = vsel %vm2110_vm2, %v18126_v12, -inf }
 0x209   :  { %v2487_v23 = vpop.f32.mrb[100].mxu0  ;;  %v15315_v46 = vpop.f32.mrb[101].mxu1  ;;  %v18134_v2 = vmul.f32 0.35355338, %v2563_v29 }
 0x20a   :  { %v18132_v15 = vmul.f32 0.35355338, %v2487_v23  ;;  %v15310_v62 = vpop.f32.mrb[101].mxu0 }
 0x20b   :  { %v7054_v29 = vsel %vm2110_vm2, %v18134_v2, -inf }
 0x20c   :  { %v2715_v42 = vpop.f32.mrb[102].mxu1  ;;  %7046 = vmax.xlane.f32.xlu1 %v7045_v13  ;;  %v7051_v19 = vsel %vm2110_vm2, %v18132_v15, -inf }
 0x20d   :  { %v15325_v61 = vpop.f32.mrb[103].mxu1  ;;  %7052 = vmax.xlane.f32.xlu0 %v7051_v19  ;;  %v2639_v57 = vpop.f32.mrb[102].mxu0  ;;  %v18142_v46 = vmul.f32 0.35355338, %v2715_v42 }
 0x20e   :  { %v18140_v20 = vmul.f32 0.35355338, %v2639_v57  ;;  %v15320_v36 = vpop.f32.mrb[103].mxu0 }
 0x20f   :  { %v7060_v42 = vsel %vm2110_vm2, %v18142_v46, -inf }
 0x210   :  { %v2867_v23 = vpop.f32.mrb[104].mxu1  ;;  %7055 = vmax.xlane.f32.xlu1 %v7054_v29  ;;  %v7057_v62 = vsel %vm2110_vm2, %v18140_v20, -inf }
 0x211   :  { %v15335_v13 = vpop.f32.mrb[105].mxu1  ;;  %7058 = vmax.xlane.f32.xlu0 %v7057_v62  ;;  %v2791_v32 = vpop.f32.mrb[104].mxu0  ;;  %v18150_v19 = vmul.f32 0.35355338, %v2867_v23 }
 0x212   :  { %v18148_v51 = vmul.f32 0.35355338, %v2791_v32  ;;  %v15330_v61 = vpop.f32.mrb[105].mxu0 }
 0x213   :  { %v7066_v32 = vsel %vm2110_vm2, %v18150_v19, -inf }
 0x214   :  { %v3019_v57 = vpop.f32.mrb[106].mxu1  ;;  %7061 = vmax.xlane.f32.xlu1 %v7060_v42  ;;  %v7063_v36 = vsel %vm2110_vm2, %v18148_v51, -inf }
 0x215   :  { %v15345_v29 = vpop.f32.mrb[107].mxu1  ;;  %7064 = vmax.xlane.f32.xlu0 %v7063_v36  ;;  %v2943_v27 = vpop.f32.mrb[106].mxu0  ;;  %v18158_v13 = vmul.f32 0.35355338, %v3019_v57 }
 0x216   :  { %v18156_v21 = vmul.f32 0.35355338, %v2943_v27  ;;  %v15340_v62 = vpop.f32.mrb[107].mxu0 }
 0x217   :  { %v7072_v27 = vsel %vm2110_vm2, %v18158_v13, -inf }
 0x218   :  { %v3171_v23 = vpop.f32.mrb[108].mxu1  ;;  %7067 = vmax.xlane.f32.xlu1 %v7066_v32  ;;  %v7069_v61 = vsel %vm2110_vm2, %v18156_v21, -inf }
 0x219   :  { %v15355_v42 = vpop.f32.mrb[109].mxu1  ;;  %7070 = vmax.xlane.f32.xlu0 %v7069_v61  ;;  %v3095_v44 = vpop.f32.mrb[108].mxu0  ;;  %v18166_v29 = vmul.f32 0.35355338, %v3171_v23 }
 0x21a   :  { %v18164_v49 = vmul.f32 0.35355338, %v3095_v44  ;;  %v15350_v36 = vpop.f32.mrb[109].mxu0 }
 0x21b   :  { %v7078_v44 = vsel %vm2110_vm2, %v18166_v29, -inf }
 0x21c   :  { %v3323_v57 = vpop.f32.mrb[110].mxu1  ;;  %7073 = vmax.xlane.f32.xlu1 %v7072_v27  ;;  %v7075_v62 = vsel %vm2110_vm2, %v18164_v49, -inf }
 0x21d   :  { %v15365_v32 = vpop.f32.mrb[111].mxu1  ;;  %7076 = vmax.xlane.f32.xlu0 %v7075_v62  ;;  %v3247_v40 = vpop.f32.mrb[110].mxu0  ;;  %v18174_v42 = vmul.f32 0.35355338, %v3323_v57 }
 0x21e   :  { %v18172_v45 = vmul.f32 0.35355338, %v3247_v40  ;;  %v15360_v61 = vpop.f32.mrb[111].mxu0 }
 0x21f   :  { %v7084_v40 = vsel %vm2110_vm2, %v18174_v42, -inf }
 0x220   :  { %v3475_v23 = vpop.f32.mrb[112].mxu1  ;;  %7079 = vmax.xlane.f32.xlu1 %v7078_v44  ;;  %v7081_v36 = vsel %vm2110_vm2, %v18172_v45, -inf }
 0x221   :  { %v15375_v27 = vpop.f32.mrb[113].mxu1  ;;  %7082 = vmax.xlane.f32.xlu0 %v7081_v36  ;;  %v3399_v1 = vpop.f32.mrb[112].mxu0  ;;  %v18182_v32 = vmul.f32 0.35355338, %v3475_v23 }
 0x222   :  { %v18180_v41 = vmul.f32 0.35355338, %v3399_v1  ;;  %v15370_v62 = vpop.f32.mrb[113].mxu0 }
 0x223   :  { %v7090_v1 = vsel %vm2110_vm2, %v18182_v32, -inf }
 0x224   :  { %v3627_v57 = vpop.f32.mrb[114].mxu1  ;;  %7085 = vmax.xlane.f32.xlu1 %v7084_v40  ;;  %v7087_v61 = vsel %vm2110_vm2, %v18180_v41, -inf }
 0x225   :  { %v15385_v44 = vpop.f32.mrb[115].mxu1  ;;  %7088 = vmax.xlane.f32.xlu0 %v7087_v61  ;;  %v3551_v3 = vpop.f32.mrb[114].mxu0  ;;  %v18190_v27 = vmul.f32 0.35355338, %v3627_v57 }
 0x226   :  { %v18188_v37 = vmul.f32 0.35355338, %v3551_v3  ;;  %v15380_v36 = vpop.f32.mrb[115].mxu0 }
 0x227   :  { %v7096_v3 = vsel %vm2110_vm2, %v18190_v27, -inf }
 0x228   :  { %v3779_v23 = vpop.f32.mrb[116].mxu1  ;;  %7091 = vmax.xlane.f32.xlu1 %v7090_v1  ;;  %v7093_v62 = vsel %vm2110_vm2, %v18188_v37, -inf }
 0x229   :  { %v15395_v40 = vpop.f32.mrb[117].mxu1  ;;  %7094 = vmax.xlane.f32.xlu0 %v7093_v62  ;;  %v3703_v4 = vpop.f32.mrb[116].mxu0  ;;  %v18198_v44 = vmul.f32 0.35355338, %v3779_v23 }
 0x22a   :  { %v18196_v33 = vmul.f32 0.35355338, %v3703_v4  ;;  %v15390_v61 = vpop.f32.mrb[117].mxu0 }
 0x22b   :  { %v7102_v4 = vsel %vm2110_vm2, %v18198_v44, -inf }
 0x22c   :  { %v3931_v57 = vpop.f32.mrb[118].mxu1  ;;  %7097 = vmax.xlane.f32.xlu1 %v7096_v3  ;;  %v7099_v36 = vsel %vm2110_vm2, %v18196_v33, -inf }
 0x22d   :  { %v15405_v1 = vpop.f32.mrb[119].mxu1  ;;  %7100 = vmax.xlane.f32.xlu0 %v7099_v36  ;;  %v3855_v38 = vpop.f32.mrb[118].mxu0  ;;  %v18206_v40 = vmul.f32 0.35355338, %v3931_v57 }
 0x22e   :  { %v18204_v22 = vmul.f32 0.35355338, %v3855_v38  ;;  %v15400_v62 = vpop.f32.mrb[119].mxu0 }
 0x22f   :  { %v7108_v38 = vsel %vm2110_vm2, %v18206_v40, -inf }
 0x230   :  { %v4083_v23 = vpop.f32.mrb[120].mxu1  ;;  %7103 = vmax.xlane.f32.xlu1 %v7102_v4  ;;  %v7105_v61 = vsel %vm2110_vm2, %v18204_v22, -inf }
 0x231   :  { %v15415_v3 = vpop.f32.mrb[121].mxu1  ;;  %7106 = vmax.xlane.f32.xlu0 %v7105_v61  ;;  %v4007_v26 = vpop.f32.mrb[120].mxu0  ;;  %v18214_v1 = vmul.f32 0.35355338, %v4083_v23 }
 0x232   :  { %v18212_v50 = vmul.f32 0.35355338, %v4007_v26  ;;  %v15410_v36 = vpop.f32.mrb[121].mxu0 }
 0x233   :  { %v7114_v26 = vsel %vm2110_vm2, %v18214_v1, -inf }
 0x234   :  { %v4235_v57 = vpop.f32.mrb[122].mxu1  ;;  %7109 = vmax.xlane.f32.xlu1 %v7108_v38  ;;  %v7111_v62 = vsel %vm2110_vm2, %v18212_v50, -inf }
 0x235   :  { %v15425_v4 = vpop.f32.mrb[123].mxu1  ;;  %7112 = vmax.xlane.f32.xlu0 %v7111_v62  ;;  %v4159_v53 = vpop.f32.mrb[122].mxu0  ;;  %v18222_v3 = vmul.f32 0.35355338, %v4235_v57 }
 0x236   :  { %v18220_v14 = vmul.f32 0.35355338, %v4159_v53  ;;  %v15420_v61 = vpop.f32.mrb[123].mxu0 }
 0x237   :  { %v7120_v53 = vsel %vm2110_vm2, %v18222_v3, -inf }
 0x238   :  { %v4387_v23 = vpop.f32.mrb[124].mxu1  ;;  %7115 = vmax.xlane.f32.xlu1 %v7114_v26  ;;  %v7117_v36 = vsel %vm2110_vm2, %v18220_v14, -inf }
 0x239   :  { %v15435_v38 = vpop.f32.mrb[125].mxu1  ;;  %7118 = vmax.xlane.f32.xlu0 %v7117_v36  ;;  %v4311_v17 = vpop.f32.mrb[124].mxu0  ;;  %v18230_v4 = vmul.f32 0.35355338, %v4387_v23 }
 0x23a   :  { %v18228_v0 = vmul.f32 0.35355338, %v4311_v17  ;;  %v15430_v62 = vpop.f32.mrb[125].mxu0 }
 0x23b   :  { %v7126_v17 = vsel %vm2110_vm2, %v18230_v4, -inf }
 0x23c   :  { %v4539_v57 = vpop.f32.mrb[126].mxu1  ;;  %7121 = vmax.xlane.f32.xlu1 %v7120_v53  ;;  %v7123_v61 = vsel %vm2110_vm2, %v18228_v0, -inf }
 0x23d   :  { %v15445_v26 = vpop.f32.mrb[127].mxu1  ;;  %7124 = vmax.xlane.f32.xlu0 %v7123_v61  ;;  %v4463_v43 = vpop.f32.mrb[126].mxu0  ;;  %v18238_v38 = vmul.f32 0.35355338, %v4539_v57 }
 0x23e   :  { %v18236_v60 = vmul.f32 0.35355338, %v4463_v43  ;;  %v15440_v36 = vpop.f32.mrb[127].mxu0 }
 0x23f   :  { %v7132_v43 = vsel %vm2110_vm2, %v18238_v38, -inf }
 0x240   :  { %v4691_v23 = vpop.f32.mrb[128].mxu1  ;;  %7127 = vmax.xlane.f32.xlu1 %v7126_v17  ;;  %v7129_v62 = vsel %vm2110_vm2, %v18236_v60, -inf }
 0x241   :  { %v15455_v53 = vpop.f32.mrb[129].mxu1  ;;  %7130 = vmax.xlane.f32.xlu0 %v7129_v62  ;;  %v4615_v39 = vpop.f32.mrb[128].mxu0  ;;  %v18246_v26 = vmul.f32 0.35355338, %v4691_v23 }
 0x242   :  { %v18244_v56 = vmul.f32 0.35355338, %v4615_v39  ;;  %v15450_v61 = vpop.f32.mrb[129].mxu0 }
 0x243   :  { %v7138_v39 = vsel %vm2110_vm2, %v18246_v26, -inf }
 0x244   :  { %v4843_v57 = vpop.f32.mrb[130].mxu1  ;;  %7133 = vmax.xlane.f32.xlu1 %v7132_v43  ;;  %v7135_v36 = vsel %vm2110_vm2, %v18244_v56, -inf }
 0x245   :  { %v15465_v17 = vpop.f32.mrb[131].mxu1  ;;  %7136 = vmax.xlane.f32.xlu0 %v7135_v36  ;;  %v4767_v35 = vpop.f32.mrb[130].mxu0  ;;  %v18254_v53 = vmul.f32 0.35355338, %v4843_v57 }
 0x246   :  { %v18252_v58 = vmul.f32 0.35355338, %v4767_v35  ;;  %v15460_v62 = vpop.f32.mrb[131].mxu0 }
 0x247   :  { %v7144_v35 = vsel %vm2110_vm2, %v18254_v53, -inf }
 0x248   :  { %v4995_v23 = vpop.f32.mrb[132].mxu1  ;;  %7139 = vmax.xlane.f32.xlu1 %v7138_v39  ;;  %v7141_v61 = vsel %vm2110_vm2, %v18252_v58, -inf }
 0x249   :  { %v15475_v43 = vpop.f32.mrb[133].mxu1  ;;  %7142 = vmax.xlane.f32.xlu0 %v7141_v61  ;;  %v4919_v47 = vpop.f32.mrb[132].mxu0  ;;  %v18262_v17 = vmul.f32 0.35355338, %v4995_v23 }
 0x24a   :  { %v18260_v31 = vmul.f32 0.35355338, %v4919_v47  ;;  %v15470_v36 = vpop.f32.mrb[133].mxu0 }
 0x24b   :  { %20065 = vst [vmem:[#allocation71_spill] sm:$0xff] %v18262_v17  ;;  %v7150_v47 = vsel %vm2110_vm2, %v18262_v17, -inf }
 0x24c   :  { %v5147_v57 = vpop.f32.mrb[134].mxu1  ;;  %7145 = vmax.xlane.f32.xlu1 %v7144_v35  ;;  %v7147_v62 = vsel %vm2110_vm2, %v18260_v31, -inf }
 0x24d   :  { %v15485_v39 = vpop.f32.mrb[135].mxu1  ;;  %7148 = vmax.xlane.f32.xlu0 %v7147_v62  ;;  %v5071_v6 = vpop.f32.mrb[134].mxu0  ;;  %v18270_v43 = vmul.f32 0.35355338, %v5147_v57 }
 0x24e   :  { %v18268_v28 = vmul.f32 0.35355338, %v5071_v6  ;;  %v15480_v61 = vpop.f32.mrb[135].mxu0 }
 0x24f   :  { %20066 = vst [vmem:[#allocation72_spill] sm:$0xff] %v18270_v43  ;;  %v7156_v6 = vsel %vm2110_vm2, %v18270_v43, -inf }
 0x250   :  { %v5299_v23 = vpop.f32.mrb[136].mxu1  ;;  %7151 = vmax.xlane.f32.xlu1 %v7150_v47  ;;  %v7153_v36 = vsel %vm2110_vm2, %v18268_v28, -inf }
 0x251   :  { %v15495_v35 = vpop.f32.mrb[137].mxu1  ;;  %7154 = vmax.xlane.f32.xlu0 %v7153_v36  ;;  %v5223_v63 = vpop.f32.mrb[136].mxu0  ;;  %v18278_v39 = vmul.f32 0.35355338, %v5299_v23 }
 0x252   :  { %v18276_v18 = vmul.f32 0.35355338, %v5223_v63  ;;  %v15490_v62 = vpop.f32.mrb[137].mxu0 }
 0x253   :  { %20067 = vst [vmem:[#allocation73_spill] sm:$0xff] %v18278_v39  ;;  %v7162_v63 = vsel %vm2110_vm2, %v18278_v39, -inf }
 0x254   :  { %v5451_v57 = vpop.f32.mrb[138].mxu1  ;;  %7157 = vmax.xlane.f32.xlu1 %v7156_v6  ;;  %v7159_v61 = vsel %vm2110_vm2, %v18276_v18, -inf }
 0x255   :  { %v15505_v47 = vpop.f32.mrb[139].mxu1  ;;  %7160 = vmax.xlane.f32.xlu0 %v7159_v61  ;;  %v5375_v59 = vpop.f32.mrb[138].mxu0  ;;  %v18286_v35 = vmul.f32 0.35355338, %v5451_v57 }
 0x256   :  { %v18284_v34 = vmul.f32 0.35355338, %v5375_v59  ;;  %v15500_v36 = vpop.f32.mrb[139].mxu0 }
 0x257   :  { %20068 = vst [vmem:[#allocation74_spill] sm:$0xff] %v18286_v35  ;;  %v7168_v59 = vsel %vm2110_vm2, %v18286_v35, -inf }
 0x258   :  { %v5603_v23 = vpop.f32.mrb[140].mxu1  ;;  %7163 = vmax.xlane.f32.xlu1 %v7162_v63  ;;  %v7165_v62 = vsel %vm2110_vm2, %v18284_v34, -inf }
 0x259   :  { %v18292_v6 = vmul.f32 0.35355338, %v5603_v23  ;;  %v15515_v11 = vpop.f32.mrb[141].mxu1  ;;  %7166 = vmax.xlane.f32.xlu0 %v7165_v62  ;;  %v5527_v47 = vpop.f32.mrb[140].mxu0 }
 0x25a   :  { %v15510_v61 = vpop.f32.mrb[141].mxu0  ;;  %v18298_v36 = vmul.f32 0.35355338, %v5527_v47 }
 0x25b   :  { %20069 = vst [vmem:[#allocation75_spill] sm:$0xff] %v18292_v6  ;;  %v7174_v57 = vsel %vm2110_vm2, %v18292_v6, -inf }
 0x25c   :  { %v5755_v30 = vpop.f32.mrb[142].mxu1  ;;  %7169 = vmax.xlane.f32.xlu1 %v7168_v59  ;;  %v7171_v62 = vsel %vm2110_vm2, %v18298_v36, -inf }
 0x25d   :  { %v15525_v63 = vpop.f32.mrb[143].mxu1  ;;  %7175 = vmax.xlane.f32.xlu0 %v7174_v57  ;;  %v5679_v54 = vpop.f32.mrb[142].mxu0  ;;  %v18300_v23 = vmul.f32 0.35355338, %v5755_v30 }
 0x25e   :  { %v15520_v52 = vpop.f32.mrb[143].mxu0  ;;  %v18304_v25 = vmul.f32 0.35355338, %v5679_v54 }
 0x25f   :  { %20070 = vst [vmem:[#allocation76_spill] sm:$0xff] %v18300_v23  ;;  %v7180_v59 = vsel %vm2110_vm2, %v18300_v23, -inf }
 0x260   :  { %v5907_v11 = vpop.f32.mrb[144].mxu1  ;;  %v7177_v24 = vsel %vm2110_vm2, %v18304_v25, -inf }
 0x261   :  { %v15535_v61 = vpop.f32.mrb[145].mxu1  ;;  %7172 = vmax.xlane.f32.xlu0 %v7171_v62  ;;  %v5831_v16 = vpop.f32.mrb[144].mxu0  ;;  %v18308_v30 = vmul.f32 0.35355338, %v5907_v11 }
 0x262   :  { %v15530_v48 = vpop.f32.mrb[145].mxu0  ;;  %v18312_v54 = vmul.f32 0.35355338, %v5831_v16 }
 0x263   :  { %20071 = vst [vmem:[#allocation77_spill] sm:$0xff] %v18308_v30  ;;  %v7186_v55 = vsel %vm2110_vm2, %v18308_v30, -inf }
 0x264   :  { %v6059_v47 = vpop.f32.mrb[146].mxu1  ;;  %20072 = vst [vmem:[#allocation78_spill] sm:$0xff] %v18312_v54  ;;  %v7183_v6 = vsel %vm2110_vm2, %v18312_v54, -inf }
 0x265   :  { %v15545_v63 = vpop.f32.mrb[147].mxu1  ;;  %7181 = vmax.xlane.f32.xlu0 %v7180_v59  ;;  %v5983_v57 = vpop.f32.mrb[146].mxu0  ;;  %v18316_v11 = vmul.f32 0.35355338, %v6059_v47 }
 0x266   :  { %v15540_v52 = vpop.f32.mrb[147].mxu0  ;;  %v18320_v16 = vmul.f32 0.35355338, %v5983_v57 }
 0x267   :  { %20073 = vst [vmem:[#allocation79_spill] sm:$0xff] %v18316_v11  ;;  %v7192_v30 = vsel %vm2110_vm2, %v18316_v11, -inf }
 0x268   :  { %v6211_v10 = vpop.f32.mrb[148].mxu1  ;;  %v7189_v43 = vsel %vm2110_vm2, %v18320_v16, -inf }
 0x269   :  { %v15555_v61 = vpop.f32.mrb[149].mxu1  ;;  %7178 = vmax.xlane.f32.xlu0 %v7177_v24  ;;  %v6135_v62 = vpop.f32.mrb[148].mxu0  ;;  %v18324_v47 = vmul.f32 0.35355338, %v6211_v10 }
 0x26a   :  { %v15550_v48 = vpop.f32.mrb[149].mxu0  ;;  %v18328_v57 = vmul.f32 0.35355338, %v6135_v62 }
 0x26b   :  { %v7198_v11 = vsel %vm2110_vm2, %v18324_v47, -inf }
 0x26c   :  { %v6363_v7 = vpop.f32.mrb[150].mxu1  ;;  %v7195_v17 = vsel %vm2110_vm2, %v18328_v57, -inf }
 0x26d   :  { %v15565_v63 = vpop.f32.mrb[151].mxu1  ;;  %7187 = vmax.xlane.f32.xlu0 %v7186_v55  ;;  %v6287_v59 = vpop.f32.mrb[150].mxu0  ;;  %v18332_v10 = vmul.f32 0.35355338, %v6363_v7 }
 0x26e   :  { %v15560_v52 = vpop.f32.mrb[151].mxu0 }
 0x26f   :  { %20074 = vst [vmem:[#allocation80_spill] sm:$0xff] %v18332_v10 }
 0x270   :  { %v6515_v23 = vpop.f32.mrb[152].mxu1 }
 0x271   :  { %v15575_v61 = vpop.f32.mrb[153].mxu1  ;;  %7184 = vmax.xlane.f32.xlu0 %v7183_v6  ;;  %v6439_v24 = vpop.f32.mrb[152].mxu0  ;;  %v18340_v62 = vmul.f32 0.35355338, %v6515_v23 }
 0x272   :  { %v15570_v48 = vpop.f32.mrb[153].mxu0 }
 0x273   :  { %20075 = vst [vmem:[#allocation81_spill] sm:$0xff] %v18340_v62  ;;  %v7210_v7 = vsel %vm2110_vm2, %v18340_v62, -inf }
 0x274   :  { %v6667_v35 = vpop.f32.mrb[154].mxu1 }
 0x275   :  { %v15585_v63 = vpop.f32.mrb[155].mxu1  ;;  %7193 = vmax.xlane.f32.xlu0 %v7192_v30  ;;  %v6591_v55 = vpop.f32.mrb[154].mxu0 }
 0x276   :  { %v15580_v52 = vpop.f32.mrb[155].mxu0 }
 0x278   :  { %v6819_v39 = vpop.f32.mrb[156].mxu1 }
 0x279   :  { %v15595_v61 = vpop.f32.mrb[157].mxu1  ;;  %7190 = vmax.xlane.f32.xlu0 %v7189_v43  ;;  %v6743_v6 = vpop.f32.mrb[156].mxu0  ;;  %v7204_v43 = vsel %vm2110_vm2, %v18332_v10, -inf  ;;  %v18359_v62 = vmul.f32 0.35355338, %v6819_v39 }
 0x27a   :  { %v15590_v48 = vpop.f32.mrb[157].mxu0  ;;  %v18336_v61 = vmul.f32 0.35355338, %v6287_v59 }
 0x27c   :  { %v6971_v54 = vpop.f32.mrb[158].mxu1  ;;  %v7201_v48 = vsel %vm2110_vm2, %v18336_v61, -inf }
 0x27d   :  { %v15605_v63 = vpop.f32.mrb[159].mxu1  ;;  %7199 = vmax.xlane.f32.xlu0 %v7198_v11  ;;  %v6895_v30 = vpop.f32.mrb[158].mxu0  ;;  %v18344_v11 = vmul.f32 0.35355338, %v6439_v24 }
 0x27e   :  { %v15600_v52 = vpop.f32.mrb[159].mxu0  ;;  %v18348_v63 = vmul.f32 0.35355338, %v6667_v35 }
 0x27f   :  { %20076 = vst [vmem:[#allocation82_spill] sm:$0xff] %v18344_v11  ;;  %v18353_v52 = vmul.f32 0.35355338, %v6591_v55 }
 0x280   :  { %20077 = vst [vmem:[#allocation83_spill] sm:$0xff] %v18348_v63  ;;  %v7216_v24 = vsel %vm2110_vm2, %v18348_v63, -inf  ;;  %v18364_v63 = vmul.f32 0.35355338, %v6743_v6 }
 0x281   :  { %7196 = vmax.xlane.f32.xlu0 %v7195_v17  ;;  %v7207_v17 = vsel %vm2110_vm2, %v18344_v11, -inf }
 0x285   :  { %7205 = vmax.xlane.f32.xlu0 %v7204_v43 }
 0x289   :  { %7202 = vmax.xlane.f32.xlu0 %v7201_v48 }
 0x28d   :  { %7211 = vmax.xlane.f32.xlu0 %v7210_v7 }
 0x291   :  { %v7044_v59 = vpop.xlane.xlu0 %7043  ;;  %7208 = vmax.xlane.f32.xlu0 %v7207_v17 }
 0x292   :  { %v7232_v23 = vsub.f32 %v18118_v5, %v7044_v59  ;;  %v7213_v5 = vsel %vm2110_vm2, %v18353_v52, -inf }
 0x294   :  { %v7297_v43 = vmul.f32 1.442695, %v7232_v23 }
 0x295   :  { %v7050_v48 = vpop.xlane.xlu1 %7049  ;;  %v7041_v10 = vpop.xlane.xlu0 %7040  ;;  %7217 = vmax.xlane.f32.xlu0 %v7216_v24 }
 0x296   :  { %16100 = vpow2.f32 %v7297_v43  ;;  %v7234_v35 = vsub.f32 %v18124_v8, %v7050_v48  ;;  %v7231_v7 = vsub.f32 %v18120_v9, %v7041_v10  ;;  %v7222_v8 = vsel %vm2110_vm2, %v18359_v62, -inf }
 0x297   :  { %v18371_v48 = vmul.f32 0.35355338, %v6971_v54 }
 0x298   :  { %v7295_v11 = vmul.f32 1.442695, %v7231_v7  ;;  %v7301_v55 = vmul.f32 1.442695, %v7234_v35 }
 0x299   :  { %v7047_v17 = vpop.xlane.xlu1 %7046  ;;  %7214 = vmax.xlane.f32.xlu0 %v7213_v5  ;;  %v7228_v54 = vsel %vm2110_vm2, %v18371_v48, -inf }
 0x29a   :  { %v7233_v59 = vsub.f32 %v18126_v12, %v7047_v17  ;;  %v7053_v23 = vpop.xlane.xlu0 %7052  ;;  %16102 = vpow2.f32 %v7295_v11  ;;  %v7219_v12 = vsel %vm2110_vm2, %v18364_v63, -inf }
 0x29b   :  { %16104 = vpow2.f32 %v7301_v55  ;;  %v7235_v6 = vsub.f32 %v18132_v15, %v7053_v23 }
 0x29c   :  { %v7299_v9 = vmul.f32 1.442695, %v7233_v59 }
 0x29d   :  { %v7056_v39 = vpop.xlane.xlu1 %7055  ;;  %7223 = vmax.xlane.f32.xlu0 %v7222_v8  ;;  %v7303_v17 = vmul.f32 1.442695, %v7235_v6 }
 0x29e   :  { %v7236_v10 = vsub.f32 %v18134_v2, %v7056_v39  ;;  %v7059_v43 = vpop.xlane.xlu0 %7058  ;;  %16106 = vpow2.f32 %v7299_v9  ;;  %v18378_v2 = vmul.f32 0.35355338, %v6895_v30 }
 0x29f   :  { %v7237_v39 = vsub.f32 %v18140_v20, %v7059_v43 }
 0x2a0   :  { %v18369_v24 = vpop.eup %16100  ;;  %v7305_v11 = vmul.f32 1.442695, %v7236_v10  ;;  %v7225_v30 = vsel %vm2110_vm2, %v18378_v2, -inf }
 0x2a1   :  { %v7062_v35 = vpop.xlane.xlu1 %7061  ;;  %7220 = vmax.xlane.f32.xlu0 %v7219_v12  ;;  %v7426_v7 = vsel %vm2110_vm2, %v18369_v24, 0.0 }
 0x2a2   :  { %7427 = vadd.xlane.f32.xlu1 %v7426_v7  ;;  %v7065_v5 = vpop.xlane.xlu0 %7064  ;;  %16108 = vpow2.f32 %v7305_v11  ;;  %v7238_v59 = vsub.f32 %v18142_v46, %v7062_v35  ;;  %v7307_v35 = vmul.f32 1.442695, %v7237_v39 }
 0x2a3   :  { %16110 = vpow2.f32 %v7303_v17  ;;  %v7239_v43 = vsub.f32 %v18148_v51, %v7065_v5 }
 0x2a4   :  { %v18382_v55 = vpop.eup %16102  ;;  %v7309_v10 = vmul.f32 1.442695, %v7238_v59 }
 0x2a5   :  { %v7068_v15 = vpop.xlane.xlu1 %7067  ;;  %7229 = vmax.xlane.f32.xlu0 %v7228_v54  ;;  %v7423_v23 = vsel %vm2110_vm2, %v18382_v55, 0.0  ;;  %v18387_v9 = vpop.eup %16104 }
 0x2a6   :  { %v7071_v8 = vpop.xlane.xlu0 %7070  ;;  %7424 = vadd.xlane.f32.xlu1 %v7423_v23  ;;  %v7432_v46 = vsel %vm2110_vm2, %v18387_v9, 0.0  ;;  %16112 = vpow2.f32 %v7309_v10  ;;  %v7240_v7 = vsub.f32 %v18150_v19, %v7068_v15  ;;  %v7311_v15 = vmul.f32 1.442695, %v7239_v43 }
 0x2a7   :  { %16114 = vpow2.f32 %v7307_v35 }
 0x2a8   :  { %v18394_v11 = vpop.eup %16106  ;;  %v7313_v59 = vmul.f32 1.442695, %v7240_v7  ;;  %v7241_v7 = vsub.f32 %v18156_v21, %v7071_v8 }
 0x2a9   :  { %v7074_v12 = vpop.xlane.xlu1 %7073  ;;  %7226 = vmax.xlane.f32.xlu0 %v7225_v30  ;;  %20078 = vst [vmem:[#allocation84_spill] sm:$0xff] %v18394_v11  ;;  %v7429_v17 = vsel %vm2110_vm2, %v18394_v11, 0.0 }
 0x2aa   :  { %v7077_v6 = vpop.xlane.xlu0 %7076  ;;  %7433 = vadd.xlane.f32.xlu1 %v7432_v46  ;;  %16116 = vpow2.f32 %v7313_v59  ;;  %v7242_v46 = vsub.f32 %v18158_v13, %v7074_v12  ;;  %v7315_v12 = vmul.f32 1.442695, %v7241_v7 }
 0x2ab   :  { %16118 = vpow2.f32 %v7311_v15 }
 0x2ac   :  { %v18401_v20 = vpop.eup %16108 }
 0x2ad   :  { %v7080_v54 = vpop.xlane.xlu1 %7079  ;;  %20079 = vst [vmem:[#allocation85_spill] sm:$0xff] %v18401_v20  ;;  %v7438_v39 = vsel %vm2110_vm2, %v18401_v20, 0.0  ;;  %v18408_v19 = vpop.eup %16110  ;;  %v7317_v20 = vmul.f32 1.442695, %v7242_v46 }
 0x2ae   :  { %v18399_v23 = vpop.xlane.xlu0 %7082  ;;  %7430 = vadd.xlane.f32.xlu1 %v7429_v17  ;;  %20080 = vst [vmem:[#allocation86_spill] sm:$0xff] %v18408_v19  ;;  %v7435_v17 = vsel %vm2110_vm2, %v18408_v19, 0.0  ;;  %v7244_v19 = vsub.f32 %v18166_v29, %v7080_v54 }
 0x2af   :  { %16120 = vpow2.f32 %v7317_v20 }
 0x2b0   :  { %v18415_v51 = vpop.eup %16112  ;;  %v7321_v7 = vmul.f32 1.442695, %v7244_v19 }
 0x2b1   :  { %v7086_v30 = vpop.xlane.xlu1 %7085  ;;  %v7444_v43 = vsel %vm2110_vm2, %v18415_v51, 0.0 }
 0x2b2   :  { %v18406_v10 = vpop.xlane.xlu0 %7088  ;;  %7439 = vadd.xlane.f32.xlu1 %v7438_v39  ;;  %v18422_v39 = vpop.eup %16114 }
 0x2b3   :  { %v7441_v21 = vsel %vm2110_vm2, %v18422_v39, 0.0 }
 0x2b4   :  { %v18430_v15 = vpop.eup %16116 }
 0x2b5   :  { %v18417_v5 = vpop.xlane.xlu1 %7091  ;;  %v7450_v29 = vsel %vm2110_vm2, %v18430_v15, 0.0 }
 0x2b6   :  { %v18413_v35 = vpop.xlane.xlu0 %7094  ;;  %7436 = vadd.xlane.f32.xlu1 %v7435_v17 }
 0x2b9   :  { %v18426_v11 = vpop.xlane.xlu1 %7097 }
 0x2ba   :  { %v7101_v59 = vpop.xlane.xlu0 %7100  ;;  %7445 = vadd.xlane.f32.xlu1 %v7444_v43  ;;  %v18436_v43 = vpop.eup %16118 }
 0x2bb   :  { %v7251_v13 = vsub.f32 %v18196_v33, %v7101_v59  ;;  %v7243_v33 = vsub.f32 %v18164_v49, %v7077_v6  ;;  %v7447_v49 = vsel %vm2110_vm2, %v18436_v43, 0.0  ;;  %v18444_v19 = vpop.eup %16120 }
 0x2bd   :  { %v7335_v17 = vmul.f32 1.442695, %v7251_v13  ;;  %v18439_v13 = vpop.xlane.xlu1 %7103 }
 0x2be   :  { %v7107_v8 = vpop.xlane.xlu0 %7106  ;;  %7442 = vadd.xlane.f32.xlu1 %v7441_v21 }
 0x2bf   :  { %16122 = vpow2.f32 %v7335_v17  ;;  %v7253_v46 = vsub.f32 %v18204_v22, %v7107_v8  ;;  %v7319_v17 = vmul.f32 1.442695, %v7243_v33  ;;  %v7246_v22 = vsub.f32 %v18174_v42, %v7086_v30 }
 0x2c0   :  { %16124 = vpow2.f32 %v7315_v12  ;;  %v7456_v30 = vsel %vm2110_vm2, %v18444_v19, 0.0 }
 0x2c1   :  { %v7339_v20 = vmul.f32 1.442695, %v7253_v46  ;;  %v7325_v46 = vmul.f32 1.442695, %v7246_v22  ;;  %v18451_v42 = vpop.xlane.xlu1 %7109 }
 0x2c2   :  { %v7113_v54 = vpop.xlane.xlu0 %7112  ;;  %7451 = vadd.xlane.f32.xlu1 %v7450_v29 }
 0x2c3   :  { %16126 = vpow2.f32 %v7339_v20  ;;  %v7255_v59 = vsub.f32 %v18212_v50, %v7113_v54  ;;  %v7245_v50 = vsub.f32 %v18172_v45, %v18399_v23  ;;  %v7248_v23 = vsub.f32 %v18182_v32, %v18417_v5 }
 0x2c4   :  { %16128 = vpow2.f32 %v7321_v7  ;;  %v7247_v32 = vsub.f32 %v18180_v41, %v18406_v10  ;;  %v7249_v41 = vsub.f32 %v18188_v37, %v18413_v35  ;;  %v7250_v35 = vsub.f32 %v18190_v27, %v18426_v11 }
 0x2c5   :  { %v7343_v12 = vmul.f32 1.442695, %v7255_v59  ;;  %v7323_v45 = vmul.f32 1.442695, %v7245_v50  ;;  %v7329_v5 = vmul.f32 1.442695, %v7248_v23  ;;  %v7252_v11 = vsub.f32 %v18198_v44, %v18439_v13 }
 0x2c6   :  { %v7119_v6 = vpop.xlane.xlu0 %7118  ;;  %7448 = vadd.xlane.f32.xlu1 %v7447_v49  ;;  %v7331_v37 = vmul.f32 1.442695, %v7249_v41  ;;  %v7333_v27 = vmul.f32 1.442695, %v7250_v35  ;;  %v7254_v44 = vsub.f32 %v18206_v40, %v18451_v42 }
 0x2c7   :  { %16130 = vpow2.f32 %v7343_v12  ;;  %v7257_v21 = vsub.f32 %v18220_v14, %v7119_v6  ;;  %v18471_v6 = vpop.xlane.xlu1 %7115 }
 0x2c8   :  { %16132 = vpow2.f32 %v7319_v17  ;;  %v7341_v40 = vmul.f32 1.442695, %v7254_v44  ;;  %v7256_v42 = vsub.f32 %v18214_v1, %v18471_v6 }
 0x2c9   :  { %v18447_v8 = vpop.eup %16122  ;;  %v7347_v33 = vmul.f32 1.442695, %v7257_v21 }
 0x2ca   :  { %v7125_v7 = vpop.xlane.xlu0 %7124  ;;  %v7483_v20 = vsel %vm2110_vm2, %v18447_v8, 0.0  ;;  %v18457_v29 = vpop.eup %16124  ;;  %7457 = vadd.xlane.f32.xlu1 %v7456_v30  ;;  %v7345_v1 = vmul.f32 1.442695, %v7256_v42 }
 0x2cb   :  { %16134 = vpow2.f32 %v7347_v33  ;;  %v7259_v14 = vsub.f32 %v18228_v0, %v7125_v7  ;;  %7484 = vadd.xlane.f32.xlu0 %v7483_v20  ;;  %v7453_v17 = vsel %vm2110_vm2, %v18457_v29, 0.0 }
 0x2cc   :  { %16136 = vpow2.f32 %v7325_v46 }
 0x2cd   :  { %v18460_v54 = vpop.eup %16126  ;;  %v7351_v59 = vmul.f32 1.442695, %v7259_v14  ;;  %v7327_v14 = vmul.f32 1.442695, %v7247_v32 }
 0x2ce   :  { %v7131_v22 = vpop.xlane.xlu0 %7130  ;;  %v7489_v12 = vsel %vm2110_vm2, %v18460_v54, 0.0  ;;  %v18468_v49 = vpop.eup %16128  ;;  %7454 = vadd.xlane.f32.xlu1 %v7453_v17 }
 0x2cf   :  { %16138 = vpow2.f32 %v7351_v59  ;;  %v7261_v0 = vsub.f32 %v18236_v60, %v7131_v22  ;;  %7490 = vadd.xlane.f32.xlu0 %v7489_v12  ;;  %v7462_v46 = vsel %vm2110_vm2, %v18468_v49, 0.0 }
 0x2d0   :  { %16140 = vpow2.f32 %v7323_v45  ;;  %v18488_v45 = vpop.xlane.xlu1 %7121 }
 0x2d1   :  { %v18473_v21 = vpop.eup %16130  ;;  %v7355_v50 = vmul.f32 1.442695, %v7261_v0  ;;  %v7258_v6 = vsub.f32 %v18222_v3, %v18488_v45 }
 0x2d2   :  { %v7137_v33 = vpop.xlane.xlu0 %7136  ;;  %v7495_v30 = vsel %vm2110_vm2, %v18473_v21, 0.0  ;;  %v18481_v7 = vpop.eup %16132  ;;  %7463 = vadd.xlane.f32.xlu1 %v7462_v46 }
 0x2d3   :  { %16142 = vpow2.f32 %v7355_v50  ;;  %v7263_v60 = vsub.f32 %v18244_v56, %v7137_v33  ;;  %7496 = vadd.xlane.f32.xlu0 %v7495_v30  ;;  %v7459_v23 = vsel %vm2110_vm2, %v18481_v7, 0.0 }
 0x2d4   :  { %16144 = vpow2.f32 %v7329_v5  ;;  %v18508_v33 = vpop.xlane.xlu1 %7127 }
 0x2d5   :  { %v18484_v20 = vpop.eup %16134  ;;  %v7359_v10 = vmul.f32 1.442695, %v7263_v60  ;;  %v7260_v3 = vsub.f32 %v18230_v4, %v18508_v33 }
 0x2d6   :  { %v7143_v59 = vpop.xlane.xlu0 %7142  ;;  %v7501_v17 = vsel %vm2110_vm2, %v18484_v20, 0.0  ;;  %v18494_v22 = vpop.eup %16136  ;;  %7460 = vadd.xlane.f32.xlu1 %v7459_v23 }
 0x2d7   :  { %16146 = vpow2.f32 %v7359_v10  ;;  %v7265_v56 = vsub.f32 %v18252_v58, %v7143_v59  ;;  %7502 = vadd.xlane.f32.xlu0 %v7501_v17  ;;  %v7468_v32 = vsel %vm2110_vm2, %v18494_v22, 0.0  ;;  %v7337_v17 = vmul.f32 1.442695, %v7252_v11 }
 0x2d8   :  { %16148 = vpow2.f32 %v7327_v14 }
 0x2d9   :  { %v18497_v12 = vpop.eup %16138  ;;  %v7363_v0 = vmul.f32 1.442695, %v7265_v56  ;;  %v7134_v56 = vpop.xlane.xlu1 %7133 }
 0x2da   :  { %v7149_v5 = vpop.xlane.xlu0 %7148  ;;  %v7507_v50 = vsel %vm2110_vm2, %v18497_v12, 0.0  ;;  %v18505_v46 = vpop.eup %16140  ;;  %7469 = vadd.xlane.f32.xlu1 %v7468_v32  ;;  %v7262_v4 = vsub.f32 %v18238_v38, %v7134_v56 }
 0x2db   :  { %16150 = vpow2.f32 %v7363_v0  ;;  %v7267_v58 = vsub.f32 %v18260_v31, %v7149_v5  ;;  %7508 = vadd.xlane.f32.xlu0 %v7507_v50  ;;  %v7465_v14 = vsel %vm2110_vm2, %v18505_v46, 0.0 }
 0x2dc   :  { %16152 = vpow2.f32 %v7331_v37 }
 0x2dd   :  { %v18510_v30 = vpop.eup %16142  ;;  %v7367_v60 = vmul.f32 1.442695, %v7267_v58 }
 0x2de   :  { %v7155_v41 = vpop.xlane.xlu0 %7154  ;;  %v7513_v10 = vsel %vm2110_vm2, %v18510_v30, 0.0  ;;  %v18518_v23 = vpop.eup %16144  ;;  %7466 = vadd.xlane.f32.xlu1 %v7465_v14 }
 0x2df   :  { %16154 = vpow2.f32 %v7367_v60  ;;  %v7269_v31 = vsub.f32 %v18268_v28, %v7155_v41  ;;  %7514 = vadd.xlane.f32.xlu0 %v7513_v10  ;;  %v7474_v37 = vsel %vm2110_vm2, %v18518_v23, 0.0  ;;  %v7140_v14 = vpop.xlane.xlu1 %7139 }
 0x2e0   :  { %16156 = vpow2.f32 %v7333_v27  ;;  %v7264_v38 = vsub.f32 %v18246_v26, %v7140_v14 }
 0x2e1   :  { %v18521_v59 = vpop.eup %16146  ;;  %v7371_v13 = vmul.f32 1.442695, %v7269_v31 }
 0x2e2   :  { %v7161_v35 = vpop.xlane.xlu0 %7160  ;;  %v7519_v0 = vsel %vm2110_vm2, %v18521_v59, 0.0  ;;  %v18529_v32 = vpop.eup %16148  ;;  %7475 = vadd.xlane.f32.xlu1 %v7474_v37  ;;  %v7349_v37 = vmul.f32 1.442695, %v7258_v6 }
 0x2e3   :  { %16158 = vpow2.f32 %v7371_v13  ;;  %v7271_v28 = vsub.f32 %v18276_v18, %v7161_v35  ;;  %7520 = vadd.xlane.f32.xlu0 %v7519_v0  ;;  %v7471_v58 = vsel %vm2110_vm2, %v18529_v32, 0.0  ;;  %v7146_v45 = vpop.xlane.xlu1 %7145 }
 0x2e4   :  { %16160 = vpow2.f32 %v7337_v17 }
 0x2e5   :  { %v18532_v5 = vpop.eup %16150  ;;  %v7375_v50 = vmul.f32 1.442695, %v7271_v28 }
 0x2e6   :  { %v7167_v27 = vpop.xlane.xlu0 %7166  ;;  %v7525_v11 = vsel %vm2110_vm2, %v18532_v5, 0.0  ;;  %v18540_v60 = vpop.eup %16152  ;;  %7472 = vadd.xlane.f32.xlu1 %v7471_v58  ;;  %v7353_v58 = vmul.f32 1.442695, %v7260_v3 }
 0x2e7   :  { %16162 = vpow2.f32 %v7375_v50  ;;  %v7273_v18 = vsub.f32 %v18284_v34, %v7167_v27  ;;  %7526 = vadd.xlane.f32.xlu0 %v7525_v11  ;;  %v7477_v31 = vsel %vm2110_vm2, %v18540_v60, 0.0 }
 0x2e8   :  { %16164 = vpow2.f32 %v7341_v40 }
 0x2e9   :  { %v18543_v41 = vpop.eup %16154  ;;  %v7379_v10 = vmul.f32 1.442695, %v7273_v18 }
 0x2ea   :  { %v18549_v17 = vpop.xlane.xlu0 %7175  ;;  %v7531_v44 = vsel %vm2110_vm2, %v18543_v41, 0.0  ;;  %v18553_v13 = vpop.eup %16156  ;;  %7478 = vadd.xlane.f32.xlu1 %v7477_v31 }
 0x2eb   :  { %16166 = vpow2.f32 %v7379_v10  ;;  %7532 = vadd.xlane.f32.xlu0 %v7531_v44  ;;  %v7480_v35 = vsel %vm2110_vm2, %v18553_v13, 0.0  ;;  %v7357_v10 = vmul.f32 1.442695, %v7262_v4 }
 0x2ec   :  { %16168 = vpow2.f32 %v7345_v1 }
 0x2ed   :  { %v18555_v34 = vpop.eup %16158  ;;  %16170 = vpow2.f32 %v7349_v37 }
 0x2ee   :  { %v7173_v0 = vpop.xlane.xlu0 %7172  ;;  %v7537_v28 = vsel %vm2110_vm2, %v18555_v34, 0.0  ;;  %v18563_v40 = vpop.eup %16160  ;;  %7481 = vadd.xlane.f32.xlu1 %v7480_v35  ;;  %v7361_v35 = vmul.f32 1.442695, %v7264_v38  ;;  %v20082_v38 = vld [vmem:[#allocation78_spill] sm:$0xff] }
 0x2ef   :  { %v7275_v42 = vsub.f32 %v18298_v36, %v7173_v0  ;;  %7538 = vadd.xlane.f32.xlu0 %v7537_v28  ;;  %v7486_v27 = vsel %vm2110_vm2, %v18563_v40, 0.0  ;;  %v7152_v36 = vpop.xlane.xlu1 %7151  ;;  %v7266_v0 = vsub.f32 %v18254_v53, %v7146_v45 }
 0x2f1   :  { %v18566_v50 = vpop.eup %16162  ;;  %v7383_v33 = vmul.f32 1.442695, %v7275_v42 }
 0x2f2   :  { %v18571_v11 = vpop.xlane.xlu0 %7181  ;;  %v7543_v18 = vsel %vm2110_vm2, %v18566_v50, 0.0  ;;  %v18575_v1 = vpop.eup %16164  ;;  %7487 = vadd.xlane.f32.xlu1 %v7486_v27 }
 0x2f3   :  { %16172 = vpow2.f32 %v7383_v33  ;;  %7544 = vadd.xlane.f32.xlu0 %v7543_v18  ;;  %v7492_v56 = vsel %vm2110_vm2, %v18575_v1, 0.0  ;;  %v7158_v42 = vpop.xlane.xlu1 %7157  ;;  %v20081_v33 = vld [vmem:[#allocation71_spill] sm:$0xff] }
 0x2f4   :  { %16174 = vpow2.f32 %v7353_v58  ;;  %v7268_v27 = vsub.f32 %v20081_v33, %v7152_v36 }
 0x2f5   :  { %v18577_v6 = vpop.eup %16166  ;;  %16176 = vpow2.f32 %v7357_v10 }
 0x2f6   :  { %v7179_v31 = vpop.xlane.xlu0 %7178  ;;  %v7549_v44 = vsel %vm2110_vm2, %v18577_v6, 0.0  ;;  %v18584_v37 = vpop.eup %16168  ;;  %7493 = vadd.xlane.f32.xlu1 %v7492_v56 }
 0x2f7   :  { %v7277_v3 = vsub.f32 %v18304_v25, %v7179_v31  ;;  %7550 = vadd.xlane.f32.xlu0 %v7549_v44  ;;  %v7498_v26 = vsel %vm2110_vm2, %v18584_v37, 0.0  ;;  %v18592_v58 = vpop.eup %16170  ;;  %v7365_v25 = vmul.f32 1.442695, %v7266_v0  ;;  %v7164_v31 = vpop.xlane.xlu1 %7163  ;;  %v7369_v44 = vmul.f32 1.442695, %v7268_v27 }
 0x2f8   :  { %v7504_v53 = vsel %vm2110_vm2, %v18592_v58, 0.0 }
 0x2f9   :  { %v7387_v28 = vmul.f32 1.442695, %v7277_v3  ;;  %v20083_v3 = vld [vmem:[#allocation72_spill] sm:$0xff] }
 0x2fa   :  { %v18590_v14 = vpop.xlane.xlu0 %7187  ;;  %7499 = vadd.xlane.f32.xlu1 %v7498_v26 }
 0x2fb   :  { %16178 = vpow2.f32 %v7387_v28 }
 0x2fc   :  { %16180 = vpow2.f32 %v7361_v35  ;;  %v7270_v35 = vsub.f32 %v20083_v3, %v7158_v42 }
 0x2fd   :  { %v18594_v4 = vpop.eup %16172  ;;  %16182 = vpow2.f32 %v7365_v25  ;;  %v7170_v25 = vpop.xlane.xlu1 %7169 }
 0x2fe   :  { %v7185_v45 = vpop.xlane.xlu0 %7184  ;;  %v7555_v18 = vsel %vm2110_vm2, %v18594_v4, 0.0  ;;  %v18601_v10 = vpop.eup %16174  ;;  %7505 = vadd.xlane.f32.xlu1 %v7504_v53  ;;  %v7373_v53 = vmul.f32 1.442695, %v7270_v35 }
 0x2ff   :  { %v7279_v56 = vsub.f32 %v20082_v38, %v7185_v45  ;;  %7556 = vadd.xlane.f32.xlu0 %v7555_v18  ;;  %v7510_v36 = vsel %vm2110_vm2, %v18601_v10, 0.0  ;;  %v18609_v26 = vpop.eup %16176  ;;  %v20086_v45 = vld [vmem:[#allocation73_spill] sm:$0xff] }
 0x300   :  { %20084 = vst [vmem:[#allocation71_spill] sm:$0xff] %v18609_v26  ;;  %v7272_v18 = vsub.f32 %v20086_v45, %v7164_v31  ;;  %v7516_v42 = vsel %vm2110_vm2, %v18609_v26, 0.0 }
 0x301   :  { %v7391_v0 = vmul.f32 1.442695, %v7279_v56 }
 0x302   :  { %v18607_v28 = vpop.xlane.xlu0 %7193  ;;  %7511 = vadd.xlane.f32.xlu1 %v7510_v36 }
 0x303   :  { %16184 = vpow2.f32 %v7391_v0  ;;  %v7377_v0 = vmul.f32 1.442695, %v7272_v18 }
 0x304   :  { %16186 = vpow2.f32 %v7369_v44  ;;  %v20087_v44 = vld [vmem:[#allocation74_spill] sm:$0xff] }
 0x305   :  { %v18611_v33 = vpop.eup %16178  ;;  %16188 = vpow2.f32 %v7373_v53  ;;  %v7274_v35 = vsub.f32 %v20087_v44, %v7170_v25 }
 0x306   :  { %20085 = vst [vmem:[#allocation78_spill] sm:$0xff] %v18611_v33  ;;  %v7191_v27 = vpop.xlane.xlu0 %7190  ;;  %v7561_v38 = vsel %vm2110_vm2, %v18611_v33, 0.0  ;;  %v18618_v56 = vpop.eup %16180  ;;  %7517 = vadd.xlane.f32.xlu1 %v7516_v42 }
 0x307   :  { %v7281_v3 = vsub.f32 %v18320_v16, %v7191_v27  ;;  %7562 = vadd.xlane.f32.xlu0 %v7561_v38  ;;  %v7522_v31 = vsel %vm2110_vm2, %v18618_v56, 0.0  ;;  %v18624_v26 = vpop.eup %16182  ;;  %v7381_v42 = vmul.f32 1.442695, %v7274_v35  ;;  %v20089_v16 = vld [vmem:[#allocation75_spill] sm:$0xff] }
 0x308   :  { %v7276_v27 = vsub.f32 %v20089_v16, %v18549_v17  ;;  %v7528_v53 = vsel %vm2110_vm2, %v18624_v26, 0.0 }
 0x309   :  { %v7395_v36 = vmul.f32 1.442695, %v7281_v3 }
 0x30a   :  { %v7200_v45 = vpop.xlane.xlu0 %7199  ;;  %7523 = vadd.xlane.f32.xlu1 %v7522_v31  ;;  %v7385_v44 = vmul.f32 1.442695, %v7276_v27 }
 0x30b   :  { %16190 = vpow2.f32 %v7395_v36 }
 0x30c   :  { %16192 = vpow2.f32 %v7377_v0  ;;  %v20090_v0 = vld [vmem:[#allocation76_spill] sm:$0xff] }
 0x30d   :  { %v18626_v33 = vpop.eup %16184  ;;  %16194 = vpow2.f32 %v7381_v42  ;;  %v7278_v35 = vsub.f32 %v20090_v0, %v18571_v11 }
 0x30e   :  { %20088 = vst [vmem:[#allocation72_spill] sm:$0xff] %v18626_v33  ;;  %v7197_v18 = vpop.xlane.xlu0 %7196  ;;  %v7567_v25 = vsel %vm2110_vm2, %v18626_v33, 0.0  ;;  %v18634_v38 = vpop.eup %16186  ;;  %7529 = vadd.xlane.f32.xlu1 %v7528_v53 }
 0x30f   :  { %v7283_v3 = vsub.f32 %v18328_v57, %v7197_v18  ;;  %7568 = vadd.xlane.f32.xlu0 %v7567_v25  ;;  %v7534_v17 = vsel %vm2110_vm2, %v18634_v38, 0.0  ;;  %v18641_v16 = vpop.eup %16188  ;;  %v7389_v53 = vmul.f32 1.442695, %v7278_v35  ;;  %v20092_v57 = vld [vmem:[#allocation77_spill] sm:$0xff] }
 0x310   :  { %v7280_v42 = vsub.f32 %v20092_v57, %v18590_v14  ;;  %v7540_v27 = vsel %vm2110_vm2, %v18641_v16, 0.0 }
 0x311   :  { %v7399_v36 = vmul.f32 1.442695, %v7283_v3 }
 0x312   :  { %v7206_v31 = vpop.xlane.xlu0 %7205  ;;  %7535 = vadd.xlane.f32.xlu1 %v7534_v17  ;;  %v7393_v0 = vmul.f32 1.442695, %v7280_v42 }
 0x313   :  { %16196 = vpow2.f32 %v7399_v36 }
 0x314   :  { %16198 = vpow2.f32 %v7385_v44  ;;  %v20093_v44 = vld [vmem:[#allocation79_spill] sm:$0xff] }
 0x315   :  { %v18643_v33 = vpop.eup %16190  ;;  %16200 = vpow2.f32 %v7389_v53  ;;  %v7282_v35 = vsub.f32 %v20093_v44, %v18607_v28 }
 0x316   :  { %20091 = vst [vmem:[#allocation73_spill] sm:$0xff] %v18643_v33  ;;  %v7203_v11 = vpop.xlane.xlu0 %7202  ;;  %v7573_v18 = vsel %vm2110_vm2, %v18643_v33, 0.0  ;;  %v18651_v25 = vpop.eup %16192  ;;  %7541 = vadd.xlane.f32.xlu1 %v7540_v27 }
 0x317   :  { %v7285_v3 = vsub.f32 %v18336_v61, %v7203_v11  ;;  %7574 = vadd.xlane.f32.xlu0 %v7573_v18  ;;  %v7546_v14 = vsel %vm2110_vm2, %v18651_v25, 0.0  ;;  %v18658_v57 = vpop.eup %16194  ;;  %v7397_v27 = vmul.f32 1.442695, %v7282_v35  ;;  %v7284_v61 = vsub.f32 %v18324_v47, %v7200_v45  ;;  %v20096_v18 = vld [vmem:[#allocation82_spill] sm:$0xff] }
 0x318   :  { %20094 = vst [vmem:[#allocation74_spill] sm:$0xff] %v18658_v57  ;;  %v7552_v53 = vsel %vm2110_vm2, %v18658_v57, 0.0  ;;  %v20099_v57 = vld [vmem:[#allocation81_spill] sm:$0xff] }
 0x319   :  { %v7403_v36 = vmul.f32 1.442695, %v7285_v3  ;;  %v7401_v44 = vmul.f32 1.442695, %v7284_v61 }
 0x31a   :  { %v7212_v17 = vpop.xlane.xlu0 %7211  ;;  %7547 = vadd.xlane.f32.xlu1 %v7546_v14 }
 0x31b   :  { %16202 = vpow2.f32 %v7403_v36  ;;  %v20097_v36 = vld [vmem:[#allocation80_spill] sm:$0xff] }
 0x31c   :  { %16204 = vpow2.f32 %v7393_v0  ;;  %v7286_v0 = vsub.f32 %v20097_v36, %v7206_v31  ;;  %v20100_v36 = vld [vmem:[#allocation83_spill] sm:$0xff] }
 0x31d   :  { %v18660_v33 = vpop.eup %16196  ;;  %16206 = vpow2.f32 %v7397_v27 }
 0x31e   :  { %20095 = vst [vmem:[#allocation75_spill] sm:$0xff] %v18660_v33  ;;  %v7209_v42 = vpop.xlane.xlu0 %7208  ;;  %v7579_v28 = vsel %vm2110_vm2, %v18660_v33, 0.0  ;;  %v18667_v11 = vpop.eup %16198  ;;  %7553 = vadd.xlane.f32.xlu1 %v7552_v53  ;;  %v7405_v53 = vmul.f32 1.442695, %v7286_v0 }
 0x31f   :  { %v7287_v3 = vsub.f32 %v20096_v18, %v7209_v42  ;;  %7580 = vadd.xlane.f32.xlu0 %v7579_v28  ;;  %v7558_v47 = vsel %vm2110_vm2, %v18667_v11, 0.0  ;;  %v18673_v14 = vpop.eup %16200  ;;  %v7288_v42 = vsub.f32 %v20099_v57, %v7212_v17 }
 0x320   :  { %v7564_v27 = vsel %vm2110_vm2, %v18673_v14, 0.0 }
 0x321   :  { %v7407_v35 = vmul.f32 1.442695, %v7287_v3  ;;  %v7409_v3 = vmul.f32 1.442695, %v7288_v42 }
 0x322   :  { %v7218_v45 = vpop.xlane.xlu0 %7217  ;;  %7559 = vadd.xlane.f32.xlu1 %v7558_v47 }
 0x323   :  { %16208 = vpow2.f32 %v7407_v35 }
 0x324   :  { %16210 = vpow2.f32 %v7401_v44  ;;  %v7290_v44 = vsub.f32 %v20100_v36, %v7218_v45 }
 0x325   :  { %v18675_v33 = vpop.eup %16202  ;;  %16212 = vpow2.f32 %v7405_v53 }
 0x326   :  { %20098 = vst [vmem:[#allocation76_spill] sm:$0xff] %v18675_v33  ;;  %v7215_v61 = vpop.xlane.xlu0 %7214  ;;  %v7585_v31 = vsel %vm2110_vm2, %v18675_v33, 0.0  ;;  %v18682_v28 = vpop.eup %16204  ;;  %7565 = vadd.xlane.f32.xlu1 %v7564_v27 }
 0x327   :  { %v7289_v18 = vsub.f32 %v18353_v52, %v7215_v61  ;;  %7586 = vadd.xlane.f32.xlu0 %v7585_v31  ;;  %v7570_v17 = vsel %vm2110_vm2, %v18682_v28, 0.0  ;;  %v18688_v35 = vpop.eup %16206  ;;  %v7413_v52 = vmul.f32 1.442695, %v7290_v44 }
 0x328   :  { %v7576_v53 = vsel %vm2110_vm2, %v18688_v35, 0.0 }
 0x329   :  { %v7411_v0 = vmul.f32 1.442695, %v7289_v18 }
 0x32a   :  { %v7224_v57 = vpop.xlane.xlu0 %7223  ;;  %7571 = vadd.xlane.f32.xlu1 %v7570_v17 }
 0x32b   :  { %16214 = vpow2.f32 %v7411_v0  ;;  %v7292_v47 = vsub.f32 %v18359_v62, %v7224_v57 }
 0x32c   :  { %16216 = vpow2.f32 %v7409_v3 }
 0x32d   :  { %v18691_v33 = vpop.eup %16208  ;;  %v7417_v18 = vmul.f32 1.442695, %v7292_v47 }
 0x32e   :  { %v7221_v42 = vpop.xlane.xlu0 %7220  ;;  %v7591_v45 = vsel %vm2110_vm2, %v18691_v33, 0.0  ;;  %v18697_v27 = vpop.eup %16210  ;;  %7577 = vadd.xlane.f32.xlu1 %v7576_v53 }
 0x32f   :  { %20101 = vst [vmem:[#allocation77_spill] sm:$0xff] %v18697_v27  ;;  %v7291_v61 = vsub.f32 %v18364_v63, %v7221_v42  ;;  %v7428_v31 = vpop.xlane.xlu1 %7427  ;;  %7592 = vadd.xlane.f32.xlu0 %v7591_v45  ;;  %v7582_v3 = vsel %vm2110_vm2, %v18697_v27, 0.0  ;;  %v18702_v44 = vpop.eup %16212 }
 0x330   :  { %16218 = vrcp.f32 %v7428_v31  ;;  %20102 = vst [vmem:[#allocation79_spill] sm:$0xff] %v18702_v44  ;;  %v7588_v47 = vsel %vm2110_vm2, %v18702_v44, 0.0 }
 0x331   :  { %16220 = vpow2.f32 %v7413_v52  ;;  %v7415_v62 = vmul.f32 1.442695, %v7291_v61 }
 0x332   :  { %v7230_v36 = vpop.xlane.xlu0 %7229  ;;  %7583 = vadd.xlane.f32.xlu1 %v7582_v3 }
 0x333   :  { %16222 = vpow2.f32 %v7415_v62  ;;  %v7294_v0 = vsub.f32 %v18371_v48, %v7230_v36  ;;  %v7425_v17 = vpop.xlane.xlu1 %7424 }
 0x334   :  { %16224 = vpow2.f32 %v7417_v18 }
 0x335   :  { %v18705_v57 = vpop.eup %16214  ;;  %v7421_v63 = vmul.f32 1.442695, %v7294_v0  ;;  %16226 = vrcp.f32 %v7425_v17 }
 0x336   :  { %20103 = vst [vmem:[#allocation82_spill] sm:$0xff] %v18705_v57  ;;  %v7227_v52 = vpop.xlane.xlu0 %7226  ;;  %v7597_v53 = vsel %vm2110_vm2, %v18705_v57, 0.0  ;;  %v18711_v42 = vpop.eup %16216  ;;  %7589 = vadd.xlane.f32.xlu1 %v7588_v47 }
 0x337   :  { %20104 = vst [vmem:[#allocation80_spill] sm:$0xff] %v18711_v42  ;;  %v7293_v45 = vsub.f32 %v18378_v2, %v7227_v52  ;;  %7598 = vadd.xlane.f32.xlu0 %v7597_v53  ;;  %16228 = vpow2.f32 %v7421_v63  ;;  %v7434_v48 = vpop.xlane.xlu1 %7433  ;;  %v7594_v62 = vsel %vm2110_vm2, %v18711_v42, 0.0 }
 0x338   :  { %16230 = vrcp.f32 %v7434_v48 }
 0x339   :  { %v7419_v61 = vmul.f32 1.442695, %v7293_v45 }
 0x33a   :  { %v16219_v18 = vpop.eup %16218  ;;  %7595 = vadd.xlane.f32.xlu1 %v7594_v62 }
 0x33b   :  { %v18716_v3 = vpop.eup %16220  ;;  %v7680_v36 = vmul.f32 %v16219_v18, %v7428_v31  ;;  %16232 = vpow2.f32 %v7419_v61  ;;  %v7431_v0 = vpop.xlane.xlu1 %7430 }
 0x33c   :  { %16234 = vrcp.f32 %v7431_v0  ;;  %v7600_v63 = vsel %vm2110_vm2, %v18716_v3, 0.0 }
 0x33d   :  { %v18718_v57 = vpop.eup %16222  ;;  %v7744_v47 = vsub.f32 2.0, %v7680_v36 }
 0x33e   :  { %v18720_v2 = vpop.eup %16224  ;;  %v7603_v52 = vsel %vm2110_vm2, %v18718_v57, 0.0  ;;  %7601 = vadd.xlane.f32.xlu1 %v7600_v63  ;;  %v20107_v63 = vmov 0.0  }
 0x33f   :  { %v16227_v53 = vpop.eup %16226  ;;  %v7808_v45 = vmul.f32 %v16219_v18, %v7744_v47  ;;  %7604 = vadd.xlane.f32.xlu0 %v7603_v52  ;;  %v7440_v61 = vpop.xlane.xlu1 %7439  ;;  %v7606_v44 = vsel %vm2110_vm2, %v18720_v2, 0.0  ;;  %v20106_v47 = vld [vmem:[#allocation20_spill] sm:$0xff] }
 0x340   :  { %v7679_v31 = vmul.f32 %v16227_v53, %v7425_v17  ;;  %16236 = vrcp.f32 %v7440_v61 }
 0x341   :  { %v7872_v62 = vmul.f32 %v18369_v24, %v7808_v45  ;;  %v18727_v42 = vpop.eup %16228 }
 0x342   :  { %20105 = vst [vmem:[#allocation81_spill] sm:$0xff] %v18727_v42  ;;  %v7743_v36 = vsub.f32 2.0, %v7679_v31  ;;  %v16231_v27 = vpop.eup %16230  ;;  %7607 = vadd.xlane.f32.xlu1 %v7606_v44  ;;  %v7612_v44 = vsel %vm2110_vm2, %v18727_v42, 0.0 }
 0x343   :  { %7936 = vst.msk [vmem:[%s19939_s15 + $0x8] sm:$0xff] %vm2110_vm2, %v7872_v62  ;;  %15614 = vmatmul.mubr.msk.f32.vlgmr.msra.gmra.mrb[160].mxu1 %vm2110_vm2, %v7872_v62  ;;  %v7682_v18 = vmul.f32 %v16231_v27, %v7434_v48  ;;  %v7437_v24 = vpop.xlane.xlu1 %7436 }
 0x344   :  { %v7807_v17 = vmul.f32 %v16227_v53, %v7743_v36  ;;  %15622 = vmatpush3.msra.mxu1 %v20106_v47  ;;  %15623 = vmatprep.mubr.msk.f32.mxu1 %vm16431_vm1, %v20107_v63  ;;  %16238 = vrcp.f32 %v7437_v24 }
 0x345   :  { %v18739_v52 = vpop.eup %16232  ;;  %15631 = vmatprep.subr.mxu1 %v20107_v63  ;;  %v7746_v31 = vsub.f32 2.0, %v7682_v18 }
 0x346   :  { %20108 = vst [vmem:[#allocation83_spill] sm:$0xff] %v18739_v52  ;;  %v7871_v45 = vmul.f32 %v18382_v55, %v7807_v17  ;;  %v7609_v48 = vsel %vm2110_vm2, %v18739_v52, 0.0  ;;  %v16235_v53 = vpop.eup %16234  ;;  %7613 = vadd.xlane.f32.xlu1 %v7612_v44  ;;  %v20109_v55 = vld [vmem:[#allocation22_spill] sm:$0xff]  ;;  %v20119_v52 = vld [vmem:[#allocation36_spill] sm:$0xff] }
 0x347   :  { %7610 = vadd.xlane.f32.xlu0 %v7609_v48  ;;  %v7810_v62 = vmul.f32 %v16231_v27, %v7746_v31  ;;  %v7681_v36 = vmul.f32 %v16235_v53, %v7431_v0  ;;  %v7446_v47 = vpop.xlane.xlu1 %7445  ;;  %v20110_v31 = vld [vmem:[#allocation24_spill] sm:$0xff] }
 0x348   :  { %7935 = vst.msk [vmem:[%s19939_s15] sm:$0xff] %vm2110_vm2, %v7871_v45  ;;  %15609 = vmatmul.mubr.msk.f32.vlgmr.msra.gmra.mrb[160].mxu0 %vm2110_vm2, %v7871_v45  ;;  %16240 = vrcp.f32 %v7446_v47 }
 0x349   :  { %15617 = vmatpush3.msra.mxu0 %v20109_v55  ;;  %15618 = vmatprep.mubr.msk.f32.mxu0 %vm16431_vm1, %v20107_v63  ;;  %v7874_v17 = vmul.f32 %v18387_v9, %v7810_v62  ;;  %v7745_v18 = vsub.f32 2.0, %v7681_v36  ;;  %v20111_v9 = vld [vmem:[#allocation84_spill] sm:$0xff] }
 0x34a   :  { %15626 = vmatprep.subr.mxu0 %v20107_v63  ;;  %v16237_v44 = vpop.eup %16236 }
 0x34b   :  { %7938 = vst.msk [vmem:[%s19939_s15 + $0x18] sm:$0xff] %vm2110_vm2, %v7874_v17  ;;  %v7809_v27 = vmul.f32 %v16235_v53, %v7745_v18  ;;  %v7684_v0 = vmul.f32 %v16237_v44, %v7440_v61  ;;  %15624 = vmatmul.mubr.msk.f32.vlgmr.msra.gmra.mrb[162].mxu1 %vm2110_vm2, %v7874_v17  ;;  %v7443_v45 = vpop.xlane.xlu1 %7442  ;;  %v20112_v17 = vld [vmem:[#allocation26_spill] sm:$0xff]  ;;  %v20113_v18 = vld [vmem:[#allocation85_spill] sm:$0xff] }
 0x34c   :  { %15632 = vmatpush3.msra.mxu1 %v20110_v31  ;;  %16242 = vrcp.f32 %v7443_v45  ;;  %15633 = vmatprep.mubr.msk.f32.mxu1 %vm16431_vm1, %v20107_v63 }
 0x34d   :  { %v7873_v48 = vmul.f32 %v20111_v9, %v7809_v27  ;;  %v7748_v62 = vsub.f32 2.0, %v7684_v0  ;;  %15641 = vmatprep.subr.mxu1 %v20107_v63 }
 0x34e   :  { %v16239_v36 = vpop.eup %16238 }
 0x34f   :  { %7937 = vst.msk [vmem:[%s19939_s15 + $0x10] sm:$0xff] %vm2110_vm2, %v7873_v48  ;;  %v7812_v61 = vmul.f32 %v16237_v44, %v7748_v62  ;;  %v7683_v53 = vmul.f32 %v16239_v36, %v7437_v24  ;;  %v7452_v55 = vpop.xlane.xlu1 %7451  ;;  %15619 = vmatmul.mubr.msk.f32.vlgmr.msra.gmra.mrb[162].mxu0 %vm2110_vm2, %v7873_v48  ;;  %v20114_v48 = vld [vmem:[#allocation28_spill] sm:$0xff]  ;;  %v20115_v62 = vld [vmem:[#allocation86_spill] sm:$0xff] }
 0x350   :  { %16244 = vrcp.f32 %v7452_v55  ;;  %15627 = vmatpush3.msra.mxu0 %v20112_v17  ;;  %15628 = vmatprep.mubr.msk.f32.mxu0 %vm16431_vm1, %v20107_v63 }
 0x351   :  { %v7876_v27 = vmul.f32 %v20113_v18, %v7812_v61  ;;  %v7747_v0 = vsub.f32 2.0, %v7683_v53  ;;  %15636 = vmatprep.subr.mxu0 %v20107_v63 }
 0x352   :  { %v16241_v31 = vpop.eup %16240 }
 0x353   :  { %7940 = vst.msk [vmem:[%s19939_s15 + $0x28] sm:$0xff] %vm2110_vm2, %v7876_v27  ;;  %v7811_v24 = vmul.f32 %v16239_v36, %v7747_v0  ;;  %v7686_v44 = vmul.f32 %v16241_v31, %v7446_v47  ;;  %15634 = vmatmul.mubr.msk.f32.vlgmr.msra.gmra.mrb[164].mxu1 %vm2110_vm2, %v7876_v27  ;;  %v7449_v9 = vpop.xlane.xlu1 %7448  ;;  %v20116_v0 = vld [vmem:[#allocation30_spill] sm:$0xff] }
 0x354   :  { %15642 = vmatpush3.msra.mxu1 %v20114_v48  ;;  %16246 = vrcp.f32 %v7449_v9  ;;  %15643 = vmatprep.mubr.msk.f32.mxu1 %vm16431_vm1, %v20107_v63 }
 0x355   :  { %v7875_v61 = vmul.f32 %v20115_v62, %v7811_v24  ;;  %v7750_v53 = vsub.f32 2.0, %v7686_v44  ;;  %15651 = vmatprep.subr.mxu1 %v20107_v63 }
 0x356   :  { %v16243_v17 = vpop.eup %16242 }
 0x357   :  { %7939 = vst.msk [vmem:[%s19939_s15 + $0x20] sm:$0xff] %vm2110_vm2, %v7875_v61  ;;  %v7814_v47 = vmul.f32 %v16241_v31, %v7750_v53  ;;  %v7685_v36 = vmul.f32 %v16243_v17, %v7443_v45  ;;  %v7458_v18 = vpop.xlane.xlu1 %7457  ;;  %15629 = vmatmul.mubr.msk.f32.vlgmr.msra.gmra.mrb[164].mxu0 %vm2110_vm2, %v7875_v61  ;;  %v20117_v53 = vld [vmem:[#allocation32_spill] sm:$0xff] }
 0x358   :  { %v7485_v27 = vpop.xlane.xlu0 %7484  ;;  %16248 = vrcp.f32 %v7458_v18  ;;  %15637 = vmatpush3.msra.mxu0 %v20116_v0  ;;  %15638 = vmatprep.mubr.msk.f32.mxu0 %vm16431_vm1, %v20107_v63 }
 0x359   :  { %v7878_v24 = vmul.f32 %v18415_v51, %v7814_v47  ;;  %v7749_v44 = vsub.f32 2.0, %v7685_v36  ;;  %16250 = vrcp.f32 %v7485_v27  ;;  %15646 = vmatprep.subr.mxu0 %v20107_v63 }
 0x35a   :  { %v16245_v48 = vpop.eup %16244 }
 0x35b   :  { %7942 = vst.msk [vmem:[%s19939_s15 + $0x38] sm:$0xff] %vm2110_vm2, %v7878_v24  ;;  %v7813_v45 = vmul.f32 %v16243_v17, %v7749_v44  ;;  %v7688_v31 = vmul.f32 %v16245_v48, %v7452_v55  ;;  %15644 = vmatmul.mubr.msk.f32.vlgmr.msra.gmra.mrb[166].mxu1 %vm2110_vm2, %v7878_v24  ;;  %v7455_v62 = vpop.xlane.xlu1 %7454  ;;  %v20118_v44 = vld [vmem:[#allocation34_spill] sm:$0xff] }
 0x35c   :  { %v7491_v61 = vpop.xlane.xlu0 %7490  ;;  %15652 = vmatpush3.msra.mxu1 %v20117_v53  ;;  %16252 = vrcp.f32 %v7455_v62  ;;  %15653 = vmatprep.mubr.msk.f32.mxu1 %vm16431_vm1, %v20107_v63 }
 0x35d   :  { %v7877_v51 = vmul.f32 %v18422_v39, %v7813_v45  ;;  %v7752_v47 = vsub.f32 2.0, %v7688_v31  ;;  %16254 = vrcp.f32 %v7491_v61  ;;  %15661 = vmatprep.subr.mxu1 %v20107_v63 }
 0x35e   :  { %v16247_v36 = vpop.eup %16246 }
 0x35f   :  { %7941 = vst.msk [vmem:[%s19939_s15 + $0x30] sm:$0xff] %vm2110_vm2, %v7877_v51  ;;  %v7816_v55 = vmul.f32 %v16245_v48, %v7752_v47  ;;  %v7687_v17 = vmul.f32 %v16247_v36, %v7449_v9  ;;  %v7464_v0 = vpop.xlane.xlu1 %7463  ;;  %15639 = vmatmul.mubr.msk.f32.vlgmr.msra.gmra.mrb[166].mxu0 %vm2110_vm2, %v7877_v51 }
 0x360   :  { %v7497_v24 = vpop.xlane.xlu0 %7496  ;;  %16256 = vrcp.f32 %v7464_v0  ;;  %15647 = vmatpush3.msra.mxu0 %v20118_v44  ;;  %15648 = vmatprep.mubr.msk.f32.mxu0 %vm16431_vm1, %v20107_v63 }
 0x361   :  { %v7880_v39 = vmul.f32 %v18430_v15, %v7816_v55  ;;  %v7751_v45 = vsub.f32 2.0, %v7687_v17  ;;  %16258 = vrcp.f32 %v7497_v24  ;;  %15656 = vmatprep.subr.mxu0 %v20107_v63 }
 0x362   :  { %v16249_v31 = vpop.eup %16248 }
 0x363   :  { %v16251_v53 = vpop.eup %16250  ;;  %7944 = vst.msk [vmem:[%s19939_s15 + $0x48] sm:$0xff] %vm2110_vm2, %v7880_v39  ;;  %v7815_v9 = vmul.f32 %v16247_v36, %v7751_v45  ;;  %v7690_v48 = vmul.f32 %v16249_v31, %v7458_v18  ;;  %15654 = vmatmul.mubr.msk.f32.vlgmr.msra.gmra.mrb[168].mxu1 %vm2110_vm2, %v7880_v39  ;;  %v7461_v51 = vpop.xlane.xlu1 %7460 }
 0x364   :  { %v7503_v47 = vpop.xlane.xlu0 %7502  ;;  %v7699_v44 = vmul.f32 %v16251_v53, %v7485_v27  ;;  %15662 = vmatpush3.msra.mxu1 %v20119_v52  ;;  %16260 = vrcp.f32 %v7461_v51  ;;  %15663 = vmatprep.mubr.msk.f32.mxu1 %vm16431_vm1, %v20107_v63 }
 0x365   :  { %v7879_v15 = vmul.f32 %v18436_v43, %v7815_v9  ;;  %v7754_v55 = vsub.f32 2.0, %v7690_v48  ;;  %16262 = vrcp.f32 %v7503_v47  ;;  %15671 = vmatprep.subr.mxu1 %v20107_v63  ;;  %v20120_v9 = vld [vmem:[#allocation38_spill] sm:$0xff] }
 0x366   :  { %v16253_v17 = vpop.eup %16252  ;;  %v7763_v36 = vsub.f32 2.0, %v7699_v44 }
 0x367   :  { %v16255_v18 = vpop.eup %16254  ;;  %7943 = vst.msk [vmem:[%s19939_s15 + $0x40] sm:$0xff] %vm2110_vm2, %v7879_v15  ;;  %v7818_v27 = vmul.f32 %v16249_v31, %v7754_v55  ;;  %v7689_v52 = vmul.f32 %v16253_v17, %v7455_v62  ;;  %v7470_v39 = vpop.xlane.xlu1 %7469  ;;  %15649 = vmatmul.mubr.msk.f32.vlgmr.msra.gmra.mrb[168].mxu0 %vm2110_vm2, %v7879_v15 }
 0x368   :  { %v7509_v45 = vpop.xlane.xlu0 %7508  ;;  %v7827_v42 = vmul.f32 %v16251_v53, %v7763_v36  ;;  %v7701_v43 = vmul.f32 %v16255_v18, %v7491_v61  ;;  %16264 = vrcp.f32 %v7470_v39  ;;  %15657 = vmatpush3.msra.mxu0 %v20120_v9  ;;  %15658 = vmatprep.mubr.msk.f32.mxu0 %vm16431_vm1, %v20107_v63 }
 0x369   :  { %v7882_v48 = vmul.f32 %v18444_v19, %v7818_v27  ;;  %v7753_v44 = vsub.f32 2.0, %v7689_v52  ;;  %16266 = vrcp.f32 %v7509_v45  ;;  %15666 = vmatprep.subr.mxu0 %v20107_v63  ;;  %v20121_v27 = vld [vmem:[#allocation40_spill] sm:$0xff] }
 0x36a   :  { %v16257_v31 = vpop.eup %16256  ;;  %v18838_v62 = vmul.f32 %v18447_v8, %v7827_v42  ;;  %v7765_v15 = vsub.f32 2.0, %v7701_v43 }
 0x36b   :  { %v16259_v55 = vpop.eup %16258  ;;  %7946 = vst.msk [vmem:[%s19939_s15 + $0x58] sm:$0xff] %vm2110_vm2, %v7882_v48  ;;  %v7817_v61 = vmul.f32 %v16253_v17, %v7753_v44  ;;  %v7692_v53 = vmul.f32 %v16257_v31, %v7464_v0  ;;  %15664 = vmatmul.mubr.msk.f32.vlgmr.msra.gmra.mrb[170].mxu1 %vm2110_vm2, %v7882_v48  ;;  %v7467_v19 = vpop.xlane.xlu1 %7466 }
 0x36c   :  { %v18845_v36 = vpop.xlane.xlu0 %7514  ;;  %7955 = vst.msk [vmem:[%s19939_s15 + $0xa0] sm:$0xff] %vm2110_vm2, %v18838_v62  ;;  %v7829_v8 = vmul.f32 %v16255_v18, %v7765_v15  ;;  %v7703_v42 = vmul.f32 %v16259_v55, %v7497_v24  ;;  %15672 = vmatpush3.msra.mxu1 %v20121_v27  ;;  %16268 = vrcp.f32 %v7467_v19  ;;  %15673 = vmatprep.mubr.msk.f32.mxu1 %vm16431_vm1, %v20107_v63 }
 0x36d   :  { %v7881_v0 = vmul.f32 %v18457_v29, %v7817_v61  ;;  %v7756_v17 = vsub.f32 2.0, %v7692_v53  ;;  %16270 = vrcp.f32 %v18845_v36  ;;  %15681 = vmatprep.subr.mxu1 %v20107_v63  ;;  %v20122_v61 = vld [vmem:[#allocation42_spill] sm:$0xff] }
 0x36e   :  { %v16261_v52 = vpop.eup %16260  ;;  %v18859_v43 = vmul.f32 %v18460_v54, %v7829_v8  ;;  %v7767_v9 = vsub.f32 2.0, %v7703_v42 }
 0x36f   :  { %v16263_v18 = vpop.eup %16262  ;;  %7945 = vst.msk [vmem:[%s19939_s15 + $0x50] sm:$0xff] %vm2110_vm2, %v7881_v0  ;;  %v7820_v24 = vmul.f32 %v16257_v31, %v7756_v17  ;;  %v7691_v48 = vmul.f32 %v16261_v52, %v7461_v51  ;;  %v7476_v44 = vpop.xlane.xlu1 %7475  ;;  %15659 = vmatmul.mubr.msk.f32.vlgmr.msra.gmra.mrb[170].mxu0 %vm2110_vm2, %v7881_v0 }
 0x370   :  { %v18866_v29 = vpop.xlane.xlu0 %7520  ;;  %7957 = vst.msk [vmem:[%s19939_s15 + $0xb0] sm:$0xff] %vm2110_vm2, %v18859_v43  ;;  %v7831_v54 = vmul.f32 %v16259_v55, %v7767_v9  ;;  %v7705_v15 = vmul.f32 %v16263_v18, %v7503_v47  ;;  %16272 = vrcp.f32 %v7476_v44  ;;  %15667 = vmatpush3.msra.mxu0 %v20122_v61  ;;  %15668 = vmatprep.mubr.msk.f32.mxu0 %vm16431_vm1, %v20107_v63  ;;  %v20123_v9 = vld [vmem:[#allocation44_spill] sm:$0xff] }
 0x371   :  { %v7884_v51 = vmul.f32 %v18468_v49, %v7820_v24  ;;  %v7755_v31 = vsub.f32 2.0, %v7691_v48  ;;  %16274 = vrcp.f32 %v18866_v29  ;;  %15676 = vmatprep.subr.mxu0 %v20107_v63 }
 0x372   :  { %v16265_v53 = vpop.eup %16264  ;;  %v18880_v8 = vmul.f32 %v18473_v21, %v7831_v54  ;;  %v7769_v42 = vsub.f32 2.0, %v7705_v15 }
 0x373   :  { %v16267_v55 = vpop.eup %16266  ;;  %7948 = vst.msk [vmem:[%s19939_s15 + $0x68] sm:$0xff] %vm2110_vm2, %v7884_v51  ;;  %v7819_v47 = vmul.f32 %v16261_v52, %v7755_v31  ;;  %v7694_v27 = vmul.f32 %v16265_v53, %v7470_v39  ;;  %15674 = vmatmul.mubr.msk.f32.vlgmr.msra.gmra.mrb[172].mxu1 %vm2110_vm2, %v7884_v51  ;;  %v7473_v49 = vpop.xlane.xlu1 %7472 }
 0x374   :  { %v18887_v0 = vpop.xlane.xlu0 %7526  ;;  %7959 = vst.msk [vmem:[%s19939_s15 + $0xc0] sm:$0xff] %vm2110_vm2, %v18880_v8  ;;  %v7833_v21 = vmul.f32 %v16263_v18, %v7769_v42  ;;  %v7707_v17 = vmul.f32 %v16267_v55, %v7509_v45  ;;  %15682 = vmatpush3.msra.mxu1 %v20123_v9  ;;  %16276 = vrcp.f32 %v7473_v49  ;;  %15683 = vmatprep.mubr.msk.f32.mxu1 %vm16431_vm1, %v20107_v63  ;;  %v18906_v45 = vld [vmem:[%s19930_s6 + $0x8] sm:$0xff]  ;;  %v20124_v42 = vld [vmem:[#allocation46_spill] sm:$0xff] }
 0x375   :  { %v7883_v39 = vmul.f32 %v18481_v7, %v7819_v47  ;;  %v7758_v52 = vsub.f32 2.0, %v7694_v27  ;;  %16278 = vrcp.f32 %v18887_v0  ;;  %15691 = vmatprep.subr.mxu1 %v20107_v63  ;;  %v20125_v27 = vld [vmem:[#allocation21_spill] sm:$0xff] }
 0x376   :  { %v16269_v24 = vpop.eup %16268  ;;  %v18901_v48 = vmul.f32 %v18484_v20, %v7833_v21  ;;  %v7771_v54 = vsub.f32 2.0, %v7707_v17  ;;  %v2063_v21 = vadd.f32 %v20125_v27, %v18906_v45 }
 0x377   :  { %v16271_v18 = vpop.eup %16270  ;;  %7947 = vst.msk [vmem:[%s19939_s15 + $0x60] sm:$0xff] %vm2110_vm2, %v7883_v39  ;;  %v7822_v7 = vmul.f32 %v16265_v53, %v7758_v52  ;;  %v7693_v15 = vmul.f32 %v16269_v24, %v7467_v19  ;;  %v7479_v61 = vpop.xlane.xlu1 %7478  ;;  %15669 = vmatmul.mubr.msk.f32.vlgmr.msra.gmra.mrb[172].mxu0 %vm2110_vm2, %v7883_v39 }
 0x378   :  { %v18913_v51 = vpop.xlane.xlu0 %7532  ;;  %7961 = vst.msk [vmem:[%s19939_s15 + $0xd0] sm:$0xff] %vm2110_vm2, %v18901_v48  ;;  %v7835_v20 = vmul.f32 %v16267_v55, %v7771_v54  ;;  %v7709_v31 = vmul.f32 %v16271_v18, %v18845_v36  ;;  %16280 = vrcp.f32 %v7479_v61  ;;  %15677 = vmatpush3.msra.mxu0 %v20124_v42  ;;  %15678 = vmatprep.mubr.msk.f32.mxu0 %vm16431_vm1, %v20107_v63 }
 0x379   :  { %v7886_v19 = vmul.f32 %v18494_v22, %v7822_v7  ;;  %v7757_v53 = vsub.f32 2.0, %v7693_v15  ;;  %16282 = vrcp.f32 %v18913_v51  ;;  %15686 = vmatprep.subr.mxu0 %v20107_v63  ;;  %v20126_v15 = vld [vmem:[#allocation23_spill] sm:$0xff] }
 0x37a   :  { %v16273_v47 = vpop.eup %16272  ;;  %v18930_v55 = vmul.f32 %v18497_v12, %v7835_v20  ;;  %v7773_v36 = vsub.f32 2.0, %v7709_v31  ;;  %v2062_v20 = vadd.f32 %v18906_v45, %v20126_v15 }
 0x37b   :  { %v16275_v17 = vpop.eup %16274  ;;  %7950 = vst.msk [vmem:[%s19939_s15 + $0x78] sm:$0xff] %vm2110_vm2, %v7886_v19  ;;  %v7821_v22 = vmul.f32 %v16269_v24, %v7757_v53  ;;  %v7696_v9 = vmul.f32 %v16273_v47, %v7476_v44  ;;  %15684 = vmatmul.mubr.msk.f32.vlgmr.msra.gmra.mrb[174].mxu1 %vm2110_vm2, %v7886_v19  ;;  %v7482_v39 = vpop.xlane.xlu1 %7481 }
 0x37c   :  { %v18937_v52 = vpop.xlane.xlu0 %7538  ;;  %7963 = vst.msk [vmem:[%s19939_s15 + $0xe0] sm:$0xff] %vm2110_vm2, %v18930_v55  ;;  %v7837_v12 = vmul.f32 %v16271_v18, %v7773_v36  ;;  %v7711_v54 = vmul.f32 %v16275_v17, %v18866_v29  ;;  %15692 = vmatpush3.msra.mxu1 %v2063_v21  ;;  %16284 = vrcp.f32 %v7482_v39  ;;  %15693 = vmatprep.mubr.msk.f32.mxu1 %vm16431_vm1, %v20107_v63  ;;  %v20127_v36 = vld [vmem:[#allocation25_spill] sm:$0xff] }
 0x37d   :  { %v7885_v44 = vmul.f32 %v18505_v46, %v7821_v22  ;;  %v7760_v24 = vsub.f32 2.0, %v7696_v9  ;;  %16286 = vrcp.f32 %v18937_v52  ;;  %15701 = vmatprep.subr.mxu1 %v20107_v63  ;;  %v2065_v22 = vadd.f32 %v20127_v36, %v18906_v45 }
 0x37e   :  { %v16277_v7 = vpop.eup %16276  ;;  %v18953_v18 = vmul.f32 %v18510_v30, %v7837_v12  ;;  %v7775_v29 = vsub.f32 2.0, %v7711_v54 }
 0x37f   :  { %v16279_v31 = vpop.eup %16278  ;;  %7949 = vst.msk [vmem:[%s19939_s15 + $0x70] sm:$0xff] %vm2110_vm2, %v7885_v44  ;;  %v7824_v46 = vmul.f32 %v16273_v47, %v7760_v24  ;;  %v7695_v42 = vmul.f32 %v16277_v7, %v7473_v49  ;;  %v7488_v19 = vpop.xlane.xlu1 %7487  ;;  %15679 = vmatmul.mubr.msk.f32.vlgmr.msra.gmra.mrb[174].mxu0 %vm2110_vm2, %v7885_v44 }
 0x380   :  { %v18960_v53 = vpop.xlane.xlu0 %7544  ;;  %7965 = vst.msk [vmem:[%s19939_s15 + $0xf0] sm:$0xff] %vm2110_vm2, %v18953_v18  ;;  %v7839_v30 = vmul.f32 %v16275_v17, %v7775_v29  ;;  %v7713_v27 = vmul.f32 %v16279_v31, %v18887_v0  ;;  %16288 = vrcp.f32 %v7488_v19  ;;  %15687 = vmatpush3.msra.mxu0 %v2062_v20  ;;  %15688 = vmatprep.mubr.msk.f32.mxu0 %vm16431_vm1, %v20107_v63  ;;  %v20128_v20 = vld [vmem:[#allocation27_spill] sm:$0xff] }
 0x381   :  { %v7888_v49 = vmul.f32 %v18518_v23, %v7824_v46  ;;  %v7759_v47 = vsub.f32 2.0, %v7695_v42  ;;  %16290 = vrcp.f32 %v18960_v53  ;;  %15696 = vmatprep.subr.mxu0 %v20107_v63  ;;  %v2064_v29 = vadd.f32 %v18906_v45, %v20128_v20  ;;  %v20131_v20 = vld [vmem:[#allocation35_spill] sm:$0xff] }
 0x382   :  { %v16281_v21 = vpop.eup %16280  ;;  %v18976_v17 = vmul.f32 %v18521_v59, %v7839_v30  ;;  %v7777_v0 = vsub.f32 2.0, %v7713_v27 }
 0x383   :  { %v16283_v9 = vpop.eup %16282  ;;  %7952 = vst.msk [vmem:[%s19939_s15 + $0x88] sm:$0xff] %vm2110_vm2, %v7888_v49  ;;  %v7823_v23 = vmul.f32 %v16277_v7, %v7759_v47  ;;  %v7697_v12 = vmul.f32 %v16281_v21, %v7479_v61  ;;  %15694 = vmatmul.mubr.msk.f32.vlgmr.msra.gmra.mrb[176].mxu1 %vm2110_vm2, %v7888_v49  ;;  %v7494_v54 = vpop.xlane.xlu1 %7493 }
 0x384   :  { %v18983_v44 = vpop.xlane.xlu0 %7550  ;;  %7967 = vst.msk [vmem:[%s19939_s15 + $0x100] sm:$0xff] %vm2110_vm2, %v18976_v17  ;;  %v7841_v59 = vmul.f32 %v16279_v31, %v7777_v0  ;;  %v7715_v24 = vmul.f32 %v16283_v9, %v18913_v51  ;;  %15702 = vmatpush3.msra.mxu1 %v2065_v22  ;;  %16292 = vrcp.f32 %v7494_v54  ;;  %15703 = vmatprep.mubr.msk.f32.mxu1 %vm16431_vm1, %v20107_v63 }
 0x385   :  { %v7887_v61 = vmul.f32 %v18529_v32, %v7823_v23  ;;  %v7761_v7 = vsub.f32 2.0, %v7697_v12  ;;  %16294 = vrcp.f32 %v18983_v44  ;;  %15711 = vmatprep.subr.mxu1 %v20107_v63 }
 0x386   :  { %v16285_v15 = vpop.eup %16284  ;;  %v18999_v31 = vmul.f32 %v18532_v5, %v7841_v59  ;;  %v7779_v51 = vsub.f32 2.0, %v7715_v24 }
 0x387   :  { %v16287_v46 = vpop.eup %16286  ;;  %7951 = vst.msk [vmem:[%s19939_s15 + $0x80] sm:$0xff] %vm2110_vm2, %v7887_v61  ;;  %v7825_v32 = vmul.f32 %v16281_v21, %v7761_v7  ;;  %v7698_v42 = vmul.f32 %v16285_v15, %v7482_v39  ;;  %v19005_v30 = vpop.xlane.xlu1 %7499  ;;  %15689 = vmatmul.mubr.msk.f32.vlgmr.msra.gmra.mrb[176].mxu0 %vm2110_vm2, %v7887_v61  ;;  %v20129_v21 = vld [vmem:[#allocation31_spill] sm:$0xff]  ;;  %v20130_v7 = vld [vmem:[#allocation29_spill] sm:$0xff] }
 0x388   :  { %7969 = vst.msk [vmem:[%s19939_s15 + $0x110] sm:$0xff] %vm2110_vm2, %v18999_v31  ;;  %v7843_v5 = vmul.f32 %v16283_v9, %v7779_v51  ;;  %v7717_v27 = vmul.f32 %v16287_v46, %v18937_v52  ;;  %16296 = vrcp.f32 %v19005_v30  ;;  %15697 = vmatpush3.msra.mxu0 %v2064_v29  ;;  %15698 = vmatprep.mubr.msk.f32.mxu0 %vm16431_vm1, %v20107_v63 }
 0x389   :  { %v7889_v39 = vmul.f32 %v18540_v60, %v7825_v32  ;;  %v7762_v49 = vsub.f32 2.0, %v7698_v42  ;;  %15706 = vmatprep.subr.mxu0 %v20107_v63  ;;  %v2066_v36 = vadd.f32 %v18906_v45, %v20129_v21 }
 0x38a   :  { %v16289_v47 = vpop.eup %16288  ;;  %v19022_v22 = vmul.f32 %v18543_v41, %v7843_v5  ;;  %v7781_v0 = vsub.f32 2.0, %v7717_v27 }
 0x38b   :  { %v16291_v52 = vpop.eup %16290  ;;  %7953 = vst.msk [vmem:[%s19939_s15 + $0x90] sm:$0xff] %vm2110_vm2, %v7889_v39  ;;  %v7826_v9 = vmul.f32 %v16285_v15, %v7762_v49  ;;  %v7700_v23 = vmul.f32 %v16289_v47, %v7488_v19  ;;  %v19028_v60 = vpop.xlane.xlu1 %7505  ;;  %15699 = vmatmul.mubr.msk.f32.vlgmr.msra.gmra.mrb[178].mxu0 %vm2110_vm2, %v7889_v39  ;;  %v2067_v15 = vadd.f32 %v20130_v7, %v18906_v45  ;;  %v20132_v39 = vld [vmem:[#allocation33_spill] sm:$0xff] }
 0x38c   :  { %v19031_v12 = vpop.xlane.xlu0 %7556  ;;  %7971 = vst.msk [vmem:[%s19939_s15 + $0x120] sm:$0xff] %vm2110_vm2, %v19022_v22  ;;  %v7845_v41 = vmul.f32 %v16287_v46, %v7781_v0  ;;  %v7719_v59 = vmul.f32 %v16291_v52, %v18960_v53  ;;  %16298 = vrcp.f32 %v19028_v60  ;;  %15707 = vmatpush3.msra.mxu0 %v2066_v36  ;;  %15708 = vmatprep.mubr.msk.f32.mxu0 %vm16431_vm1, %v20107_v63 }
 0x38d   :  { %v7890_v19 = vmul.f32 %v18553_v13, %v7826_v9  ;;  %v7764_v24 = vsub.f32 2.0, %v7700_v23  ;;  %16300 = vrcp.f32 %v19031_v12  ;;  %15716 = vmatprep.subr.mxu0 %v20107_v63  ;;  %v2068_v53 = vadd.f32 %v18906_v45, %v20131_v20 }
 0x38e   :  { %v16293_v61 = vpop.eup %16292  ;;  %v19050_v29 = vmul.f32 %v18555_v34, %v7845_v41  ;;  %v7783_v51 = vsub.f32 2.0, %v7719_v59  ;;  %v2069_v49 = vadd.f32 %v20132_v39, %v18906_v45  ;;  %v20134_v41 = vld [vmem:[#allocation37_spill] sm:$0xff] }
 0x38f   :  { %v16295_v46 = vpop.eup %16294  ;;  %7954 = vst.msk [vmem:[%s19939_s15 + $0x98] sm:$0xff] %vm2110_vm2, %v7890_v19  ;;  %v7828_v13 = vmul.f32 %v16289_v47, %v7764_v24  ;;  %v7702_v32 = vmul.f32 %v16293_v61, %v7494_v54  ;;  %15704 = vmatmul.mubr.msk.f32.vlgmr.msra.gmra.mrb[178].mxu1 %vm2110_vm2, %v7890_v19  ;;  %v19057_v42 = vpop.xlane.xlu1 %7511  ;;  %15709 = vmatmul.mubr.msk.f32.vlgmr.msra.gmra.mrb[180].mxu0 %vm2110_vm2, %v18838_v62  ;;  %v20133_v47 = vld [vmem:[#allocation39_spill] sm:$0xff] }
 0x390   :  { %7973 = vst.msk [vmem:[%s19939_s15 + $0x130] sm:$0xff] %vm2110_vm2, %v19050_v29  ;;  %v7847_v34 = vmul.f32 %v16291_v52, %v7783_v51  ;;  %v7721_v5 = vmul.f32 %v16295_v46, %v18983_v44  ;;  %15712 = vmatpush3.msra.mxu1 %v2067_v15  ;;  %16302 = vrcp.f32 %v19057_v42  ;;  %15717 = vmatpush3.msra.mxu0 %v2068_v53  ;;  %v20135_v19 = vld [vmem:[#allocation43_spill] sm:$0xff]  ;;  %v20136_v51 = vld [vmem:[#allocation41_spill] sm:$0xff] }
 0x391   :  { %v7892_v54 = vmul.f32 %v18563_v40, %v7828_v13  ;;  %v7766_v27 = vsub.f32 2.0, %v7702_v32  ;;  %15713 = vmatprep.mubr.msk.f32.mxu1 %vm16431_vm1, %v20107_v63  ;;  %15718 = vmatprep.mubr.msk.f32.mxu0 %vm16431_vm1, %v20107_v63  ;;  %v2070_v44 = vadd.f32 %v18906_v45, %v20133_v47  ;;  %v2071_v59 = vadd.f32 %v20134_v41, %v18906_v45  ;;  %v20137_v13 = vld [vmem:[#allocation47_spill] sm:$0xff] }
 0x392   :  { %v16297_v62 = vpop.eup %16296  ;;  %v19078_v21 = vmul.f32 %v18566_v50, %v7847_v34  ;;  %v7785_v36 = vsub.f32 2.0, %v7721_v5  ;;  %15721 = vmatprep.subr.mxu1 %v20107_v63  ;;  %15726 = vmatprep.subr.mxu0 %v20107_v63  ;;  %v2072_v24 = vadd.f32 %v18906_v45, %v20135_v19  ;;  %v20139_v47 = vld [vmem:[#allocation51_spill] sm:$0xff] }
 0x393   :  { %7956 = vst.msk [vmem:[%s19939_s15 + $0xa8] sm:$0xff] %vm2110_vm2, %v7892_v54  ;;  %v7830_v40 = vmul.f32 %v16293_v61, %v7766_v27  ;;  %v7704_v0 = vmul.f32 %v16297_v62, %v19005_v30  ;;  %15714 = vmatmul.mubr.msk.f32.vlgmr.msra.gmra.mrb[180].mxu1 %vm2110_vm2, %v7892_v54  ;;  %v19088_v52 = vpop.xlane.xlu1 %7517  ;;  %15719 = vmatmul.mubr.msk.f32.vlgmr.msra.gmra.mrb[182].mxu0 %vm2110_vm2, %v18859_v43 }
 0x394   :  { %v19092_v50 = vpop.xlane.xlu0 %7562  ;;  %7975 = vst.msk [vmem:[%s19939_s15 + $0x140] sm:$0xff] %vm2110_vm2, %v19078_v21  ;;  %v7849_v9 = vmul.f32 %v16295_v46, %v7785_v36  ;;  %15722 = vmatpush3.msra.mxu1 %v2069_v49  ;;  %16304 = vrcp.f32 %v19088_v52  ;;  %15727 = vmatpush3.msra.mxu0 %v2070_v44  ;;  %v2073_v46 = vadd.f32 %v20136_v51, %v18906_v45 }
 0x395   :  { %v7894_v30 = vmul.f32 %v18575_v1, %v7830_v40  ;;  %v7768_v23 = vsub.f32 2.0, %v7704_v0  ;;  %16306 = vrcp.f32 %v19092_v50  ;;  %15723 = vmatprep.mubr.msk.f32.mxu1 %vm16431_vm1, %v20107_v63  ;;  %15728 = vmatprep.mubr.msk.f32.mxu0 %vm16431_vm1, %v20107_v63  ;;  %v2076_v44 = vadd.f32 %v18906_v45, %v20139_v47  ;;  %v19174_v40 = vld [vmem:[%s19930_s6 + $0x10] sm:$0xff] }
 0x396   :  { %v16299_v43 = vpop.eup %16298  ;;  %v19111_v61 = vmul.f32 %v18577_v6, %v7849_v9  ;;  %15731 = vmatprep.subr.mxu1 %v20107_v63  ;;  %15736 = vmatprep.subr.mxu0 %v20107_v63 }
 0x397   :  { %v16301_v1 = vpop.eup %16300  ;;  %7958 = vst.msk [vmem:[%s19939_s15 + $0xb8] sm:$0xff] %vm2110_vm2, %v7894_v30  ;;  %v7832_v7 = vmul.f32 %v16297_v62, %v7768_v23  ;;  %v7706_v15 = vmul.f32 %v16299_v43, %v19028_v60  ;;  %15724 = vmatmul.mubr.msk.f32.vlgmr.msra.gmra.mrb[182].mxu1 %vm2110_vm2, %v7894_v30  ;;  %v19121_v20 = vpop.xlane.xlu1 %7523  ;;  %15729 = vmatmul.mubr.msk.f32.vlgmr.msra.gmra.mrb[184].mxu0 %vm2110_vm2, %v18880_v8 }
 0x398   :  { %7977 = vst.msk [vmem:[%s19939_s15 + $0x150] sm:$0xff] %vm2110_vm2, %v19111_v61  ;;  %v7723_v6 = vmul.f32 %v16301_v1, %v19031_v12  ;;  %15732 = vmatpush3.msra.mxu1 %v2071_v59  ;;  %16308 = vrcp.f32 %v19121_v20  ;;  %15737 = vmatpush3.msra.mxu0 %v2072_v24  ;;  %v2074_v12 = vadd.f32 %v18906_v45, %v20137_v13  ;;  %v20141_v59 = vld [vmem:[#allocation49_spill] sm:$0xff] }
 0x399   :  { %v7896_v60 = vmul.f32 %v18584_v37, %v7832_v7  ;;  %v7770_v53 = vsub.f32 2.0, %v7706_v15  ;;  %15733 = vmatprep.mubr.msk.f32.mxu1 %vm16431_vm1, %v20107_v63  ;;  %15738 = vmatprep.mubr.msk.f32.mxu0 %vm16431_vm1, %v20107_v63  ;;  %v20142_v15 = vld [vmem:[#allocation71_spill] sm:$0xff] }
 0x39a   :  { %v16303_v8 = vpop.eup %16302  ;;  %v7787_v32 = vsub.f32 2.0, %v7723_v6  ;;  %15741 = vmatprep.subr.mxu1 %v20107_v63  ;;  %15746 = vmatprep.subr.mxu0 %v20107_v63 }
 0x39b   :  { %7960 = vst.msk [vmem:[%s19939_s15 + $0xc8] sm:$0xff] %vm2110_vm2, %v7896_v60  ;;  %v7834_v37 = vmul.f32 %v16299_v43, %v7770_v53  ;;  %v7708_v34 = vmul.f32 %v16303_v8, %v19057_v42  ;;  %15734 = vmatmul.mubr.msk.f32.vlgmr.msra.gmra.mrb[184].mxu1 %vm2110_vm2, %v7896_v60  ;;  %v19149_v5 = vpop.xlane.xlu1 %7529  ;;  %15739 = vmatmul.mubr.msk.f32.vlgmr.msra.gmra.mrb[186].mxu0 %vm2110_vm2, %v18901_v48  ;;  %v20138_v48 = vld [vmem:[#allocation45_spill] sm:$0xff]  ;;  %v20140_v43 = vld [vmem:[#allocation50_spill] sm:$0xff] }
 0x39c   :  { %v19153_v54 = vpop.xlane.xlu0 %7568  ;;  %v7851_v27 = vmul.f32 %v16301_v1, %v7787_v32  ;;  %15742 = vmatpush3.msra.mxu1 %v2073_v46  ;;  %16310 = vrcp.f32 %v19149_v5  ;;  %15747 = vmatpush3.msra.mxu0 %v2074_v12  ;;  %v2075_v49 = vadd.f32 %v20138_v48, %v18906_v45  ;;  %v2077_v41 = vadd.f32 %v20140_v43, %v18906_v45  ;;  %v20145_v46 = vld [vmem:[#allocation78_spill] sm:$0xff]  ;;  %v20147_v48 = vld [vmem:[#allocation57_spill] sm:$0xff]  ;;  %v20150_v43 = vld [vmem:[#allocation72_spill] sm:$0xff] }
 0x39d   :  { %v7898_v62 = vmul.f32 %v18592_v58, %v7834_v37  ;;  %v7772_v39 = vsub.f32 2.0, %v7708_v34  ;;  %16312 = vrcp.f32 %v19153_v54  ;;  %15743 = vmatprep.mubr.msk.f32.mxu1 %vm16431_vm1, %v20107_v63  ;;  %15748 = vmatprep.mubr.msk.f32.mxu0 %vm16431_vm1, %v20107_v63 }
 0x39e   :  { %v16305_v42 = vpop.eup %16304  ;;  %v19167_v36 = vmul.f32 %v18594_v4, %v7851_v27  ;;  %15751 = vmatprep.subr.mxu1 %v20107_v63  ;;  %15756 = vmatprep.subr.mxu0 %v20107_v63 }
 0x39f   :  { %v16307_v58 = vpop.eup %16306  ;;  %7962 = vst.msk [vmem:[%s19939_s15 + $0xd8] sm:$0xff] %vm2110_vm2, %v7898_v62  ;;  %v7836_v0 = vmul.f32 %v16303_v8, %v7772_v39  ;;  %v7710_v9 = vmul.f32 %v16305_v42, %v19088_v52  ;;  %15744 = vmatmul.mubr.msk.f32.vlgmr.msra.gmra.mrb[186].mxu1 %vm2110_vm2, %v7898_v62  ;;  %v19182_v4 = vpop.xlane.xlu1 %7535  ;;  %15749 = vmatmul.mubr.msk.f32.vlgmr.msra.gmra.mrb[188].mxu0 %vm2110_vm2, %v18930_v55  ;;  %v20144_v8 = vld [vmem:[#allocation53_spill] sm:$0xff]  ;;  %v20146_v39 = vld [vmem:[#allocation52_spill] sm:$0xff] }
 0x3a0   :  { %7979 = vst.msk [vmem:[%s19939_s15 + $0x160] sm:$0xff] %vm2110_vm2, %v19167_v36  ;;  %v7725_v30 = vmul.f32 %v16307_v58, %v19092_v50  ;;  %15752 = vmatpush3.msra.mxu1 %v2075_v49  ;;  %16314 = vrcp.f32 %v19182_v4  ;;  %15757 = vmatpush3.msra.mxu0 %v2076_v44  ;;  %v2078_v50 = vadd.f32 %v19174_v40, %v20141_v59 }
 0x3a1   :  { %v7900_v52 = vmul.f32 %v18601_v10, %v7836_v0  ;;  %v7774_v23 = vsub.f32 2.0, %v7710_v9  ;;  %15753 = vmatprep.mubr.msk.f32.mxu1 %vm16431_vm1, %v20107_v63  ;;  %15758 = vmatprep.mubr.msk.f32.mxu0 %vm16431_vm1, %v20107_v63  ;;  %v2080_v51 = vadd.f32 %v19174_v40, %v20144_v8 }
 0x3a2   :  { %v16309_v55 = vpop.eup %16308  ;;  %v7789_v19 = vsub.f32 2.0, %v7725_v30  ;;  %15761 = vmatprep.subr.mxu1 %v20107_v63  ;;  %15766 = vmatprep.subr.mxu0 %v20107_v63 }
 0x3a3   :  { %7964 = vst.msk [vmem:[%s19939_s15 + $0xe8] sm:$0xff] %vm2110_vm2, %v7900_v52  ;;  %v7838_v10 = vmul.f32 %v16305_v42, %v7774_v23  ;;  %v7712_v24 = vmul.f32 %v16309_v55, %v19121_v20  ;;  %15754 = vmatmul.mubr.msk.f32.vlgmr.msra.gmra.mrb[188].mxu1 %vm2110_vm2, %v7900_v52  ;;  %v19210_v1 = vpop.xlane.xlu1 %7541  ;;  %15759 = vmatmul.mubr.msk.f32.vlgmr.msra.gmra.mrb[190].mxu0 %vm2110_vm2, %v18953_v18  ;;  %v20143_v18 = vld [vmem:[#allocation48_spill] sm:$0xff]  ;;  %v20149_v23 = vld [vmem:[#allocation10_spill] sm:$0xff] }
 0x3a4   :  { %v19214_v45 = vpop.xlane.xlu0 %7574  ;;  %v7853_v7 = vmul.f32 %v16307_v58, %v7789_v19  ;;  %15762 = vmatpush3.msra.mxu1 %v2077_v41  ;;  %16316 = vrcp.f32 %v19210_v1  ;;  %15767 = vmatpush3.msra.mxu0 %v2078_v50  ;;  %v2079_v53 = vadd.f32 %v20143_v18, %v19174_v40  ;;  %v2081_v42 = vadd.f32 %v20146_v39, %v19174_v40 }
 0x3a5   :  { %v7902_v6 = vmul.f32 %v20142_v15, %v7838_v10  ;;  %v7776_v60 = vsub.f32 2.0, %v7712_v24  ;;  %16318 = vrcp.f32 %v19214_v45  ;;  %15763 = vmatprep.mubr.msk.f32.mxu1 %vm16431_vm1, %v20107_v63  ;;  %15768 = vmatprep.mubr.msk.f32.mxu0 %vm16431_vm1, %v20107_v63 }
 0x3a6   :  { %v16311_v20 = vpop.eup %16310  ;;  %v19228_v13 = vmul.f32 %v20145_v46, %v7853_v7  ;;  %15771 = vmatprep.subr.mxu1 %v20107_v63  ;;  %15776 = vmatprep.subr.mxu0 %v20107_v63  ;;  %v20151_v7 = vld [vmem:[#allocation9_spill] sm:$0xff] }
 0x3a7   :  { %v16313_v12 = vpop.eup %16312  ;;  %7966 = vst.msk [vmem:[%s19939_s15 + $0xf8] sm:$0xff] %vm2110_vm2, %v7902_v6  ;;  %v7840_v32 = vmul.f32 %v16309_v55, %v7776_v60  ;;  %v7714_v37 = vmul.f32 %v16311_v20, %v19149_v5  ;;  %15764 = vmatmul.mubr.msk.f32.vlgmr.msra.gmra.mrb[190].mxu1 %vm2110_vm2, %v7902_v6  ;;  %v19238_v34 = vpop.xlane.xlu1 %7547  ;;  %15769 = vmatmul.mubr.msk.f32.vlgmr.msra.gmra.mrb[192].mxu0 %vm2110_vm2, %v18976_v17  ;;  %v20152_v6 = vld [vmem:[#allocation12_spill] sm:$0xff] }
 0x3a8   :  { %7981 = vst.msk [vmem:[%s19939_s15 + $0x170] sm:$0xff] %vm2110_vm2, %v19228_v13  ;;  %v7727_v27 = vmul.f32 %v16313_v12, %v19153_v54  ;;  %15772 = vmatpush3.msra.mxu1 %v2079_v53  ;;  %16320 = vrcp.f32 %v19238_v34  ;;  %15777 = vmatpush3.msra.mxu0 %v2080_v51  ;;  %v2082_v54 = vadd.f32 %v19174_v40, %v20147_v48 }
 0x3a9   :  { %v7904_v5 = vmul.f32 %v18618_v56, %v7840_v32  ;;  %v7778_v62 = vsub.f32 2.0, %v7714_v37  ;;  %15773 = vmatprep.mubr.msk.f32.mxu1 %vm16431_vm1, %v20107_v63  ;;  %15778 = vmatprep.mubr.msk.f32.mxu0 %vm16431_vm1, %v20107_v63  ;;  %v2084_v55 = vadd.f32 %v19174_v40, %v20149_v23  ;;  %v2085_v15 = vadd.f32 %v20151_v7, %v19174_v40  ;;  %v20154_v37 = vld [vmem:[#allocation14_spill] sm:$0xff] }
 0x3aa   :  { %v16315_v17 = vpop.eup %16314  ;;  %v7791_v49 = vsub.f32 2.0, %v7727_v27  ;;  %15781 = vmatprep.subr.mxu1 %v20107_v63  ;;  %15786 = vmatprep.subr.mxu0 %v20107_v63  ;;  %v20155_v27 = vld [vmem:[#allocation73_spill] sm:$0xff] }
 0x3ab   :  { %7968 = vst.msk [vmem:[%s19939_s15 + $0x108] sm:$0xff] %vm2110_vm2, %v7904_v5  ;;  %v7842_v56 = vmul.f32 %v16311_v20, %v7778_v62  ;;  %v7716_v47 = vmul.f32 %v16315_v17, %v19182_v4  ;;  %15774 = vmatmul.mubr.msk.f32.vlgmr.msra.gmra.mrb[192].mxu1 %vm2110_vm2, %v7904_v5  ;;  %v19266_v44 = vpop.xlane.xlu1 %7553  ;;  %15779 = vmatmul.mubr.msk.f32.vlgmr.msra.gmra.mrb[194].mxu0 %vm2110_vm2, %v18999_v31  ;;  %v20148_v31 = vld [vmem:[#allocation56_spill] sm:$0xff] }
 0x3ac   :  { %v19270_v58 = vpop.xlane.xlu0 %7580  ;;  %v7855_v0 = vmul.f32 %v16313_v12, %v7791_v49  ;;  %15782 = vmatpush3.msra.mxu1 %v2081_v42  ;;  %16322 = vrcp.f32 %v19266_v44  ;;  %15787 = vmatpush3.msra.mxu0 %v2082_v54  ;;  %v2083_v52 = vadd.f32 %v20148_v31, %v19174_v40  ;;  %v20156_v49 = vld [vmem:[#allocation13_spill] sm:$0xff]  ;;  %v20158_v31 = vld [vmem:[#allocation74_spill] sm:$0xff] }
 0x3ad   :  { %v7906_v9 = vmul.f32 %v18624_v26, %v7842_v56  ;;  %v7780_v30 = vsub.f32 2.0, %v7716_v47  ;;  %16324 = vrcp.f32 %v19270_v58  ;;  %15783 = vmatprep.mubr.msk.f32.mxu1 %vm16431_vm1, %v20107_v63  ;;  %15788 = vmatprep.mubr.msk.f32.mxu0 %vm16431_vm1, %v20107_v63  ;;  %v2089_v56 = vadd.f32 %v20156_v49, %v19174_v40  ;;  %v20157_v47 = vld [vmem:[#allocation16_spill] sm:$0xff]  ;;  %v20167_v49 = vld [vmem:[#allocation58_spill] sm:$0xff] }
 0x3ae   :  { %v16317_v4 = vpop.eup %16316  ;;  %v19284_v41 = vmul.f32 %v20150_v43, %v7855_v0  ;;  %15791 = vmatprep.subr.mxu1 %v20107_v63  ;;  %15796 = vmatprep.subr.mxu0 %v20107_v63 }
 0x3af   :  { %v16319_v26 = vpop.eup %16318  ;;  %7970 = vst.msk [vmem:[%s19939_s15 + $0x118] sm:$0xff] %vm2110_vm2, %v7906_v9  ;;  %v7844_v59 = vmul.f32 %v16315_v17, %v7780_v30  ;;  %v7718_v50 = vmul.f32 %v16317_v4, %v19210_v1  ;;  %15784 = vmatmul.mubr.msk.f32.vlgmr.msra.gmra.mrb[194].mxu1 %vm2110_vm2, %v7906_v9  ;;  %v19294_v19 = vpop.xlane.xlu1 %7559  ;;  %15789 = vmatmul.mubr.msk.f32.vlgmr.msra.gmra.mrb[196].mxu0 %vm2110_vm2, %v19022_v22 }
 0x3b0   :  { %7983 = vst.msk [vmem:[%s19939_s15 + $0x180] sm:$0xff] %vm2110_vm2, %v19284_v41  ;;  %v7729_v10 = vmul.f32 %v16319_v26, %v19214_v45  ;;  %15792 = vmatpush3.msra.mxu1 %v2083_v52  ;;  %16326 = vrcp.f32 %v19294_v19  ;;  %15797 = vmatpush3.msra.mxu0 %v2084_v55  ;;  %v2086_v45 = vadd.f32 %v19174_v40, %v20152_v6 }
 0x3b1   :  { %v7908_v24 = vmul.f32 %v18634_v38, %v7844_v59  ;;  %v7782_v1 = vsub.f32 2.0, %v7718_v50  ;;  %15793 = vmatprep.mubr.msk.f32.mxu1 %vm16431_vm1, %v20107_v63  ;;  %15798 = vmatprep.mubr.msk.f32.mxu0 %vm16431_vm1, %v20107_v63  ;;  %v20161_v50 = vld [vmem:[#allocation75_spill] sm:$0xff] }
 0x3b2   :  { %v16321_v22 = vpop.eup %16320  ;;  %v7793_v60 = vsub.f32 2.0, %v7729_v10  ;;  %15801 = vmatprep.subr.mxu1 %v20107_v63  ;;  %15806 = vmatprep.subr.mxu0 %v20107_v63 }
 0x3b3   :  { %7972 = vst.msk [vmem:[%s19939_s15 + $0x128] sm:$0xff] %vm2110_vm2, %v7908_v24  ;;  %v7846_v38 = vmul.f32 %v16317_v4, %v7782_v1  ;;  %v7720_v20 = vmul.f32 %v16321_v22, %v19238_v34  ;;  %15794 = vmatmul.mubr.msk.f32.vlgmr.msra.gmra.mrb[196].mxu1 %vm2110_vm2, %v7908_v24  ;;  %v19322_v18 = vpop.xlane.xlu1 %7565  ;;  %15799 = vmatmul.mubr.msk.f32.vlgmr.msra.gmra.mrb[198].mxu0 %vm2110_vm2, %v19050_v29  ;;  %v20153_v29 = vld [vmem:[#allocation11_spill] sm:$0xff]  ;;  %v19403_v24 = vld [vmem:[%s19930_s6 + $0x18] sm:$0xff] }
 0x3b4   :  { %v19326_v53 = vpop.xlane.xlu0 %7586  ;;  %v7857_v8 = vmul.f32 %v16319_v26, %v7793_v60  ;;  %15802 = vmatpush3.msra.mxu1 %v2085_v15  ;;  %16328 = vrcp.f32 %v19322_v18  ;;  %15807 = vmatpush3.msra.mxu0 %v2086_v45  ;;  %v2087_v32 = vadd.f32 %v20153_v29, %v19174_v40  ;;  %v2088_v34 = vadd.f32 %v19174_v40, %v20154_v37  ;;  %v20160_v26 = vld [vmem:[#allocation18_spill] sm:$0xff]  ;;  %v20162_v60 = vld [vmem:[#allocation55_spill] sm:$0xff] }
 0x3b5   :  { %v7910_v51 = vmul.f32 %v18641_v16, %v7846_v38  ;;  %v7784_v46 = vsub.f32 2.0, %v7720_v20  ;;  %16330 = vrcp.f32 %v19326_v53  ;;  %15803 = vmatprep.mubr.msk.f32.mxu1 %vm16431_vm1, %v20107_v63  ;;  %15808 = vmatprep.mubr.msk.f32.mxu0 %vm16431_vm1, %v20107_v63  ;;  %v2092_v59 = vadd.f32 %v19174_v40, %v20160_v26  ;;  %v20163_v20 = vld [vmem:[#allocation17_spill] sm:$0xff] }
 0x3b6   :  { %v16323_v12 = vpop.eup %16322  ;;  %v19340_v5 = vmul.f32 %v20155_v27, %v7857_v8  ;;  %15811 = vmatprep.subr.mxu1 %v20107_v63  ;;  %15816 = vmatprep.subr.mxu0 %v20107_v63  ;;  %v2094_v38 = vadd.f32 %v19403_v24, %v20162_v60 }
 0x3b7   :  { %v16325_v16 = vpop.eup %16324  ;;  %7974 = vst.msk [vmem:[%s19939_s15 + $0x138] sm:$0xff] %vm2110_vm2, %v7910_v51  ;;  %v7848_v62 = vmul.f32 %v16321_v22, %v7784_v46  ;;  %v7722_v17 = vmul.f32 %v16323_v12, %v19266_v44  ;;  %15804 = vmatmul.mubr.msk.f32.vlgmr.msra.gmra.mrb[198].mxu1 %vm2110_vm2, %v7910_v51  ;;  %v19350_v39 = vpop.xlane.xlu1 %7571  ;;  %15809 = vmatmul.mubr.msk.f32.vlgmr.msra.gmra.mrb[200].mxu0 %vm2110_vm2, %v19078_v21 }
 0x3b8   :  { %7985 = vst.msk [vmem:[%s19939_s15 + $0x190] sm:$0xff] %vm2110_vm2, %v19340_v5  ;;  %v7731_v42 = vmul.f32 %v16325_v16, %v19270_v58  ;;  %15812 = vmatpush3.msra.mxu1 %v2087_v32  ;;  %16332 = vrcp.f32 %v19350_v39  ;;  %15817 = vmatpush3.msra.mxu0 %v2088_v34  ;;  %v2090_v44 = vadd.f32 %v19174_v40, %v20157_v47  ;;  %v20165_v34 = vld [vmem:[#allocation59_spill] sm:$0xff]  ;;  %v20168_v47 = vld [vmem:[#allocation61_spill] sm:$0xff] }
 0x3b9   :  { %v7912_v48 = vmul.f32 %v18651_v25, %v7848_v62  ;;  %v7786_v54 = vsub.f32 2.0, %v7722_v17  ;;  %15813 = vmatprep.mubr.msk.f32.mxu1 %vm16431_vm1, %v20107_v63  ;;  %15818 = vmatprep.mubr.msk.f32.mxu0 %vm16431_vm1, %v20107_v63  ;;  %v2096_v27 = vadd.f32 %v19403_v24, %v20165_v34 }
 0x3ba   :  { %v16327_v21 = vpop.eup %16326  ;;  %v7795_v58 = vsub.f32 2.0, %v7731_v42  ;;  %15821 = vmatprep.subr.mxu1 %v20107_v63  ;;  %15826 = vmatprep.subr.mxu0 %v20107_v63 }
 0x3bb   :  { %7976 = vst.msk [vmem:[%s19939_s15 + $0x148] sm:$0xff] %vm2110_vm2, %v7912_v48  ;;  %v7850_v25 = vmul.f32 %v16323_v12, %v7786_v54  ;;  %v7724_v0 = vmul.f32 %v16327_v21, %v19294_v19  ;;  %15814 = vmatmul.mubr.msk.f32.vlgmr.msra.gmra.mrb[200].mxu1 %vm2110_vm2, %v7912_v48  ;;  %v19378_v9 = vpop.xlane.xlu1 %7577  ;;  %15819 = vmatmul.mubr.msk.f32.vlgmr.msra.gmra.mrb[202].mxu0 %vm2110_vm2, %v19111_v61  ;;  %v20159_v61 = vld [vmem:[#allocation15_spill] sm:$0xff] }
 0x3bc   :  { %v19382_v30 = vpop.xlane.xlu0 %7592  ;;  %v7859_v4 = vmul.f32 %v16325_v16, %v7795_v58  ;;  %15822 = vmatpush3.msra.mxu1 %v2089_v56  ;;  %16334 = vrcp.f32 %v19378_v9  ;;  %15827 = vmatpush3.msra.mxu0 %v2090_v44  ;;  %v2091_v43 = vadd.f32 %v20159_v61, %v19174_v40  ;;  %v20166_v16 = vld [vmem:[#allocation76_spill] sm:$0xff]  ;;  %v2097_v56 = vadd.f32 %v20167_v49, %v19403_v24 }
 0x3bd   :  { %v7914_v52 = vmul.f32 %v20158_v31, %v7850_v25  ;;  %v7788_v23 = vsub.f32 2.0, %v7724_v0  ;;  %16336 = vrcp.f32 %v19382_v30  ;;  %15823 = vmatprep.mubr.msk.f32.mxu1 %vm16431_vm1, %v20107_v63  ;;  %15828 = vmatprep.mubr.msk.f32.mxu0 %vm16431_vm1, %v20107_v63  ;;  %v2098_v44 = vadd.f32 %v19403_v24, %v20168_v47 }
 0x3be   :  { %v16329_v55 = vpop.eup %16328  ;;  %v19396_v19 = vmul.f32 %v20161_v50, %v7859_v4  ;;  %15831 = vmatprep.subr.mxu1 %v20107_v63  ;;  %15836 = vmatprep.subr.mxu0 %v20107_v63 }
 0x3bf   :  { %v16331_v10 = vpop.eup %16330  ;;  %7978 = vst.msk [vmem:[%s19939_s15 + $0x158] sm:$0xff] %vm2110_vm2, %v7914_v52  ;;  %v7852_v1 = vmul.f32 %v16327_v21, %v7788_v23  ;;  %v7726_v22 = vmul.f32 %v16329_v55, %v19322_v18  ;;  %15824 = vmatmul.mubr.msk.f32.vlgmr.msra.gmra.mrb[202].mxu1 %vm2110_vm2, %v7914_v52  ;;  %v19411_v7 = vpop.xlane.xlu1 %7583  ;;  %15829 = vmatmul.mubr.msk.f32.vlgmr.msra.gmra.mrb[204].mxu0 %vm2110_vm2, %v19167_v36 }
 0x3c0   :  { %7987 = vst.msk [vmem:[%s19939_s15 + $0x1a0] sm:$0xff] %vm2110_vm2, %v19396_v19  ;;  %v7733_v15 = vmul.f32 %v16331_v10, %v19326_v53  ;;  %15832 = vmatpush3.msra.mxu1 %v2091_v43  ;;  %16338 = vrcp.f32 %v19411_v7  ;;  %15837 = vmatpush3.msra.mxu0 %v2092_v59  ;;  %v2093_v18 = vadd.f32 %v20163_v20, %v19174_v40 }
 0x3c1   :  { %v7916_v6 = vmul.f32 %v18667_v11, %v7852_v1  ;;  %v7790_v45 = vsub.f32 2.0, %v7726_v22  ;;  %15833 = vmatprep.mubr.msk.f32.mxu1 %vm16431_vm1, %v20107_v63  ;;  %15838 = vmatprep.mubr.msk.f32.mxu0 %vm16431_vm1, %v20107_v63 }
 0x3c2   :  { %v16333_v36 = vpop.eup %16332  ;;  %v7797_v53 = vsub.f32 2.0, %v7733_v15  ;;  %15841 = vmatprep.subr.mxu1 %v20107_v63  ;;  %15846 = vmatprep.subr.mxu0 %v20107_v63 }
 0x3c3   :  { %7980 = vst.msk [vmem:[%s19939_s15 + $0x168] sm:$0xff] %vm2110_vm2, %v7916_v6  ;;  %v7854_v11 = vmul.f32 %v16329_v55, %v7790_v45  ;;  %v7728_v8 = vmul.f32 %v16333_v36, %v19350_v39  ;;  %15834 = vmatmul.mubr.msk.f32.vlgmr.msra.gmra.mrb[204].mxu1 %vm2110_vm2, %v7916_v6  ;;  %v19439_v51 = vpop.xlane.xlu1 %7589  ;;  %15839 = vmatmul.mubr.msk.f32.vlgmr.msra.gmra.mrb[206].mxu0 %vm2110_vm2, %v19228_v13  ;;  %v20164_v13 = vld [vmem:[#allocation54_spill] sm:$0xff]  ;;  %v20170_v55 = vld [vmem:[#allocation63_spill] sm:$0xff]  ;;  %v20173_v6 = vld [vmem:[#allocation65_spill] sm:$0xff] }
 0x3c4   :  { %v19443_v40 = vpop.xlane.xlu0 %7598  ;;  %v7861_v46 = vmul.f32 %v16331_v10, %v7797_v53  ;;  %15842 = vmatpush3.msra.mxu1 %v2093_v18  ;;  %16340 = vrcp.f32 %v19439_v51  ;;  %15847 = vmatpush3.msra.mxu0 %v2094_v38  ;;  %v2095_v37 = vadd.f32 %v20164_v13, %v19403_v24  ;;  %v2100_v61 = vadd.f32 %v19403_v24, %v20170_v55  ;;  %v20171_v10 = vld [vmem:[#allocation77_spill] sm:$0xff]  ;;  %v20177_v13 = vld [vmem:[#allocation82_spill] sm:$0xff] }
 0x3c5   :  { %v7918_v12 = vmul.f32 %v18673_v14, %v7854_v11  ;;  %v7792_v29 = vsub.f32 2.0, %v7728_v8  ;;  %16342 = vrcp.f32 %v19443_v40  ;;  %15843 = vmatprep.mubr.msk.f32.mxu1 %vm16431_vm1, %v20107_v63  ;;  %15848 = vmatprep.mubr.msk.f32.mxu0 %vm16431_vm1, %v20107_v63  ;;  %v2102_v45 = vadd.f32 %v19403_v24, %v20173_v6  ;;  %v20174_v11 = vld [vmem:[#allocation79_spill] sm:$0xff] }
 0x3c6   :  { %v16335_v32 = vpop.eup %16334  ;;  %v19457_v62 = vmul.f32 %v20166_v16, %v7861_v46  ;;  %15851 = vmatprep.subr.mxu1 %v20107_v63  ;;  %15856 = vmatprep.subr.mxu0 %v20107_v63  ;;  %v20175_v46 = vld [vmem:[#allocation64_spill] sm:$0xff] }
 0x3c7   :  { %v16337_v14 = vpop.eup %16336  ;;  %7982 = vst.msk [vmem:[%s19939_s15 + $0x178] sm:$0xff] %vm2110_vm2, %v7918_v12  ;;  %v7856_v17 = vmul.f32 %v16333_v36, %v7792_v29  ;;  %v7730_v39 = vmul.f32 %v16335_v32, %v19378_v9  ;;  %15844 = vmatmul.mubr.msk.f32.vlgmr.msra.gmra.mrb[206].mxu1 %vm2110_vm2, %v7918_v12  ;;  %v19467_v42 = vpop.xlane.xlu1 %7595  ;;  %15849 = vmatmul.mubr.msk.f32.vlgmr.msra.gmra.mrb[208].mxu0 %vm2110_vm2, %v19284_v41  ;;  %v20176_v29 = vld [vmem:[#allocation67_spill] sm:$0xff] }
 0x3c8   :  { %7989 = vst.msk [vmem:[%s19939_s15 + $0x1b0] sm:$0xff] %vm2110_vm2, %v19457_v62  ;;  %v7735_v48 = vmul.f32 %v16337_v14, %v19382_v30  ;;  %15852 = vmatpush3.msra.mxu1 %v2095_v37  ;;  %16344 = vrcp.f32 %v19467_v42  ;;  %15857 = vmatpush3.msra.mxu0 %v2096_v27  ;;  %v2103_v12 = vadd.f32 %v20175_v46, %v19403_v24 }
 0x3c9   :  { %v7920_v54 = vmul.f32 %v18682_v28, %v7856_v17  ;;  %v7794_v21 = vsub.f32 2.0, %v7730_v39  ;;  %15853 = vmatprep.mubr.msk.f32.mxu1 %vm16431_vm1, %v20107_v63  ;;  %15858 = vmatprep.mubr.msk.f32.mxu0 %vm16431_vm1, %v20107_v63 }
 0x3ca   :  { %v16339_v41 = vpop.eup %16338  ;;  %v7799_v58 = vsub.f32 2.0, %v7735_v48  ;;  %15861 = vmatprep.subr.mxu1 %v20107_v63  ;;  %15866 = vmatprep.subr.mxu0 %v20107_v63  ;;  %v20179_v48 = vld [vmem:[#allocation66_spill] sm:$0xff] }
 0x3cb   :  { %7984 = vst.msk [vmem:[%s19939_s15 + $0x188] sm:$0xff] %vm2110_vm2, %v7920_v54  ;;  %v7858_v28 = vmul.f32 %v16335_v32, %v7794_v21  ;;  %v7732_v25 = vmul.f32 %v16339_v41, %v19411_v7  ;;  %15854 = vmatmul.mubr.msk.f32.vlgmr.msra.gmra.mrb[208].mxu1 %vm2110_vm2, %v7920_v54  ;;  %v19495_v0 = vpop.xlane.xlu1 %7601  ;;  %15859 = vmatmul.mubr.msk.f32.vlgmr.msra.gmra.mrb[210].mxu0 %vm2110_vm2, %v19340_v5  ;;  %v20169_v5 = vld [vmem:[#allocation60_spill] sm:$0xff]  ;;  %v20172_v7 = vld [vmem:[#allocation62_spill] sm:$0xff]  ;;  %v20180_v21 = vld [vmem:[#allocation69_spill] sm:$0xff] }
 0x3cc   :  { %v19499_v9 = vpop.xlane.xlu0 %7604  ;;  %v7863_v30 = vmul.f32 %v16337_v14, %v7799_v58  ;;  %15862 = vmatpush3.msra.mxu1 %v2097_v56  ;;  %16346 = vrcp.f32 %v19495_v0  ;;  %15867 = vmatpush3.msra.mxu0 %v2098_v44  ;;  %v2099_v23 = vadd.f32 %v20169_v5, %v19403_v24  ;;  %v2101_v15 = vadd.f32 %v20172_v7, %v19403_v24  ;;  %v20178_v14 = vld [vmem:[#allocation80_spill] sm:$0xff] }
 0x3cd   :  { %v7922_v4 = vmul.f32 %v18688_v35, %v7858_v28  ;;  %v7796_v31 = vsub.f32 2.0, %v7732_v25  ;;  %16348 = vrcp.f32 %v19499_v9  ;;  %15863 = vmatprep.mubr.msk.f32.mxu1 %vm16431_vm1, %v20107_v63  ;;  %15868 = vmatprep.mubr.msk.f32.mxu0 %vm16431_vm1, %v20107_v63  ;;  %v2104_v32 = vadd.f32 %v19403_v24, %v20176_v29 }
 0x3ce   :  { %v16341_v52 = vpop.eup %16340  ;;  %v7927_v43 = vmul.f32 %v18691_v33, %v7863_v30  ;;  %15871 = vmatprep.subr.mxu1 %v20107_v63  ;;  %15876 = vmatprep.subr.mxu0 %v20107_v63  ;;  %v2105_v54 = vadd.f32 %v20179_v48, %v19403_v24 }
 0x3cf   :  { %v16343_v35 = vpop.eup %16342  ;;  %7986 = vst.msk [vmem:[%s19939_s15 + $0x198] sm:$0xff] %vm2110_vm2, %v7922_v4  ;;  %v7860_v26 = vmul.f32 %v16339_v41, %v7796_v31  ;;  %v7734_v59 = vmul.f32 %v16341_v52, %v19439_v51  ;;  %15864 = vmatmul.mubr.msk.f32.vlgmr.msra.gmra.mrb[210].mxu1 %vm2110_vm2, %v7922_v4  ;;  %v7608_v50 = vpop.xlane.xlu1 %7607  ;;  %15869 = vmatmul.mubr.msk.f32.vlgmr.msra.gmra.mrb[212].mxu0 %vm2110_vm2, %v19396_v19  ;;  %v20182_v31 = vld [vmem:[#allocation70_spill] sm:$0xff] }
 0x3d0   :  { %7991 = vst.msk [vmem:[%s19939_s15 + $0x1c0] sm:$0xff] %vm2110_vm2, %v7927_v43  ;;  %v7737_v33 = vmul.f32 %v16343_v35, %v19443_v40  ;;  %15872 = vmatpush3.msra.mxu1 %v2099_v23  ;;  %16350 = vrcp.f32 %v7608_v50  ;;  %15877 = vmatpush3.msra.mxu0 %v2100_v61  ;;  %v2106_v41 = vadd.f32 %v19403_v24, %v20180_v21  ;;  %v20183_v61 = vld [vmem:[#allocation19_spill] sm:$0xff] }
 0x3d1   :  { %v7924_v1 = vmul.f32 %v20171_v10, %v7860_v26  ;;  %v7798_v22 = vsub.f32 2.0, %v7734_v59  ;;  %15873 = vmatprep.mubr.msk.f32.mxu1 %vm16431_vm1, %v20107_v63  ;;  %15878 = vmatprep.mubr.msk.f32.mxu0 %vm16431_vm1, %v20107_v63  ;;  %v13184_v26 = vld [vmem:[%s19931_s7] sm:$0xff]  ;;  %v20184_v59 = vld [vmem:[#allocation81_spill] sm:$0xff] }
 0x3d2   :  { %v16345_v19 = vpop.eup %16344  ;;  %v7801_v36 = vsub.f32 2.0, %v7737_v33  ;;  %15881 = vmatprep.subr.mxu1 %v20107_v63  ;;  %15886 = vmatprep.subr.mxu0 %v20107_v63  ;;  %v20185_v33 = vld [vmem:[#allocation83_spill] sm:$0xff] }
 0x3d3   :  { %7988 = vst.msk [vmem:[%s19939_s15 + $0x1a8] sm:$0xff] %vm2110_vm2, %v7924_v1  ;;  %v7862_v60 = vmul.f32 %v16341_v52, %v7798_v22  ;;  %v7736_v38 = vmul.f32 %v16345_v19, %v19467_v42  ;;  %15874 = vmatmul.mubr.msk.f32.vlgmr.msra.gmra.mrb[212].mxu1 %vm2110_vm2, %v7924_v1  ;;  %v7614_v20 = vpop.xlane.xlu1 %7613  ;;  %15879 = vmatmul.mubr.msk.f32.vlgmr.msra.gmra.mrb[214].mxu0 %vm2110_vm2, %v19457_v62 }
 0x3d4   :  { %v7611_v18 = vpop.xlane.xlu0 %7610  ;;  %v7865_v53 = vmul.f32 %v16343_v35, %v7801_v36  ;;  %15882 = vmatpush3.msra.mxu1 %v2101_v15  ;;  %16352 = vrcp.f32 %v7614_v20  ;;  %15887 = vmatpush3.msra.mxu0 %v2102_v45 }
 0x3d5   :  { %v7926_v8 = vmul.f32 %v20174_v11, %v7862_v60  ;;  %v7800_v51 = vsub.f32 2.0, %v7736_v38  ;;  %16354 = vrcp.f32 %v7611_v18  ;;  %15883 = vmatprep.mubr.msk.f32.mxu1 %vm16431_vm1, %v20107_v63  ;;  %15888 = vmatprep.mubr.msk.f32.mxu0 %vm16431_vm1, %v20107_v63 }
 0x3d6   :  { %v16347_v40 = vpop.eup %16346  ;;  %v7929_v37 = vmul.f32 %v20177_v13, %v7865_v53  ;;  %15891 = vmatprep.subr.mxu1 %v20107_v63  ;;  %15896 = vmatprep.subr.mxu0 %v20107_v63 }
 0x3d7   :  { %v16349_v34 = vpop.eup %16348  ;;  %7990 = vst.msk [vmem:[%s19939_s15 + $0x1b8] sm:$0xff] %vm2110_vm2, %v7926_v8  ;;  %v7864_v27 = vmul.f32 %v16345_v19, %v7800_v51  ;;  %v7738_v16 = vmul.f32 %v16347_v40, %v19495_v0  ;;  %15884 = vmatmul.mubr.msk.f32.vlgmr.msra.gmra.mrb[214].mxu1 %vm2110_vm2, %v7926_v8  ;;  %15889 = vmatmul.mubr.msk.f32.vlgmr.msra.gmra.mrb[216].mxu0 %vm2110_vm2, %v7927_v43  ;;  %v20181_v0 = vld [vmem:[#allocation68_spill] sm:$0xff] }
 0x3d8   :  { %7993 = vst.msk [vmem:[%s19939_s15 + $0x1d0] sm:$0xff] %vm2110_vm2, %v7929_v37  ;;  %v7739_v62 = vmul.f32 %v16349_v34, %v19499_v9  ;;  %15892 = vmatpush3.msra.mxu1 %v2103_v12  ;;  %15897 = vmatpush3.msra.mxu0 %v2104_v32  ;;  %v2107_v9 = vadd.f32 %v20181_v0, %v19403_v24 }
 0x3d9   :  { %v7928_v17 = vmul.f32 %v20178_v14, %v7864_v27  ;;  %v7802_v39 = vsub.f32 2.0, %v7738_v16  ;;  %15893 = vmatprep.mubr.msk.f32.mxu1 %vm16431_vm1, %v20107_v63  ;;  %15898 = vmatprep.mubr.msk.f32.mxu0 %vm16431_vm1, %v20107_v63  ;;  %v2109_v43 = vadd.f32 %v20183_v61, %v19403_v24 }
 0x3da   :  { %v16351_v42 = vpop.eup %16350  ;;  %v7803_v49 = vsub.f32 2.0, %v7739_v62  ;;  %15901 = vmatprep.subr.mxu1 %v20107_v63  ;;  %15906 = vmatprep.subr.mxu0 %v20107_v63 }
 0x3db   :  { %7992 = vst.msk [vmem:[%s19939_s15 + $0x1c8] sm:$0xff] %vm2110_vm2, %v7928_v17  ;;  %v7866_v56 = vmul.f32 %v16347_v40, %v7802_v39  ;;  %v7740_v47 = vmul.f32 %v16351_v42, %v7608_v50  ;;  %15894 = vmatmul.mubr.msk.f32.vlgmr.msra.gmra.mrb[216].mxu1 %vm2110_vm2, %v7928_v17  ;;  %15899 = vmatmul.mubr.msk.f32.vlgmr.msra.gmra.mrb[218].mxu0 %vm2110_vm2, %v7929_v37 }
 0x3dc   :  { %v7867_v44 = vmul.f32 %v16349_v34, %v7803_v49  ;;  %15902 = vmatpush3.msra.mxu1 %v2105_v54  ;;  %15907 = vmatpush3.msra.mxu0 %v2106_v41 }
 0x3dd   :  { %v7930_v58 = vmul.f32 %v18716_v3, %v7866_v56  ;;  %v7804_v28 = vsub.f32 2.0, %v7740_v47  ;;  %15903 = vmatprep.mubr.msk.f32.mxu1 %vm16431_vm1, %v20107_v63  ;;  %15911 = vmatprep.subr.mxu1 %v20107_v63  ;;  %v2108_v3 = vadd.f32 %v19403_v24, %v20182_v31 }
 0x3de   :  { %v16353_v25 = vpop.eup %16352  ;;  %v7931_v30 = vmul.f32 %v18718_v57, %v7867_v44  ;;  %15908 = vmatprep.mubr.msk.f32.mxu0 %vm16431_vm1, %v20107_v63  ;;  %15916 = vmatprep.subr.mxu0 %v20107_v63 }
 0x3df   :  { %v16355_v4 = vpop.eup %16354  ;;  %7994 = vst.msk [vmem:[%s19939_s15 + $0x1d8] sm:$0xff] %vm2110_vm2, %v7930_v58  ;;  %v7868_v52 = vmul.f32 %v16351_v42, %v7804_v28  ;;  %v7742_v5 = vmul.f32 %v16353_v25, %v7614_v20  ;;  %15904 = vmatmul.mubr.msk.f32.vlgmr.msra.gmra.mrb[218].mxu1 %vm2110_vm2, %v7930_v58 }
 0x3e0   :  { %7995 = vst.msk [vmem:[%s19939_s15 + $0x1e0] sm:$0xff] %vm2110_vm2, %v7931_v30  ;;  %v7741_v57 = vmul.f32 %v16355_v4, %v7611_v18  ;;  %15912 = vmatpush3.msra.mxu1 %v2107_v9  ;;  %15909 = vmatmul.mubr.msk.f32.vlgmr.msra.gmra.mrb[220].mxu0 %vm2110_vm2, %v7931_v30 }
 0x3e1   :  { %v7932_v23 = vmul.f32 %v18720_v2, %v7868_v52  ;;  %v7806_v55 = vsub.f32 2.0, %v7742_v5  ;;  %15917 = vmatpush3.msra.mxu0 %v2108_v3  ;;  %15913 = vmatprep.mubr.msk.f32.mxu1 %vm16431_vm1, %v20107_v63 }
 0x3e2   :  { %v7805_v35 = vsub.f32 2.0, %v7741_v57  ;;  %15921 = vmatprep.subr.mxu1 %v20107_v63  ;;  %15918 = vmatprep.mubr.msk.f32.mxu0 %vm16431_vm1, %v20107_v63 }
 0x3e3   :  { %7996 = vst.msk [vmem:[%s19939_s15 + $0x1e8] sm:$0xff] %vm2110_vm2, %v7932_v23  ;;  %v7870_v2 = vmul.f32 %v16353_v25, %v7806_v55  ;;  %15914 = vmatmul.mubr.msk.f32.vlgmr.msra.gmra.mrb[220].mxu1 %vm2110_vm2, %v7932_v23  ;;  %15926 = vmatprep.subr.mxu0 %v13184_v26 }
 0x3e4   :  { %v7869_v24 = vmul.f32 %v16355_v4, %v7805_v35  ;;  %15922 = vmatpush3.msra.mxu1 %v2109_v43  ;;  %15923 = vmatprep.mubr.msk.f32.mxu1 %vm16431_vm1, %v20107_v63  ;;  %v13185_v63 = vld [vmem:[%s19931_s7 + $0x8] sm:$0xff] }
 0x3e5   :  { %v7934_v50 = vmul.f32 %v20184_v59, %v7870_v2  ;;  %15931 = vmatprep.subr.mxu1 %v13185_v63 }
 0x3e6   :  { %v7933_v10 = vmul.f32 %v20185_v33, %v7869_v24 }
 0x3e7   :  { %7998 = vst.msk [vmem:[%s19939_s15 + $0x1f8] sm:$0xff] %vm2110_vm2, %v7934_v50  ;;  %15924 = vmatmul.mubr.msk.f32.vlgmr.msra.gmra.mrb[222].mxu1 %vm2110_vm2, %v7934_v50 }
 0x3e8   :  { %7997 = vst.msk [vmem:[%s19939_s15 + $0x1f0] sm:$0xff] %vm2110_vm2, %v7933_v10  ;;  %15919 = vmatmul.mubr.msk.f32.vlgmr.msra.gmra.mrb[222].mxu0 %vm2110_vm2, %v7933_v10  ;;  %15932 = vmatpush3.msra.mxu1 %v13185_v63 }
 0x3e9   :  { %15927 = vmatpush3.msra.mxu0 %v13184_v26 }
 0x416   :  { %v8141_v1 = vpop.f32.mrb[160].mxu1 }
 0x417   :  { %v12678_v22 = vsel %vm2110_vm2, %v8141_v1, 0.0  ;;  %v15615_v19 = vpop.f32.mrb[161].mxu1 }
 0x418   :  { %v12679_v7 = vrot.slane %v12678_v22, 4 }
 0x41a   :  { %v12680_v15 = vadd.f32 %v12679_v7, %v12678_v22 }
 0x41b   :  { %v8068_v6 = vpop.f32.mrb[160].mxu0 }
 0x41c   :  { %v12681_v45 = vrot.slane %v12680_v15, 2  ;;  %v12671_v36 = vsel %vm2110_vm2, %v8068_v6, 0.0  ;;  %v15610_v60 = vpop.f32.mrb[161].mxu0 }
 0x41d   :  { %v12672_v38 = vrot.slane %v12671_v36, 4 }
 0x41e   :  { %v12682_v20 = vadd.f32 %v12681_v45, %v12680_v15  ;;  %v8287_v53 = vpop.f32.mrb[162].mxu1 }
 0x41f   :  { %v12673_v18 = vadd.f32 %v12672_v38, %v12671_v36  ;;  %v12692_v11 = vsel %vm2110_vm2, %v8287_v53, 0.0  ;;  %v15625_v8 = vpop.f32.mrb[163].mxu1 }
 0x420   :  { %v12683_v51 = vrot.slane %v12682_v20, 1  ;;  %v12693_v46 = vrot.slane %v12692_v11, 4 }
 0x421   :  { %v12674_v40 = vrot.slane %v12673_v18, 2 }
 0x422   :  { %v12694_v29 = vadd.f32 %v12693_v46, %v12692_v11  ;;  %v8214_v32 = vpop.f32.mrb[162].mxu0  ;;  %v12684_v34 = vadd.f32 %v12683_v51, %v12682_v20 }
 0x423   :  { %v12675_v12 = vadd.f32 %v12674_v40, %v12673_v18  ;;  %v12685_v13 = vsel %vm2110_vm2, %v8214_v32, 0.0  ;;  %v15620_v37 = vpop.f32.mrb[163].mxu0 }
 0x424   :  { %v12695_v16 = vrot.slane %v12694_v29, 2  ;;  %v12686_v62 = vrot.slane %v12685_v13, 4  ;;  %v13121_v21 = vmul.f32 0.125, %v12684_v34 }
 0x425   :  { %v12676_v27 = vrot.slane %v12675_v12, 1 }
 0x426   :  { %v12696_v17 = vadd.f32 %v12695_v16, %v12694_v29  ;;  %v12687_v39 = vadd.f32 %v12686_v62, %v12685_v13  ;;  %v8433_v42 = vpop.f32.mrb[164].mxu1  ;;  %v19659_v13 = vld [vmem:[%s19931_s7 + $0x10] sm:$0xff] }
 0x427   :  { %v12677_v14 = vadd.f32 %v12676_v27, %v12675_v12  ;;  %v12706_v48 = vsel %vm2110_vm2, %v8433_v42, 0.0  ;;  %v15635_v54 = vpop.f32.mrb[165].mxu1  ;;  %15936 = vmatprep.subr.mxu0 %v19659_v13 }
 0x428   :  { %v12688_v49 = vrot.slane %v12687_v39, 2  ;;  %v12707_v56 = vrot.slane %v12706_v48, 4  ;;  %v12697_v47 = vrot.slane %v12696_v17, 1 }
 0x429   :  { %v13120_v41 = vmul.f32 0.125, %v12677_v14 }
 0x42a   :  { %v12689_v58 = vadd.f32 %v12688_v49, %v12687_v39  ;;  %v12708_v28 = vadd.f32 %v12707_v56, %v12706_v48  ;;  %v8360_v25 = vpop.f32.mrb[164].mxu0  ;;  %v12698_v3 = vadd.f32 %v12697_v47, %v12696_v17 }
 0x42b   :  { %v13205_v44 = vsel %vm13204_vm3, %v13121_v21, %v13120_v41  ;;  %v12699_v0 = vsel %vm2110_vm2, %v8360_v25, 0.0  ;;  %v15630_v9 = vpop.f32.mrb[165].mxu0 }
 0x42c   :  { %v12690_v30 = vrot.slane %v12689_v58, 1  ;;  %v12709_v4 = vrot.slane %v12708_v28, 2  ;;  %v12700_v31 = vrot.slane %v12699_v0, 4  ;;  %v13123_v2 = vmul.f32 0.125, %v12698_v3 }
 0x42e   :  { %v12691_v52 = vadd.f32 %v12690_v30, %v12689_v58  ;;  %v12710_v5 = vadd.f32 %v12709_v4, %v12708_v28  ;;  %v12701_v57 = vadd.f32 %v12700_v31, %v12699_v0  ;;  %v8579_v23 = vpop.f32.mrb[166].mxu1 }
 0x42f   :  { %v12720_v55 = vsel %vm2110_vm2, %v8579_v23, 0.0  ;;  %v15645_v61 = vpop.f32.mrb[167].mxu1 }
 0x430   :  { %v13122_v43 = vmul.f32 0.125, %v12691_v52  ;;  %v12702_v35 = vrot.slane %v12701_v57, 2  ;;  %v12721_v26 = vrot.slane %v12720_v55, 4  ;;  %v12711_v24 = vrot.slane %v12710_v5, 1 }
 0x432   :  { %v13207_v59 = vsel %vm13206_vm4, %v13122_v43, %v13205_v44  ;;  %v12703_v50 = vadd.f32 %v12702_v35, %v12701_v57  ;;  %v12722_v33 = vadd.f32 %v12721_v26, %v12720_v55  ;;  %v8506_v10 = vpop.f32.mrb[166].mxu0  ;;  %v12712_v6 = vadd.f32 %v12711_v24, %v12710_v5 }
 0x433   :  { %v12713_v63 = vsel %vm2110_vm2, %v8506_v10, 0.0  ;;  %v15640_v1 = vpop.f32.mrb[167].mxu0  ;;  %v13209_v22 = vsel %vm13208_vm5, %v13123_v2, %v13207_v59 }
 0x434   :  { %v12704_v19 = vrot.slane %v12703_v50, 1  ;;  %v12723_v7 = vrot.slane %v12722_v33, 2  ;;  %v12714_v15 = vrot.slane %v12713_v63, 4  ;;  %v13125_v51 = vmul.f32 0.125, %v12712_v6 }
 0x436   :  { %v12705_v45 = vadd.f32 %v12704_v19, %v12703_v50  ;;  %v12724_v36 = vadd.f32 %v12723_v7, %v12722_v33  ;;  %v12715_v60 = vadd.f32 %v12714_v15, %v12713_v63  ;;  %v8725_v38 = vpop.f32.mrb[168].mxu1 }
 0x437   :  { %v12734_v20 = vsel %vm2110_vm2, %v8725_v38, 0.0  ;;  %v15655_v18 = vpop.f32.mrb[169].mxu1 }
 0x438   :  { %v13124_v53 = vmul.f32 0.125, %v12705_v45  ;;  %v12716_v11 = vrot.slane %v12715_v60, 2  ;;  %v12735_v8 = vrot.slane %v12734_v20, 4  ;;  %v12725_v40 = vrot.slane %v12724_v36, 1 }
 0x43a   :  { %v12717_v46 = vadd.f32 %v12716_v11, %v12715_v60  ;;  %v12736_v12 = vadd.f32 %v12735_v8, %v12734_v20  ;;  %v8652_v29 = vpop.f32.mrb[168].mxu0  ;;  %v13211_v32 = vsel %vm13210_vm6, %v13124_v53, %v13209_v22  ;;  %v12726_v17 = vadd.f32 %v12725_v40, %v12724_v36  ;;  %v19675_v36 = vld [vmem:[%s19931_s7 + $0x18] sm:$0xff] }
 0x43b   :  { %v12727_v37 = vsel %vm2110_vm2, %v8652_v29, 0.0  ;;  %v15650_v34 = vpop.f32.mrb[169].mxu0  ;;  %v13213_v27 = vsel %vm13212_vm7, %v13125_v51, %v13211_v32  ;;  %15941 = vmatprep.subr.mxu1 %v19675_v36 }
 0x43c   :  { %v12718_v16 = vrot.slane %v12717_v46, 1  ;;  %v12737_v62 = vrot.slane %v12736_v12, 2  ;;  %v12728_v14 = vrot.slane %v12727_v37, 4  ;;  %v13127_v58 = vmul.f32 0.125, %v12726_v17 }
 0x43e   :  { %v12719_v39 = vadd.f32 %v12718_v16, %v12717_v46  ;;  %v12738_v42 = vadd.f32 %v12737_v62, %v12736_v12  ;;  %v12729_v48 = vadd.f32 %v12728_v14, %v12727_v37  ;;  %v8871_v54 = vpop.f32.mrb[170].mxu1 }
 0x43f   :  { %v12748_v21 = vsel %vm2110_vm2, %v8871_v54, 0.0  ;;  %v15665_v41 = vpop.f32.mrb[171].mxu1 }
 0x440   :  { %v13126_v49 = vmul.f32 0.125, %v12719_v39  ;;  %v12739_v56 = vrot.slane %v12738_v42, 1  ;;  %v12730_v47 = vrot.slane %v12729_v48, 2  ;;  %v12749_v44 = vrot.slane %v12748_v21, 4 }
 0x442   :  { %v12731_v28 = vadd.f32 %v12730_v47, %v12729_v48  ;;  %v12750_v25 = vadd.f32 %v12749_v44, %v12748_v21  ;;  %v8798_v0 = vpop.f32.mrb[170].mxu0  ;;  %v13215_v9 = vsel %vm13214_vm8, %v13126_v49, %v13213_v27  ;;  %v12740_v3 = vadd.f32 %v12739_v56, %v12738_v42 }
 0x443   :  { %v12741_v30 = vsel %vm2110_vm2, %v8798_v0, 0.0  ;;  %v15660_v4 = vpop.f32.mrb[171].mxu0  ;;  %v13217_v31 = vsel %vm13216_vm9, %v13127_v58, %v13215_v9 }
 0x444   :  { %v12732_v52 = vrot.slane %v12731_v28, 1  ;;  %v12751_v5 = vrot.slane %v12750_v25, 2  ;;  %v12742_v57 = vrot.slane %v12741_v30, 4  ;;  %15928 = vmatprep.mubr.msk.f32.mxu0 %vm2110_vm2, %v13217_v31  ;;  %v13129_v2 = vmul.f32 0.125, %v12740_v3 }
 0x446   :  { %v12733_v23 = vadd.f32 %v12732_v52, %v12731_v28  ;;  %v12752_v55 = vadd.f32 %v12751_v5, %v12750_v25  ;;  %v12743_v61 = vadd.f32 %v12742_v57, %v12741_v30  ;;  %v9017_v43 = vpop.f32.mrb[172].mxu1 }
 0x447   :  { %v12762_v35 = vsel %vm2110_vm2, %v9017_v43, 0.0  ;;  %v15675_v26 = vpop.f32.mrb[173].mxu1 }
 0x448   :  { %v13128_v24 = vmul.f32 0.125, %v12733_v23  ;;  %v12744_v59 = vrot.slane %v12743_v61, 2  ;;  %v12763_v50 = vrot.slane %v12762_v35, 4  ;;  %v12753_v33 = vrot.slane %v12752_v55, 1 }
 0x44a   :  { %v13218_v10 = vsel %vm13204_vm3, %v13129_v2, %v13128_v24  ;;  %v12745_v63 = vadd.f32 %v12744_v59, %v12743_v61  ;;  %v12764_v1 = vadd.f32 %v12763_v50, %v12762_v35  ;;  %v8944_v22 = vpop.f32.mrb[172].mxu0  ;;  %v12754_v60 = vadd.f32 %v12753_v33, %v12752_v55 }
 0x44b   :  { %v12755_v19 = vsel %vm2110_vm2, %v8944_v22, 0.0  ;;  %v15670_v7 = vpop.f32.mrb[173].mxu0 }
 0x44c   :  { %v12746_v15 = vrot.slane %v12745_v63, 1  ;;  %v12765_v6 = vrot.slane %v12764_v1, 2  ;;  %v12756_v45 = vrot.slane %v12755_v19, 4  ;;  %v13131_v12 = vmul.f32 0.125, %v12754_v60 }
 0x44e   :  { %v12747_v38 = vadd.f32 %v12746_v15, %v12745_v63  ;;  %v12766_v20 = vadd.f32 %v12765_v6, %v12764_v1  ;;  %v12757_v18 = vadd.f32 %v12756_v45, %v12755_v19  ;;  %v9163_v53 = vpop.f32.mrb[174].mxu1 }
 0x44f   :  { %v12776_v11 = vsel %vm2110_vm2, %v9163_v53, 0.0  ;;  %v15685_v8 = vpop.f32.mrb[175].mxu1 }
 0x450   :  { %v13130_v51 = vmul.f32 0.125, %v12747_v38  ;;  %v12758_v40 = vrot.slane %v12757_v18, 2  ;;  %v12777_v46 = vrot.slane %v12776_v11, 4  ;;  %v12767_v29 = vrot.slane %v12766_v20, 1 }
 0x452   :  { %v13219_v32 = vsel %vm13206_vm4, %v13130_v51, %v13218_v10  ;;  %v12759_v37 = vadd.f32 %v12758_v40, %v12757_v18  ;;  %v12778_v34 = vadd.f32 %v12777_v46, %v12776_v11  ;;  %v9090_v27 = vpop.f32.mrb[174].mxu0  ;;  %v12768_v48 = vadd.f32 %v12767_v29, %v12766_v20 }
 0x453   :  { %v13220_v16 = vsel %vm13208_vm5, %v13131_v12, %v13219_v32  ;;  %v12769_v62 = vsel %vm2110_vm2, %v9090_v27, 0.0  ;;  %v15680_v14 = vpop.f32.mrb[175].mxu0 }
 0x454   :  { %v12760_v17 = vrot.slane %v12759_v37, 1  ;;  %v12779_v39 = vrot.slane %v12778_v34, 2  ;;  %v12770_v42 = vrot.slane %v12769_v62, 4  ;;  %v13133_v25 = vmul.f32 0.125, %v12768_v48 }
 0x456   :  { %v12761_v54 = vadd.f32 %v12760_v17, %v12759_v37  ;;  %v12780_v21 = vadd.f32 %v12779_v39, %v12778_v34  ;;  %v12771_v41 = vadd.f32 %v12770_v42, %v12769_v62  ;;  %v9309_v49 = vpop.f32.mrb[176].mxu1 }
 0x457   :  { %v12790_v56 = vsel %vm2110_vm2, %v9309_v49, 0.0  ;;  %v15695_v47 = vpop.f32.mrb[177].mxu1 }
 0x458   :  { %v13132_v44 = vmul.f32 0.125, %v12761_v54  ;;  %v12772_v58 = vrot.slane %v12771_v41, 2  ;;  %v12791_v28 = vrot.slane %v12790_v56, 4  ;;  %v12781_v0 = vrot.slane %v12780_v21, 1 }
 0x45a   :  { %v13221_v9 = vsel %vm13210_vm6, %v13132_v44, %v13220_v16  ;;  %v12773_v30 = vadd.f32 %v12772_v58, %v12771_v41  ;;  %v12792_v4 = vadd.f32 %v12791_v28, %v12790_v56  ;;  %v9236_v31 = vpop.f32.mrb[176].mxu0  ;;  %v12782_v61 = vadd.f32 %v12781_v0, %v12780_v21 }
 0x45b   :  { %v12783_v3 = vsel %vm2110_vm2, %v9236_v31, 0.0  ;;  %v15690_v52 = vpop.f32.mrb[177].mxu0  ;;  %v13222_v5 = vsel %vm13212_vm7, %v13133_v25, %v13221_v9 }
 0x45c   :  { %v12774_v57 = vrot.slane %v12773_v30, 1  ;;  %v12793_v23 = vrot.slane %v12792_v4, 2  ;;  %v12784_v55 = vrot.slane %v12783_v3, 4  ;;  %v13135_v1 = vmul.f32 0.125, %v12782_v61 }
 0x45e   :  { %v12775_v43 = vadd.f32 %v12774_v57, %v12773_v30  ;;  %v12794_v35 = vadd.f32 %v12793_v23, %v12792_v4  ;;  %v12785_v26 = vadd.f32 %v12784_v55, %v12783_v3  ;;  %v9382_v2 = vpop.f32.mrb[178].mxu0 }
 0x45f   :  { %v12797_v24 = vsel %vm2110_vm2, %v9382_v2, 0.0  ;;  %v15700_v59 = vpop.f32.mrb[179].mxu0 }
 0x460   :  { %v13134_v50 = vmul.f32 0.125, %v12775_v43  ;;  %v12795_v33 = vrot.slane %v12794_v35, 1  ;;  %v12786_v10 = vrot.slane %v12785_v26, 2  ;;  %v12798_v63 = vrot.slane %v12797_v24, 4 }
 0x462   :  { %v12787_v22 = vadd.f32 %v12786_v10, %v12785_v26  ;;  %v12799_v19 = vadd.f32 %v12798_v63, %v12797_v24  ;;  %v9455_v7 = vpop.f32.mrb[178].mxu1  ;;  %v9528_v15 = vpop.f32.mrb[180].mxu0  ;;  %v13223_v6 = vsel %vm13214_vm8, %v13134_v50, %v13222_v5  ;;  %v12796_v45 = vadd.f32 %v12795_v33, %v12794_v35 }
 0x463   :  { %v12804_v60 = vsel %vm2110_vm2, %v9455_v7, 0.0  ;;  %v12811_v38 = vsel %vm2110_vm2, %v9528_v15, 0.0  ;;  %v15705_v20 = vpop.f32.mrb[179].mxu1  ;;  %v15710_v18 = vpop.f32.mrb[181].mxu0  ;;  %v13224_v53 = vsel %vm13216_vm9, %v13135_v1, %v13223_v6 }
 0x464   :  { %v12788_v11 = vrot.slane %v12787_v22, 1  ;;  %v12800_v8 = vrot.slane %v12799_v19, 2  ;;  %v12805_v51 = vrot.slane %v12804_v60, 4  ;;  %15929 = vmatmul.mubr.msk.f32.vlgmr.msra.gmra.mrb[224].mxu0 %vm2110_vm2, %v13224_v53  ;;  %v12812_v40 = vrot.slane %v12811_v38, 4 }
 0x465   :  { %15937 = vmatpush3.msra.mxu0 %v19659_v13  ;;  %v13137_v34 = vmul.f32 0.125, %v12796_v45 }
 0x466   :  { %v12789_v46 = vadd.f32 %v12788_v11, %v12787_v22  ;;  %v12801_v12 = vadd.f32 %v12800_v8, %v12799_v19  ;;  %v12806_v29 = vadd.f32 %v12805_v51, %v12804_v60  ;;  %v9601_v32 = vpop.f32.mrb[180].mxu1  ;;  %v9674_v37 = vpop.f32.mrb[182].mxu0  ;;  %v12813_v27 = vadd.f32 %v12812_v40, %v12811_v38 }
 0x467   :  { %v12818_v16 = vsel %vm2110_vm2, %v9601_v32, 0.0  ;;  %v12825_v62 = vsel %vm2110_vm2, %v9674_v37, 0.0  ;;  %v15715_v14 = vpop.f32.mrb[181].mxu1  ;;  %v15720_v17 = vpop.f32.mrb[183].mxu0 }
 0x468   :  { %v13136_v39 = vmul.f32 0.125, %v12789_v46  ;;  %v12802_v42 = vrot.slane %v12801_v12, 1  ;;  %v12807_v48 = vrot.slane %v12806_v29, 2  ;;  %v12819_v54 = vrot.slane %v12818_v16, 4 }
 0x469   :  { %v12814_v21 = vrot.slane %v12813_v27, 2  ;;  %v12826_v41 = vrot.slane %v12825_v62, 4 }
 0x46a   :  { %v13320_v13 = vsel %vm13204_vm3, %v13137_v34, %v13136_v39  ;;  %v12803_v49 = vadd.f32 %v12802_v42, %v12801_v12  ;;  %v12808_v56 = vadd.f32 %v12807_v48, %v12806_v29  ;;  %v12820_v47 = vadd.f32 %v12819_v54, %v12818_v16  ;;  %v9747_v44 = vpop.f32.mrb[182].mxu1  ;;  %v9820_v58 = vpop.f32.mrb[184].mxu0 }
 0x46b   :  { %v12815_v28 = vadd.f32 %v12814_v21, %v12813_v27  ;;  %v12827_v25 = vadd.f32 %v12826_v41, %v12825_v62  ;;  %v12832_v0 = vsel %vm2110_vm2, %v9747_v44, 0.0  ;;  %v12839_v9 = vsel %vm2110_vm2, %v9820_v58, 0.0  ;;  %v15725_v30 = vpop.f32.mrb[183].mxu1  ;;  %v15730_v4 = vpop.f32.mrb[185].mxu0 }
 0x46c   :  { %v13138_v31 = vmul.f32 0.125, %v12803_v49  ;;  %v12809_v3 = vrot.slane %v12808_v56, 1  ;;  %v12821_v52 = vrot.slane %v12820_v47, 2  ;;  %v12833_v5 = vrot.slane %v12832_v0, 4 }
 0x46d   :  { %v12816_v57 = vrot.slane %v12815_v28, 1  ;;  %v12828_v23 = vrot.slane %v12827_v25, 2  ;;  %v12840_v55 = vrot.slane %v12839_v9, 4 }
 0x46e   :  { %v13321_v61 = vsel %vm13206_vm4, %v13138_v31, %v13320_v13  ;;  %v12810_v43 = vadd.f32 %v12809_v3, %v12808_v56  ;;  %v12822_v35 = vadd.f32 %v12821_v52, %v12820_v47  ;;  %v12834_v26 = vadd.f32 %v12833_v5, %v12832_v0  ;;  %v9893_v2 = vpop.f32.mrb[184].mxu1  ;;  %v9966_v24 = vpop.f32.mrb[186].mxu0 }
 0x46f   :  { %v12817_v59 = vadd.f32 %v12816_v57, %v12815_v28  ;;  %v12829_v50 = vadd.f32 %v12828_v23, %v12827_v25  ;;  %v12841_v33 = vadd.f32 %v12840_v55, %v12839_v9  ;;  %v12846_v10 = vsel %vm2110_vm2, %v9893_v2, 0.0  ;;  %v15735_v63 = vpop.f32.mrb[185].mxu1  ;;  %v15740_v1 = vpop.f32.mrb[187].mxu0 }
 0x470   :  { %v13139_v22 = vmul.f32 0.125, %v12810_v43  ;;  %v12823_v19 = vrot.slane %v12822_v35, 1  ;;  %v12835_v7 = vrot.slane %v12834_v26, 2  ;;  %v12847_v15 = vrot.slane %v12846_v10, 4 }
 0x471   :  { %v13140_v6 = vmul.f32 0.125, %v12817_v59  ;;  %v12830_v45 = vrot.slane %v12829_v50, 1  ;;  %v12842_v60 = vrot.slane %v12841_v33, 2  ;;  %v12853_v38 = vsel %vm2110_vm2, %v9966_v24, 0.0 }
 0x472   :  { %v13322_v20 = vsel %vm13208_vm5, %v13139_v22, %v13321_v61  ;;  %v12824_v18 = vadd.f32 %v12823_v19, %v12822_v35  ;;  %v12836_v53 = vadd.f32 %v12835_v7, %v12834_v26  ;;  %v12848_v11 = vadd.f32 %v12847_v15, %v12846_v10  ;;  %v10039_v8 = vpop.f32.mrb[186].mxu1  ;;  %v10112_v51 = vpop.f32.mrb[188].mxu0 }
 0x473   :  { %v12831_v40 = vadd.f32 %v12830_v45, %v12829_v50  ;;  %v12843_v46 = vadd.f32 %v12842_v60, %v12841_v33  ;;  %v12854_v12 = vrot.slane %v12853_v38, 4  ;;  %v12860_v29 = vsel %vm2110_vm2, %v10039_v8, 0.0  ;;  %v15745_v32 = vpop.f32.mrb[187].mxu1  ;;  %v15750_v37 = vpop.f32.mrb[189].mxu0 }
 0x474   :  { %v19703_v34 = vmul.f32 0.125, %v12824_v18  ;;  %v12837_v27 = vrot.slane %v12836_v53, 1  ;;  %v12849_v16 = vrot.slane %v12848_v11, 2  ;;  %v12861_v62 = vrot.slane %v12860_v29, 4 }
 0x475   :  { %v19705_v14 = vmul.f32 0.125, %v12831_v40  ;;  %v12844_v17 = vrot.slane %v12843_v46, 1  ;;  %v12855_v39 = vadd.f32 %v12854_v12, %v12853_v38  ;;  %v12867_v42 = vsel %vm2110_vm2, %v10112_v51, 0.0 }
 0x476   :  { %v12838_v48 = vadd.f32 %v12837_v27, %v12836_v53  ;;  %v12850_v54 = vadd.f32 %v12849_v16, %v12848_v11  ;;  %v12862_v21 = vadd.f32 %v12861_v62, %v12860_v29  ;;  %v12868_v41 = vrot.slane %v12867_v42, 4  ;;  %v10185_v13 = vpop.f32.mrb[188].mxu1  ;;  %v10258_v49 = vpop.f32.mrb[190].mxu0 }
 0x477   :  { %v12845_v56 = vadd.f32 %v12844_v17, %v12843_v46  ;;  %v12856_v47 = vrot.slane %v12855_v39, 2  ;;  %v12874_v44 = vsel %vm2110_vm2, %v10185_v13, 0.0  ;;  %v12881_v58 = vsel %vm2110_vm2, %v10258_v49, 0.0  ;;  %v15755_v28 = vpop.f32.mrb[189].mxu1  ;;  %v15760_v25 = vpop.f32.mrb[191].mxu0 }
 0x478   :  { %v13143_v0 = vmul.f32 0.125, %v12838_v48  ;;  %v12851_v9 = vrot.slane %v12850_v54, 1  ;;  %v12863_v30 = vrot.slane %v12862_v21, 2  ;;  %v12869_v4 = vadd.f32 %v12868_v41, %v12867_v42 }
 0x479   :  { %v13144_v31 = vmul.f32 0.125, %v12845_v56  ;;  %v12857_v3 = vadd.f32 %v12856_v47, %v12855_v39  ;;  %v12875_v52 = vrot.slane %v12874_v44, 4  ;;  %v12882_v5 = vrot.slane %v12881_v58, 4 }
 0x47a   :  { %v12852_v57 = vadd.f32 %v12851_v9, %v12850_v54  ;;  %v12864_v23 = vadd.f32 %v12863_v30, %v12862_v21  ;;  %v12870_v55 = vrot.slane %v12869_v4, 2  ;;  %v10331_v61 = vpop.f32.mrb[190].mxu1  ;;  %v10404_v43 = vpop.f32.mrb[192].mxu0  ;;  %v13323_v35 = vsel %vm13210_vm6, %v13140_v6, %v13322_v20 }
 0x47b   :  { %v12858_v26 = vrot.slane %v12857_v3, 1  ;;  %v12876_v2 = vadd.f32 %v12875_v52, %v12874_v44  ;;  %v12883_v24 = vadd.f32 %v12882_v5, %v12881_v58  ;;  %v12888_v59 = vsel %vm2110_vm2, %v10331_v61, 0.0  ;;  %v15765_v50 = vpop.f32.mrb[191].mxu1  ;;  %v15770_v33 = vpop.f32.mrb[193].mxu0 }
 0x47c   :  { %v13145_v10 = vmul.f32 0.125, %v12852_v57  ;;  %v12865_v63 = vrot.slane %v12864_v23, 1  ;;  %v12871_v1 = vadd.f32 %v12870_v55, %v12869_v4  ;;  %v12889_v22 = vrot.slane %v12888_v59, 4 }
 0x47d   :  { %v12859_v19 = vadd.f32 %v12858_v26, %v12857_v3  ;;  %v12877_v7 = vrot.slane %v12876_v2, 2  ;;  %v12884_v15 = vrot.slane %v12883_v24, 2  ;;  %v12895_v45 = vsel %vm2110_vm2, %v10404_v43, 0.0 }
 0x47e   :  { %v13327_v60 = vsel %vm13204_vm3, %v13145_v10, %v13144_v31  ;;  %v12866_v38 = vadd.f32 %v12865_v63, %v12864_v23  ;;  %v12872_v6 = vrot.slane %v12871_v1, 1  ;;  %v12890_v20 = vadd.f32 %v12889_v22, %v12888_v59  ;;  %v10477_v18 = vpop.f32.mrb[192].mxu1  ;;  %v10550_v53 = vpop.f32.mrb[194].mxu0 }
 0x47f   :  { %v13146_v11 = vmul.f32 0.125, %v12859_v19  ;;  %v12878_v8 = vadd.f32 %v12877_v7, %v12876_v2  ;;  %v12885_v51 = vadd.f32 %v12884_v15, %v12883_v24  ;;  %v12896_v40 = vrot.slane %v12895_v45, 4  ;;  %v15775_v46 = vpop.f32.mrb[193].mxu1  ;;  %v15780_v12 = vpop.f32.mrb[195].mxu0 }
 0x480   :  { %v13147_v29 = vmul.f32 0.125, %v12866_v38  ;;  %v12873_v32 = vadd.f32 %v12872_v6, %v12871_v1  ;;  %v12891_v37 = vrot.slane %v12890_v20, 2  ;;  %v13324_v27 = vsel %vm13212_vm7, %v19703_v34, %v13323_v35 }
 0x481   :  { %v13328_v16 = vsel %vm13206_vm4, %v13146_v11, %v13327_v60  ;;  %v12879_v62 = vrot.slane %v12878_v8, 1  ;;  %v12886_v17 = vrot.slane %v12885_v51, 1  ;;  %v12897_v39 = vadd.f32 %v12896_v40, %v12895_v45 }
 0x482   :  { %v13329_v42 = vsel %vm13208_vm5, %v13147_v29, %v13328_v16  ;;  %v13148_v48 = vmul.f32 0.125, %v12873_v32  ;;  %v12892_v54 = vadd.f32 %v12891_v37, %v12890_v20  ;;  %v13325_v21 = vsel %vm13214_vm8, %v19705_v14, %v13324_v27  ;;  %v10623_v41 = vpop.f32.mrb[194].mxu1  ;;  %v10696_v13 = vpop.f32.mrb[196].mxu0 }
 0x483   :  { %v12880_v49 = vadd.f32 %v12879_v62, %v12878_v8  ;;  %v12887_v56 = vadd.f32 %v12886_v17, %v12885_v51  ;;  %v12898_v47 = vrot.slane %v12897_v39, 2  ;;  %v13326_v44 = vsel %vm13216_vm9, %v13143_v0, %v13325_v21  ;;  %v15785_v34 = vpop.f32.mrb[195].mxu1  ;;  %v15790_v58 = vpop.f32.mrb[197].mxu0 }
 0x484   :  { %v13330_v28 = vsel %vm13210_vm6, %v13148_v48, %v13329_v42  ;;  %v12893_v25 = vrot.slane %v12892_v54, 1  ;;  %15933 = vmatprep.mubr.msk.f32.mxu1 %vm2110_vm2, %v13326_v44  ;;  %v12902_v9 = vsel %vm2110_vm2, %v10477_v18, 0.0  ;;  %v12909_v30 = vsel %vm2110_vm2, %v10550_v53, 0.0 }
 0x485   :  { %v13149_v4 = vmul.f32 0.125, %v12880_v49  ;;  %v19725_v14 = vmul.f32 0.125, %v12887_v56  ;;  %v12899_v31 = vadd.f32 %v12898_v47, %v12897_v39  ;;  %v12903_v3 = vrot.slane %v12902_v9, 4 }
 0x486   :  { %v12894_v52 = vadd.f32 %v12893_v25, %v12892_v54  ;;  %v12910_v5 = vrot.slane %v12909_v30, 4  ;;  %v12916_v0 = vsel %vm2110_vm2, %v10623_v41, 0.0  ;;  %v12923_v57 = vsel %vm2110_vm2, %v10696_v13, 0.0  ;;  %v10769_v23 = vpop.f32.mrb[196].mxu1  ;;  %v10842_v55 = vpop.f32.mrb[198].mxu0 }
 0x487   :  { %v12900_v61 = vrot.slane %v12899_v31, 1  ;;  %v12904_v43 = vadd.f32 %v12903_v3, %v12902_v9  ;;  %v12917_v35 = vrot.slane %v12916_v0, 4  ;;  %v12924_v26 = vrot.slane %v12923_v57, 4  ;;  %v15795_v2 = vpop.f32.mrb[197].mxu1  ;;  %v15800_v24 = vpop.f32.mrb[199].mxu0 }
 0x488   :  { %v19729_v59 = vmul.f32 0.125, %v12894_v52  ;;  %v12911_v50 = vadd.f32 %v12910_v5, %v12909_v30  ;;  %v12930_v33 = vsel %vm2110_vm2, %v10769_v23, 0.0  ;;  %v12937_v10 = vsel %vm2110_vm2, %v10842_v55, 0.0 }
 0x489   :  { %v12901_v63 = vadd.f32 %v12900_v61, %v12899_v31  ;;  %v12905_v1 = vrot.slane %v12904_v43, 2  ;;  %v12918_v22 = vadd.f32 %v12917_v35, %v12916_v0  ;;  %v12925_v19 = vadd.f32 %v12924_v26, %v12923_v57 }
 0x48a   :  { %v12912_v7 = vrot.slane %v12911_v50, 2  ;;  %v12931_v15 = vrot.slane %v12930_v33, 4  ;;  %v12938_v45 = vrot.slane %v12937_v10, 4  ;;  %v10915_v60 = vpop.f32.mrb[198].mxu1  ;;  %v10988_v38 = vpop.f32.mrb[200].mxu0  ;;  %v13331_v6 = vsel %vm13212_vm7, %v13149_v4, %v13330_v28 }
 0x48b   :  { %v13152_v20 = vmul.f32 0.125, %v12901_v63  ;;  %v12906_v18 = vadd.f32 %v12905_v1, %v12904_v43  ;;  %v12919_v53 = vrot.slane %v12918_v22, 2  ;;  %v12926_v11 = vrot.slane %v12925_v19, 2  ;;  %v15805_v8 = vpop.f32.mrb[199].mxu1  ;;  %v15810_v51 = vpop.f32.mrb[201].mxu0 }
 0x48c   :  { %v12913_v40 = vadd.f32 %v12912_v7, %v12911_v50  ;;  %v12932_v46 = vadd.f32 %v12931_v15, %v12930_v33  ;;  %v12939_v12 = vadd.f32 %v12938_v45, %v12937_v10  ;;  %v12944_v29 = vsel %vm2110_vm2, %v10915_v60, 0.0 }
 0x48d   :  { %v12907_v32 = vrot.slane %v12906_v18, 1  ;;  %v12920_v37 = vadd.f32 %v12919_v53, %v12918_v22  ;;  %v12927_v27 = vadd.f32 %v12926_v11, %v12925_v19  ;;  %v12945_v16 = vrot.slane %v12944_v29, 4 }
 0x48e   :  { %v12914_v62 = vrot.slane %v12913_v40, 1  ;;  %v12933_v17 = vrot.slane %v12932_v46, 2  ;;  %v12940_v39 = vrot.slane %v12939_v12, 2  ;;  %v12951_v42 = vsel %vm2110_vm2, %v10988_v38, 0.0  ;;  %v11061_v48 = vpop.f32.mrb[200].mxu1  ;;  %v11134_v54 = vpop.f32.mrb[202].mxu0 }
 0x48f   :  { %v12908_v21 = vadd.f32 %v12907_v32, %v12906_v18  ;;  %v12921_v41 = vrot.slane %v12920_v37, 1  ;;  %v12928_v13 = vrot.slane %v12927_v27, 1  ;;  %v12946_v49 = vadd.f32 %v12945_v16, %v12944_v29  ;;  %v15815_v56 = vpop.f32.mrb[201].mxu1  ;;  %v15820_v47 = vpop.f32.mrb[203].mxu0 }
 0x490   :  { %v12915_v44 = vadd.f32 %v12914_v62, %v12913_v40  ;;  %v12934_v34 = vadd.f32 %v12933_v17, %v12932_v46  ;;  %v12941_v58 = vadd.f32 %v12940_v39, %v12939_v12  ;;  %v12952_v28 = vrot.slane %v12951_v42, 4 }
 0x491   :  { %v13153_v25 = vmul.f32 0.125, %v12908_v21  ;;  %v12922_v9 = vadd.f32 %v12921_v41, %v12920_v37  ;;  %v12929_v30 = vadd.f32 %v12928_v13, %v12927_v27  ;;  %v12947_v4 = vrot.slane %v12946_v49, 2 }
 0x492   :  { %v13154_v31 = vmul.f32 0.125, %v12915_v44  ;;  %v12935_v3 = vrot.slane %v12934_v34, 1  ;;  %v12942_v52 = vrot.slane %v12941_v58, 1  ;;  %v12953_v5 = vadd.f32 %v12952_v28, %v12951_v42  ;;  %v11207_v0 = vpop.f32.mrb[202].mxu1  ;;  %v11280_v57 = vpop.f32.mrb[204].mxu0 }
 0x493   :  { %v13429_v23 = vsel %vm13204_vm3, %v13153_v25, %v13152_v20  ;;  %v13155_v55 = vmul.f32 0.125, %v12922_v9  ;;  %v19737_v61 = vmul.f32 0.125, %v12929_v30  ;;  %v12948_v43 = vadd.f32 %v12947_v4, %v12946_v49  ;;  %v15825_v35 = vpop.f32.mrb[203].mxu1  ;;  %v15830_v26 = vpop.f32.mrb[205].mxu0 }
 0x494   :  { %v13430_v2 = vsel %vm13206_vm4, %v13154_v31, %v13429_v23  ;;  %v12936_v24 = vadd.f32 %v12935_v3, %v12934_v34  ;;  %v12943_v50 = vadd.f32 %v12942_v52, %v12941_v58  ;;  %v12954_v33 = vrot.slane %v12953_v5, 2 }
 0x495   :  { %v19741_v10 = vsel %vm13208_vm5, %v13155_v55, %v13430_v2  ;;  %v12949_v63 = vrot.slane %v12948_v43, 1  ;;  %v13332_v1 = vsel %vm13214_vm8, %v19725_v14, %v13331_v6  ;;  %v12958_v22 = vsel %vm2110_vm2, %v11061_v48, 0.0 }
 0x496   :  { %v19746_v19 = vmul.f32 0.125, %v12936_v24  ;;  %v19748_v7 = vmul.f32 0.125, %v12943_v50  ;;  %v12955_v15 = vadd.f32 %v12954_v33, %v12953_v5  ;;  %v13333_v45 = vsel %vm13216_vm9, %v19729_v59, %v13332_v1  ;;  %v11353_v60 = vpop.f32.mrb[204].mxu1  ;;  %v11426_v38 = vpop.f32.mrb[206].mxu0 }
 0x497   :  { %v12950_v20 = vadd.f32 %v12949_v63, %v12948_v43  ;;  %15934 = vmatmul.mubr.msk.f32.vlgmr.msra.gmra.mrb[224].mxu1 %vm2110_vm2, %v13333_v45  ;;  %v12959_v18 = vrot.slane %v12958_v22, 4  ;;  %v12965_v53 = vsel %vm2110_vm2, %v11134_v54, 0.0  ;;  %v12972_v14 = vsel %vm2110_vm2, %v11207_v0, 0.0  ;;  %v15835_v6 = vpop.f32.mrb[205].mxu1  ;;  %v15840_v11 = vpop.f32.mrb[207].mxu0 }
 0x498   :  { %v12956_v8 = vrot.slane %v12955_v15, 1  ;;  %v12966_v51 = vrot.slane %v12965_v53, 4  ;;  %v12973_v40 = vrot.slane %v12972_v14, 4  ;;  %v12979_v46 = vsel %vm2110_vm2, %v11280_v57, 0.0  ;;  %15942 = vmatpush3.msra.mxu1 %v19675_v36 }
 0x499   :  { %v19757_v59 = vmul.f32 0.125, %v12950_v20  ;;  %v12960_v12 = vadd.f32 %v12959_v18, %v12958_v22  ;;  %v12980_v29 = vrot.slane %v12979_v46, 4  ;;  %v12986_v32 = vsel %vm2110_vm2, %v11353_v60, 0.0 }
 0x49a   :  { %v12957_v37 = vadd.f32 %v12956_v8, %v12955_v15  ;;  %v12967_v27 = vadd.f32 %v12966_v51, %v12965_v53  ;;  %v12974_v16 = vadd.f32 %v12973_v40, %v12972_v14  ;;  %v12987_v62 = vrot.slane %v12986_v32, 4  ;;  %v11499_v17 = vpop.f32.mrb[206].mxu1  ;;  %v11572_v39 = vpop.f32.mrb[208].mxu0 }
 0x49b   :  { %v12961_v42 = vrot.slane %v12960_v12, 2  ;;  %v12981_v48 = vadd.f32 %v12980_v29, %v12979_v46  ;;  %v12993_v54 = vsel %vm2110_vm2, %v11426_v38, 0.0  ;;  %v13000_v21 = vsel %vm2110_vm2, %v11499_v17, 0.0  ;;  %v15845_v41 = vpop.f32.mrb[207].mxu1  ;;  %v15850_v36 = vpop.f32.mrb[209].mxu0 }
 0x49c   :  { %v13160_v13 = vmul.f32 0.125, %v12957_v37  ;;  %v12968_v49 = vrot.slane %v12967_v27, 2  ;;  %v12975_v56 = vrot.slane %v12974_v16, 2  ;;  %v12988_v47 = vadd.f32 %v12987_v62, %v12986_v32 }
 0x49d   :  { %v12962_v44 = vadd.f32 %v12961_v42, %v12960_v12  ;;  %v12982_v34 = vrot.slane %v12981_v48, 2  ;;  %v12994_v58 = vrot.slane %v12993_v54, 4  ;;  %v13001_v28 = vrot.slane %v13000_v21, 4 }
 0x49e   :  { %v12969_v25 = vadd.f32 %v12968_v49, %v12967_v27  ;;  %v12976_v9 = vadd.f32 %v12975_v56, %v12974_v16  ;;  %v12989_v30 = vrot.slane %v12988_v47, 2  ;;  %v13007_v4 = vsel %vm2110_vm2, %v11572_v39, 0.0  ;;  %v11645_v31 = vpop.f32.mrb[208].mxu1  ;;  %v11718_v3 = vpop.f32.mrb[210].mxu0 }
 0x49f   :  { %v12963_v52 = vrot.slane %v12962_v44, 1  ;;  %v12983_v5 = vadd.f32 %v12982_v34, %v12981_v48  ;;  %v12995_v0 = vadd.f32 %v12994_v58, %v12993_v54  ;;  %v13002_v57 = vadd.f32 %v13001_v28, %v13000_v21  ;;  %v15855_v23 = vpop.f32.mrb[209].mxu1  ;;  %v15860_v55 = vpop.f32.mrb[211].mxu0 }
 0x4a0   :  { %v12970_v43 = vrot.slane %v12969_v25, 1  ;;  %v12977_v35 = vrot.slane %v12976_v9, 1  ;;  %v12990_v26 = vadd.f32 %v12989_v30, %v12988_v47  ;;  %v13008_v2 = vrot.slane %v13007_v4, 4 }
 0x4a1   :  { %v12964_v24 = vadd.f32 %v12963_v52, %v12962_v44  ;;  %v12984_v50 = vrot.slane %v12983_v5, 1  ;;  %v12996_v33 = vrot.slane %v12995_v0, 2  ;;  %v13003_v63 = vrot.slane %v13002_v57, 2 }
 0x4a2   :  { %v12971_v1 = vadd.f32 %v12970_v43, %v12969_v25  ;;  %v12978_v22 = vadd.f32 %v12977_v35, %v12976_v9  ;;  %v12991_v15 = vrot.slane %v12990_v26, 1  ;;  %v13009_v45 = vadd.f32 %v13008_v2, %v13007_v4  ;;  %v11791_v60 = vpop.f32.mrb[210].mxu1  ;;  %v11864_v38 = vpop.f32.mrb[212].mxu0 }
 0x4a3   :  { %v13161_v20 = vmul.f32 0.125, %v12964_v24  ;;  %v12985_v18 = vadd.f32 %v12984_v50, %v12983_v5  ;;  %v12997_v53 = vadd.f32 %v12996_v33, %v12995_v0  ;;  %v13004_v14 = vadd.f32 %v13003_v63, %v13002_v57  ;;  %v15865_v6 = vpop.f32.mrb[211].mxu1  ;;  %v15870_v11 = vpop.f32.mrb[213].mxu0 }
 0x4a4   :  { %v13162_v8 = vmul.f32 0.125, %v12971_v1  ;;  %v13163_v51 = vmul.f32 0.125, %v12978_v22  ;;  %v12992_v40 = vadd.f32 %v12991_v15, %v12990_v26  ;;  %v13010_v46 = vrot.slane %v13009_v45, 2 }
 0x4a5   :  { %v13436_v12 = vsel %vm13204_vm3, %v13161_v20, %v13160_v13  ;;  %v13164_v29 = vmul.f32 0.125, %v12985_v18  ;;  %v12998_v32 = vrot.slane %v12997_v53, 1  ;;  %v13005_v37 = vrot.slane %v13004_v14, 1 }
 0x4a6   :  { %v13437_v27 = vsel %vm13206_vm4, %v13162_v8, %v13436_v12  ;;  %v19765_v16 = vmul.f32 0.125, %v12992_v40  ;;  %v13011_v62 = vadd.f32 %v13010_v46, %v13009_v45  ;;  %v13432_v17 = vsel %vm13210_vm6, %v19737_v61, %v19741_v10  ;;  %v11937_v39 = vpop.f32.mrb[212].mxu1  ;;  %v12010_v42 = vpop.f32.mrb[214].mxu0 }
 0x4a7   :  { %v13438_v48 = vsel %vm13208_vm5, %v13163_v51, %v13437_v27  ;;  %v12999_v54 = vadd.f32 %v12998_v32, %v12997_v53  ;;  %v13006_v21 = vadd.f32 %v13005_v37, %v13004_v14  ;;  %v13433_v41 = vsel %vm13212_vm7, %v19746_v19, %v13432_v17  ;;  %v15875_v36 = vpop.f32.mrb[213].mxu1  ;;  %v15880_v13 = vpop.f32.mrb[215].mxu0 }
 0x4a8   :  { %v19774_v49 = vsel %vm13210_vm6, %v13164_v29, %v13438_v48  ;;  %v13012_v56 = vrot.slane %v13011_v62, 1  ;;  %v13434_v47 = vsel %vm13214_vm8, %v19748_v7, %v13433_v41  ;;  %v13014_v61 = vsel %vm2110_vm2, %v11645_v31, 0.0 }
 0x4a9   :  { %v19779_v10 = vmul.f32 0.125, %v12999_v54  ;;  %v19781_v44 = vmul.f32 0.125, %v13006_v21  ;;  %v13435_v34 = vsel %vm13216_vm9, %v19757_v59, %v13434_v47  ;;  %v13015_v58 = vrot.slane %v13014_v61, 4 }
 0x4aa   :  { %v13013_v19 = vadd.f32 %v13012_v56, %v13011_v62  ;;  %15938 = vmatprep.mubr.msk.f32.mxu0 %vm2110_vm2, %v13435_v34  ;;  %v13021_v28 = vsel %vm2110_vm2, %v11718_v3, 0.0  ;;  %v13028_v25 = vsel %vm2110_vm2, %v11791_v60, 0.0  ;;  %v13035_v9 = vsel %vm2110_vm2, %v11864_v38, 0.0  ;;  %v12083_v7 = vpop.f32.mrb[214].mxu1  ;;  %v12156_v30 = vpop.f32.mrb[216].mxu0 }
 0x4ab   :  { %v13016_v4 = vadd.f32 %v13015_v58, %v13014_v61  ;;  %v13022_v31 = vrot.slane %v13021_v28, 4  ;;  %v13029_v52 = vrot.slane %v13028_v25, 4  ;;  %v13036_v5 = vrot.slane %v13035_v9, 4  ;;  %v15885_v0 = vpop.f32.mrb[215].mxu1  ;;  %v15890_v57 = vpop.f32.mrb[217].mxu0 }
 0x4ac   :  { %v13168_v23 = vmul.f32 0.125, %v13013_v19  ;;  %v13042_v59 = vsel %vm2110_vm2, %v11937_v39, 0.0  ;;  %v13049_v55 = vsel %vm2110_vm2, %v12010_v42, 0.0  ;;  %v13056_v43 = vsel %vm2110_vm2, %v12083_v7, 0.0 }
 0x4ad   :  { %v13017_v3 = vrot.slane %v13016_v4, 2  ;;  %v13023_v35 = vadd.f32 %v13022_v31, %v13021_v28  ;;  %v13030_v26 = vadd.f32 %v13029_v52, %v13028_v25  ;;  %v13037_v2 = vadd.f32 %v13036_v5, %v13035_v9 }
 0x4ae   :  { %v13043_v24 = vrot.slane %v13042_v59, 4  ;;  %v13050_v50 = vrot.slane %v13049_v55, 4  ;;  %v13057_v33 = vrot.slane %v13056_v43, 4  ;;  %v13063_v63 = vsel %vm2110_vm2, %v12156_v30, 0.0  ;;  %v12229_v1 = vpop.f32.mrb[216].mxu1  ;;  %v12302_v22 = vpop.f32.mrb[218].mxu0 }
 0x4af   :  { %v13018_v15 = vadd.f32 %v13017_v3, %v13016_v4  ;;  %v13024_v45 = vrot.slane %v13023_v35, 2  ;;  %v13031_v60 = vrot.slane %v13030_v26, 2  ;;  %v13038_v38 = vrot.slane %v13037_v2, 2  ;;  %v15895_v20 = vpop.f32.mrb[217].mxu1  ;;  %v15900_v18 = vpop.f32.mrb[219].mxu0 }
 0x4b0   :  { %v13044_v53 = vadd.f32 %v13043_v24, %v13042_v59  ;;  %v13051_v14 = vadd.f32 %v13050_v50, %v13049_v55  ;;  %v13058_v6 = vadd.f32 %v13057_v33, %v13056_v43  ;;  %v13064_v11 = vrot.slane %v13063_v63, 4 }
 0x4b1   :  { %v13019_v8 = vrot.slane %v13018_v15, 1  ;;  %v13025_v51 = vadd.f32 %v13024_v45, %v13023_v35  ;;  %v13032_v40 = vadd.f32 %v13031_v60, %v13030_v26  ;;  %v13039_v46 = vadd.f32 %v13038_v38, %v13037_v2 }
 0x4b2   :  { %v13045_v12 = vrot.slane %v13044_v53, 2  ;;  %v13052_v29 = vrot.slane %v13051_v14, 2  ;;  %v13059_v32 = vrot.slane %v13058_v6, 2  ;;  %v13065_v37 = vadd.f32 %v13064_v11, %v13063_v63  ;;  %v12375_v27 = vpop.f32.mrb[218].mxu1 }
 0x4b3   :  { %v13020_v62 = vadd.f32 %v13019_v8, %v13018_v15  ;;  %v13026_v17 = vrot.slane %v13025_v51, 1  ;;  %v13033_v39 = vrot.slane %v13032_v40, 1  ;;  %v13040_v42 = vrot.slane %v13039_v46, 1  ;;  %v15905_v48 = vpop.f32.mrb[219].mxu1  ;;  %v12448_v54 = vpop.f32.mrb[220].mxu0 }
 0x4b4   :  { %v13046_v21 = vadd.f32 %v13045_v12, %v13044_v53  ;;  %v13053_v41 = vadd.f32 %v13052_v29, %v13051_v14  ;;  %v13060_v36 = vadd.f32 %v13059_v32, %v13058_v6  ;;  %v13066_v13 = vrot.slane %v13065_v37, 2  ;;  %v15910_v56 = vpop.f32.mrb[221].mxu0 }
 0x4b5   :  { %v13169_v47 = vmul.f32 0.125, %v13020_v62  ;;  %v13027_v61 = vadd.f32 %v13026_v17, %v13025_v51  ;;  %v13034_v34 = vadd.f32 %v13033_v39, %v13032_v40  ;;  %v13041_v58 = vadd.f32 %v13040_v42, %v13039_v46 }
 0x4b6   :  { %v13047_v19 = vrot.slane %v13046_v21, 1  ;;  %v13054_v28 = vrot.slane %v13053_v41, 1  ;;  %v13061_v25 = vrot.slane %v13060_v36, 1  ;;  %v13067_v9 = vadd.f32 %v13066_v13, %v13065_v37  ;;  %v12521_v7 = vpop.f32.mrb[220].mxu1 }
 0x4b7   :  { %v13538_v30 = vsel %vm13204_vm3, %v13169_v47, %v13168_v23  ;;  %v13170_v4 = vmul.f32 0.125, %v13027_v61  ;;  %v13171_v31 = vmul.f32 0.125, %v13034_v34  ;;  %v13172_v52 = vmul.f32 0.125, %v13041_v58  ;;  %v15915_v5 = vpop.f32.mrb[221].mxu1 }
 0x4b8   :  { %v13048_v0 = vadd.f32 %v13047_v19, %v13046_v21  ;;  %v13055_v57 = vadd.f32 %v13054_v28, %v13053_v41  ;;  %v13062_v59 = vadd.f32 %v13061_v25, %v13060_v36  ;;  %v13068_v55 = vrot.slane %v13067_v9, 1 }
 0x4b9   :  { %v13539_v43 = vsel %vm13206_vm4, %v13170_v4, %v13538_v30  ;;  %v13440_v3 = vsel %vm13212_vm7, %v19765_v16, %v19774_v49  ;;  %v13070_v35 = vsel %vm2110_vm2, %v12229_v1, 0.0  ;;  %v13077_v26 = vsel %vm2110_vm2, %v12302_v22, 0.0 }
 0x4ba   :  { %v13540_v23 = vsel %vm13208_vm5, %v13171_v31, %v13539_v43  ;;  %v13173_v2 = vmul.f32 0.125, %v13048_v0  ;;  %v13174_v24 = vmul.f32 0.125, %v13055_v57  ;;  %v13175_v50 = vmul.f32 0.125, %v13062_v59  ;;  %v12667_v33 = vpop.f32.mrb[222].mxu1 }
 0x4bb   :  { %v13069_v63 = vadd.f32 %v13068_v55, %v13067_v9  ;;  %v13441_v15 = vsel %vm13214_vm8, %v19779_v10, %v13440_v3  ;;  %v13071_v45 = vrot.slane %v13070_v35, 4  ;;  %v13078_v60 = vrot.slane %v13077_v26, 4  ;;  %v12594_v38 = vpop.f32.mrb[222].mxu0  ;;  %v15925_v20 = vpop.f32.mrb[223].mxu1 }
 0x4bc   :  { %v13442_v16 = vsel %vm13216_vm9, %v19781_v44, %v13441_v15  ;;  %v13084_v49 = vsel %vm2110_vm2, %v12375_v27, 0.0  ;;  %v13091_v1 = vsel %vm2110_vm2, %v12448_v54, 0.0  ;;  %v13098_v22 = vsel %vm2110_vm2, %v12521_v7, 0.0  ;;  %v15920_v18 = vpop.f32.mrb[223].mxu0 }
 0x4bd   :  { %v13176_v53 = vmul.f32 0.125, %v13069_v63  ;;  %15939 = vmatmul.mubr.msk.f32.vlgmr.msra.gmra.mrb[226].mxu0 %vm2110_vm2, %v13442_v16  ;;  %v13072_v14 = vadd.f32 %v13071_v45, %v13070_v35  ;;  %v13079_v6 = vadd.f32 %v13078_v60, %v13077_v26  ;;  %v13085_v10 = vrot.slane %v13084_v49, 4 }
 0x4be   :  { %v13092_v11 = vrot.slane %v13091_v1, 4  ;;  %v13099_v8 = vrot.slane %v13098_v22, 4  ;;  %v13112_v51 = vsel %vm2110_vm2, %v12667_v33, 0.0  ;;  %v13105_v40 = vsel %vm2110_vm2, %v12594_v38, 0.0 }
 0x4bf   :  { %v13073_v44 = vrot.slane %v13072_v14, 2  ;;  %v13080_v46 = vrot.slane %v13079_v6, 2  ;;  %v13086_v12 = vadd.f32 %v13085_v10, %v13084_v49  ;;  %v13113_v29 = vrot.slane %v13112_v51, 4 }
 0x4c0   :  { %v13093_v32 = vadd.f32 %v13092_v11, %v13091_v1  ;;  %v13100_v37 = vadd.f32 %v13099_v8, %v13098_v22  ;;  %v13106_v27 = vrot.slane %v13105_v40, 4  ;;  %v13541_v62 = vsel %vm13210_vm6, %v13172_v52, %v13540_v23  ;;  %v13656_v1 = vld [vmem:[%s19933_s9] sm:$0xff]  ;;  %v13657_v22 = vld [vmem:[%s19933_s9 + $0x8] sm:$0xff] }
 0x4c1   :  { %v13074_v17 = vadd.f32 %v13073_v44, %v13072_v14  ;;  %v13081_v39 = vadd.f32 %v13080_v46, %v13079_v6  ;;  %v13087_v42 = vrot.slane %v13086_v12, 2  ;;  %v13114_v48 = vadd.f32 %v13113_v29, %v13112_v51  ;;  %v13659_v14 = vld [vmem:[%s19933_s9 + $0x18] sm:$0xff] }
 0x4c2   :  { %v13094_v54 = vrot.slane %v13093_v32, 2  ;;  %v13101_v21 = vrot.slane %v13100_v37, 2  ;;  %v13107_v41 = vadd.f32 %v13106_v27, %v13105_v40  ;;  %v13542_v36 = vsel %vm13212_vm7, %v13173_v2, %v13541_v62 }
 0x4c3   :  { %v13075_v13 = vrot.slane %v13074_v17, 1  ;;  %v13082_v56 = vrot.slane %v13081_v39, 1  ;;  %v13088_v47 = vadd.f32 %v13087_v42, %v13086_v12  ;;  %v13115_v61 = vrot.slane %v13114_v48, 2 }
 0x4c4   :  { %v13095_v34 = vadd.f32 %v13094_v54, %v13093_v32  ;;  %v13102_v58 = vadd.f32 %v13101_v21, %v13100_v37  ;;  %v13108_v19 = vrot.slane %v13107_v41, 2  ;;  %v13543_v28 = vsel %vm13214_vm8, %v13174_v24, %v13542_v36  ;;  %v14369_v21 = vld [vmem:[%s19932_s8] ss:$0 sm:$0xff] }
 0x4c5   :  { %v13076_v25 = vadd.f32 %v13075_v13, %v13074_v17  ;;  %v13083_v9 = vadd.f32 %v13082_v56, %v13081_v39  ;;  %v13089_v7 = vrot.slane %v13088_v47, 1  ;;  %v13116_v30 = vadd.f32 %v13115_v61, %v13114_v48 }
 0x4c6   :  { %v13096_v4 = vrot.slane %v13095_v34, 1  ;;  %v13103_v31 = vrot.slane %v13102_v58, 1  ;;  %v13109_v52 = vadd.f32 %v13108_v19, %v13107_v41  ;;  %v13544_v5 = vsel %vm13216_vm9, %v13175_v50, %v13543_v28  ;;  %v13753_v28 = vld [vmem:[%s19935_s11] sm:$0xff] }
 0x4c7   :  { %v13177_v0 = vmul.f32 0.125, %v13076_v25  ;;  %v13178_v57 = vmul.f32 0.125, %v13083_v9  ;;  %v13090_v59 = vadd.f32 %v13089_v7, %v13088_v47  ;;  %v13117_v55 = vrot.slane %v13116_v30, 1  ;;  %15943 = vmatprep.mubr.msk.f32.mxu1 %vm2110_vm2, %v13544_v5  ;;  %v13754_v25 = vld [vmem:[%s19935_s11 + $0x8] sm:$0xff]  ;;  %v14370_v7 = vld [vmem:[%s19934_s10] ss:$0 sm:$0xff] }
 0x4c8   :  { %v13097_v43 = vadd.f32 %v13096_v4, %v13095_v34  ;;  %v13104_v3 = vadd.f32 %v13103_v31, %v13102_v58  ;;  %v13110_v35 = vrot.slane %v13109_v52, 1  ;;  %v16071_v18 = vpack.c.bf16 %v13657_v22, %v13656_v1  ;;  %v13757_v34 = vld [vmem:[%s19936_s12] sm:$0xff]  ;;  %v13758_v58 = vld [vmem:[%s19936_s12 + $0x8] sm:$0xff]  ;;  %v13755_v5 = vld [vmem:[%s19935_s11 + $0x10] sm:$0xff]  ;;  %s16432_s10 = smov [#allocation4]  }
 0x4c9   :  { %v13545_v26 = vsel %vm13204_vm3, %v13177_v0, %v13176_v53  ;;  %v13179_v23 = vmul.f32 0.125, %v13090_v59  ;;  %v13118_v2 = vadd.f32 %v13117_v55, %v13116_v30  ;;  %v13658_v53 = vld [vmem:[%s19933_s9 + $0x10] sm:$0xff]  ;;  %v16079_v19 = vpack.c.bf16 %v13758_v58, %v13757_v34  ;;  %v13756_v0 = vld [vmem:[%s19935_s11 + $0x18] sm:$0xff]  ;;  %s13945_s27 = sshll.u32 %s16432_s10, 4  ;;  %s13946_s27 = int_to_ptr.vmem [resolvable:$true] %s13945_s27 }
 0x4ca   :  { %v13546_v24 = vsel %vm13206_vm4, %v13178_v57, %v13545_v26  ;;  %v13180_v33 = vmul.f32 0.125, %v13097_v43  ;;  %v13181_v63 = vmul.f32 0.125, %v13104_v3  ;;  %v13111_v15 = vadd.f32 %v13110_v35, %v13109_v52  ;;  %16072 = vmatprep.subr.bf16.mxu0 %v16071_v18  ;;  %s16360_s7 = scalar_lea.vmem %s13946_s27, 256  ;;  %p16365_p1 = scmp.lt.s32.totalorder %s13946_s27, %s13946_s27 }
 0x4cb   :  { %v13547_v50 = vsel %vm13208_vm5, %v13179_v23, %v13546_v24  ;;  %v13183_v38 = vmul.f32 0.125, %v13118_v2  ;;  %v16075_v6 = vpack.c.bf16 %v13659_v14, %v13658_v53  ;;  %16074 = vmatpush3.bf16.msra.mxu0 %v16071_v18  ;;  %16080 = vmatprep.subr.bf16.mxu1 %v16079_v19  ;;  %v16083_v9 = vpack.c.bf16 %v13754_v25, %v13753_v28  ;;  %p16361_p0 = scmp.ne.s32.totalorder %s13946_s27, %s16360_s7  ;;  %p16366_p2 = scmp.lt.s32.totalorder %s16360_s7, %s16360_s7 }
 0x4cc   :  { %v13548_v45 = vsel %vm13210_vm6, %v13180_v33, %v13547_v50  ;;  %v13182_v60 = vmul.f32 0.125, %v13111_v15  ;;  %v16087_v55 = vpack.c.bf16 %v13756_v0, %v13755_v5 }
 0x4cd   :  { %v13549_v20 = vsel %vm13212_vm7, %v13181_v63, %v13548_v45  ;;  %16076 = vmatprep.subr.bf16.mxu0 %v16075_v6  ;;  %p16367_p3 = por %p16366_p2, %p16365_p1 }
 0x4ce   :  { %v13550_v16 = vsel %vm13214_vm8, %v13182_v60, %v13549_v20 }
 0x4cf   :  { %v13551_v49 = vsel %vm13216_vm9, %v13183_v38, %v13550_v16  ;;  %16078 = vmatpush3.bf16.msra.mxu0 %v16075_v6  ;;  %p16368_p4 = pnand %p16367_p3, %p16361_p0 }
 0x4d0   :  { %15944 = vmatmul.mubr.msk.f32.vlgmr.msra.gmra.mrb[226].mxu1 %vm2110_vm2, %v13551_v49 }
 0x4d1   :  { %16082 = vmatpush3.bf16.msra.mxu1 %v16079_v19 }
 0x4d2   :  { %16084 = vmatprep.subr.bf16.mxu1 %v16083_v9 }
 0x537   :  { %v15930_v10 = vpop.f32.mrb[224].mxu0 }
 0x538   :  { %v13295_v11 = vpop.f32.mrb[225].mxu0  ;;  %v13638_v51 = vsel %vm85_vm0, %v15930_v10, 0.0 }
 0x539   :  { %v13631_v46 = vsel %vm85_vm0, %v13295_v11, 0.0 }
 0x56a   :  { %v15935_v8 = vpop.f32.mrb[224].mxu1 }
 0x56b   :  { %v13639_v40 = vsel %vm85_vm0, %v15935_v8, 0.0  ;;  %v13404_v44 = vpop.f32.mrb[225].mxu1 }
 0x56c   :  { %v13640_v12 = vadd.f32 %v13639_v40, %v13638_v51  ;;  %v13632_v29 = vsel %vm85_vm0, %v13404_v44, 0.0 }
 0x56d   :  { %v13633_v32 = vadd.f32 %v13632_v29, %v13631_v46 }
 0x590   :  { %v15940_v37 = vpop.f32.mrb[226].mxu0 }
 0x591   :  { %v13641_v27 = vsel %vm85_vm0, %v15940_v37, 0.0  ;;  %v13513_v62 = vpop.f32.mrb[227].mxu0 }
 0x592   :  { %v13642_v17 = vadd.f32 %v13641_v27, %v13640_v12  ;;  %v13634_v39 = vsel %vm85_vm0, %v13513_v62, 0.0 }
 0x593   :  { %v13635_v42 = vadd.f32 %v13634_v39, %v13633_v32 }
 0x5a3   :  { %v15945_v48 = vpop.f32.mrb[226].mxu1 }
 0x5a4   :  { %v13643_v54 = vsel %vm85_vm0, %v15945_v48, 0.0  ;;  %v13622_v41 = vpop.f32.mrb[227].mxu1 }
 0x5a5   :  { %v13644_v36 = vadd.f32 %v13643_v54, %v13642_v17  ;;  %v13636_v13 = vsel %vm85_vm0, %v13622_v41, 0.0 }
 0x5a6   :  { %v13637_v56 = vadd.f32 %v13636_v13, %v13635_v42 }
 0x5a7   :  { %v13653_v47 = vadd.f32 %v14369_v21, %v13644_v36 }
 0x5a8   :  { %v13652_v61 = vadd.f32 %v14369_v21, %v13637_v56 }
 0x5a9   :  { %13655 = vst.msk [vmem:[#allocation6 + $0x8] sm:$0xff] %vm85_vm0, %v13653_v47 }
 0x5aa   :  { %13654 = vst.msk [vmem:[#allocation6] sm:$0xff] %vm85_vm0, %v13652_v61  ;;  %15954 = vmatprep.mubr.msk.f32.mxu0 %vm85_vm0, %v13652_v61 }
 0x5ab   :  { %15955 = vmatmul.mubr.msk.f32.vlgmr.msra.gmra.mrb[228].mxu0 %vm85_vm0, %v13653_v47 }
 0x67e   :  { %v15956_v30 = vpop.f32.mrb[228].mxu0 }
 0x67f   :  { %v13745_v4 = vadd.f32 %v15956_v30, %v14370_v7  ;;  %v13739_v31 = vpop.f32.mrb[229].mxu0 }
 0x680   :  { %v13740_v52 = vadd.f32 %v14370_v7, %v13739_v31 }
 0x681   :  { %16356 = vtanh.f32 %v13745_v4 }
 0x682   :  { %16358 = vtanh.f32 %v13740_v52 }
 0x68b   :  { %v16357_v57 = vpop.eup %16356 }
 0x68c   :  { %v16359_v59 = vpop.eup %16358  ;;  %13752 = vst.msk [vmem:[#allocation4 + $0x8] sm:$0xff] %vm13750_vm10, %v16357_v57 }
 0x68d   :  { %13751 = vst.msk [vmem:[#allocation4] sm:$0xff] %vm13750_vm10, %v16359_v59  ;;  %15961 = vmatprep.mubr.msk.f32.mxu1 %vm13750_vm10, %v16359_v59 }
 0x68e   :  { %15962 = vmatmul.mubr.msk.f32.vlgmr.msra.gmra.mrb[228].mxu1 %vm13750_vm10, %v16357_v57 }
 0x68f   :  { %16086 = vmatpush3.bf16.msra.mxu1 %v16083_v9  ;;  %15972 = vmatprep.mubr.msk.f32.mxu1 %vm85_vm0, %v13652_v61 }
 0x690   :  { %16088 = vmatprep.subr.bf16.mxu1 %v16087_v55 }
 0x693   :  { %16090 = vmatpush3.bf16.msra.mxu1 %v16087_v55 }
 0x696   :  { %15973 = vmatmul.mubr.msk.f32.vlgmr.msra.gmra.mrb[228].mxu1 %vm85_vm0, %v13653_v47 }
 0x697   :  { %16371 = shalt.err (!%p16368_p4)
}
 0x698   :  { %s16372_s29 = scalar_lea.hbm %s19940_s16, 256 }
 0x699   :  { %p16373_p5 = scmp.ne.s32.totalorder %s19940_s16, %s16372_s29  ;;  %p16376_p6 = scmp.lt.u32.totalorder %s16372_s29, %s19940_s16 }
 0x69b   :  { %p16378_p7 = pnand %p16376_p6, %p16373_p5 }
 0x69d   :  { %16381 = shalt.err (!%p16378_p7)
}
 0x69e   :  { %s16433_s18 = smov 128   ;;  %s16434_s9 = smov 8  }
 0x69f   :  { %13951 = dma.vmem_to_hbm [thread:$0]  %s13946_s27, 256, %s19940_s16, [#allocation5], %s16433_s18, %s16433_s18, %s16434_s9  }
 0x6a0   :  { %s16435_s26 = smov [#allocation6]  }
 0x6a1   :  { %s13957_s8 = sshll.u32 %s16435_s26, 4  ;;  %s13958_s8 = int_to_ptr.vmem [resolvable:$true] %s13957_s8 }
 0x6a2   :  { %s16382_s1 = scalar_lea.vmem %s13958_s8, 256  ;;  %p16387_p9 = scmp.lt.s32.totalorder %s13958_s8, %s13958_s8 }
 0x6a3   :  { %p16383_p8 = scmp.ne.s32.totalorder %s13958_s8, %s16382_s1  ;;  %p16388_p10 = scmp.lt.s32.totalorder %s16382_s1, %s16382_s1 }
 0x6a5   :  { %p16389_p11 = por %p16388_p10, %p16387_p9 }
 0x6a7   :  { %p16390_p12 = pnand %p16389_p11, %p16383_p8 }
 0x6a9   :  { %16393 = shalt.err (!%p16390_p12)
}
 0x6aa   :  { %s16394_s22 = scalar_lea.hbm %s19941_s17, 256 }
 0x6ab   :  { %p16395_p13 = scmp.ne.s32.totalorder %s19941_s17, %s16394_s22  ;;  %p16398_p0 = scmp.lt.u32.totalorder %s16394_s22, %s19941_s17 }
 0x6ad   :  { %p16400_p1 = pnand %p16398_p0, %p16395_p13 }
 0x6af   :  { %16403 = shalt.err (!%p16400_p1)
}
 0x6b0   :  { %13963 = dma.vmem_to_hbm [thread:$0]  %s13958_s8, 256, %s19941_s17, [#allocation5], %s16433_s18, %s16433_s18, %s16434_s9  }
 0x6b1   :  { %v14377_v43 = vld [vmem:[%s19937_s13] ss:$0 sm:$0xff]  ;;  %s16436_s10 = smov [#allocation2]  }
 0x6b2   :  { %s13931_s27 = sshll.u32 %s16436_s10, 4  ;;  %s13932_s27 = int_to_ptr.vmem [resolvable:$true] %s13931_s27 }
 0x6b3   :  { %s16404_s7 = scalar_lea.vmem %s13932_s27, 256  ;;  %p16409_p3 = scmp.lt.s32.totalorder %s13932_s27, %s13932_s27 }
 0x6b4   :  { %p16405_p2 = scmp.ne.s32.totalorder %s13932_s27, %s16404_s7  ;;  %p16410_p4 = scmp.lt.s32.totalorder %s16404_s7, %s16404_s7 }
 0x6b6   :  { %p16411_p5 = por %p16410_p4, %p16409_p3 }
 0x6b8   :  { %p16412_p6 = pnand %p16411_p5, %p16405_p2 }
 0x769   :  { %v15974_v3 = vpop.f32.mrb[228].mxu1 }
 0x76a   :  { %v13923_v35 = vadd.f32 %v15974_v3, %v14377_v43  ;;  %v13906_v26 = vpop.f32.mrb[229].mxu1 }
 0x76b   :  { %v13922_v23 = vadd.f32 %v14377_v43, %v13906_v26 }
 0x76c   :  { %13925 = vst.msk [vmem:[#allocation2 + $0x8] sm:$0xff] %vm85_vm0, %v13923_v35 }
 0x76d   :  { %13924 = vst.msk [vmem:[#allocation2] sm:$0xff] %vm85_vm0, %v13922_v23 }
 0x76e   :  { %16415 = shalt.err (!%p16412_p6)
}
 0x76f   :  { %s16416_s11 = scalar_lea.hbm %s19938_s14, 256 }
 0x770   :  { %p16417_p7 = scmp.ne.s32.totalorder %s19938_s14, %s16416_s11  ;;  %p16420_p8 = scmp.lt.u32.totalorder %s16416_s11, %s19938_s14 }
 0x772   :  { %p16422_p9 = pnand %p16420_p8, %p16417_p7 }
 0x774   :  { %16425 = shalt.err (!%p16422_p9)
}
 0x775   :  { %13937 = dma.vmem_to_hbm [thread:$0]  %s13932_s27, 256, %s19938_s14, [#allocation3], %s16433_s18, %s16433_s18, %s16434_s9  }
 0x776   :  { %16426 = dma.done.wait [#allocation3], 256  }
 0x777   :  { %16427 = vsyncadd [#allocation3], 4294967040 }
 0x778   :  { %16428 = dma.done.wait [#allocation5], 512  }
 0x779   :  { %16429 = vsyncadd [#allocation5], 4294966784 }
 0x77a   :  { %13975 = vsyncpa [#allocation3], 1 }
 0x77b   :  { %13976 = vsyncpa [#allocation5], 1 }

</bundles_post_ra>
